<compile_context>
chip_gen: v7x
topology: tpu7x:2x2x1
jax: 0.10.0
libtpu: 0.0.40
codegen_flags: <defaults>
</compile_context>

<pallas_src>
import math

import jax
import jax.numpy as jnp
from jax import lax
from jax.experimental import pallas as pl
from jax.experimental.pallas import tpu as pltpu

# ---------------- small synthetic ChineseBERT config ----------------
B, S, H = 2, 8, 32            # batch, seq, hidden
NH, DH = 4, 8                 # attention heads, head dim
INTER = 64                    # FFN intermediate size
LAYERS = 2                    # encoder layers
VOCAB = 50
TYPE_VOCAB = 2
MAX_POS = 16
PINYIN_VOCAB = 30
PINYIN_E = 16                 # pinyin char embedding size
PINYIN_LOCS = 8               # pinyin chars per token
GLYPH_DIM = 48                # synthetic glyph feature dim (real model: 24*24*3)
CLASSES = 5                   # len(all_labels)
LN_EPS = 1e-12
OUT_PAD = 128                 # lane-dense padded logits width
BS = B * S

# mat32 slab row offsets (all multiples of 16 -> bf16 sublane-tile aligned)
OFF_WC0 = 0
OFF_WC1 = 16
OFF_WG = 32
OFF_WMAP = 80                              # [3H, H]
OFF_LAYER = 176                            # per layer: wo [H,H] then w2 [INTER,H]
LAYER_STRIDE = H + INTER                   # 96
MAT32_ROWS = OFF_LAYER + LAYERS * LAYER_STRIDE   # 368

# bias32 slab row indices (stacked as [N, 1, H] f32)
BIAS_BC, BIAS_BG, BIAS_BMAP, BIAS_ELN_G, BIAS_ELN_B = 0, 1, 2, 3, 4
BIAS_LAYER0 = 5
BIAS_PER_LAYER = 6                         # bo, ln1_g, ln1_b, b2, ln2_g, ln2_b


# ---------------- in-kernel helpers ----------------
def _layernorm(x, gamma, beta):
    mu = jnp.mean(x, axis=-1, keepdims=True)
    var = jnp.mean((x - mu) ** 2, axis=-1, keepdims=True)
    return (x - mu) * lax.rsqrt(var + LN_EPS) * gamma + beta


def _gelu(x):
    # exact (erf) GELU, as in BERT
    return x * 0.5 * (1.0 + lax.erf(x * (1.0 / math.sqrt(2.0))))


def _mm(a, b):
    return jnp.dot(a, b, preferred_element_type=jnp.float32)


# ---------------- the single fused kernel (whole batch, one program) -------
def bert_fused_kernel(word_ref, glyph_ref, postyp_ref, pin_ref, maskb_ref,
                      mat32_ref, mat96_ref, mat64_ref, fcw_ref,
                      bias32_ref, bias96_ref, bias64_ref, fcb_ref,
                      out_ref):
    bf16 = jnp.bfloat16

    # ---- FusionBertEmbeddings -------------------------------------------
    # PinyinEmbedding: Conv1d(E->H, k=2) over PINYIN_LOCS then max-pool.
    # Two matmuls over the whole [B*P*S, E] slab; the two overlapping window
    # views are sublane-aligned slices.
    pin = pin_ref[...]                                                # [B*P*S, E]
    ya = _mm(pin, mat32_ref[OFF_WC0:OFF_WC0 + PINYIN_E, :])           # [B*P*S, H]
    yb = _mm(pin, mat32_ref[OFF_WC1:OFF_WC1 + PINYIN_E, :])
    bc = bias32_ref[BIAS_BC]                                          # [1, H]
    pinyin_rows = []
    for b in range(B):
        base = b * PINYIN_LOCS * S
        ywin = (ya[base:base + (PINYIN_LOCS - 1) * S, :]
                + yb[base + S:base + PINYIN_LOCS * S, :])             # [(P-1)*S, H]
        pb = ywin[0:S, :]
        for p in range(1, PINYIN_LOCS - 1):
            pb = jnp.maximum(pb, ywin[p * S:(p + 1) * S, :])
        pinyin_rows.append(pb)
    pinyin = jnp.concatenate(pinyin_rows, axis=0) + bc                # [BS, H]

    glyph_p = (_mm(glyph_ref[...], mat32_ref[OFF_WG:OFF_WG + GLYPH_DIM, :])
               + bias32_ref[BIAS_BG])                                 # [BS, H]

    # map_fc(concat([word, pinyin, glyph])): one K=3H matmul
    fused_in = jnp.concatenate(
        [word_ref[...], pinyin.astype(bf16), glyph_p.astype(bf16)], axis=1)
    fused = (_mm(fused_in, mat32_ref[OFF_WMAP:OFF_WMAP + 3 * H, :])
             + bias32_ref[BIAS_BMAP])                                 # [BS, H]

    x = _layernorm(fused + postyp_ref[...],
                   bias32_ref[BIAS_ELN_G], bias32_ref[BIAS_ELN_B])    # [BS, H]
    # TODO(synk): dropout omitted (inference / eval semantics).

    scale = 1.0 / math.sqrt(DH)

    # ---- transformer encoder layers --------------------------------------
    for l in range(LAYERS):
        lbase = OFF_LAYER + l * LAYER_STRIDE
        wo = mat32_ref[lbase:lbase + H, :]                            # [H, H]
        w2 = mat32_ref[lbase + H:lbase + LAYER_STRIDE, :]             # [INTER, H]
        wqkv = mat96_ref[l * H:(l + 1) * H, :]                        # [H, 3H]
        w1 = mat64_ref[l * H:(l + 1) * H, :]                          # [H, INTER]
        bqkv = bias96_ref[l]                                          # [1, 3H]
        b1 = bias64_ref[l]                                            # [1, INTER]
        bb = BIAS_LAYER0 + l * BIAS_PER_LAYER
        bo, ln1_g, ln1_b, b2, ln2_g, ln2_b = (bias32_ref[bb + i] for i in range(6))

        # fused QKV projection over the whole batch: one [BS,H]@[H,3H] matmul
        qkv = _mm(x.astype(bf16), wqkv) + bqkv                        # [BS, 3H]

        # attention: tiny per-batch loop (no cross-batch mixing); per-head
        # dot_general contracting dim 1 of both operands (no transposes);
        # head contexts are lane-concatenated -> one K=H matmul with Wo.
        ctx_rows = []
        for b in range(B):
            r0 = b * S
            q_b = qkv[r0:r0 + S, 0:H]
            k_b = qkv[r0:r0 + S, H:2 * H]
            v_b = qkv[r0:r0 + S, 2 * H:3 * H]
            mask_add = maskb_ref[b]                                   # [1, S]
            heads = []
            for h in range(NH):
                sl = slice(h * DH, (h + 1) * DH)
                s_bh = lax.dot_general(
                    q_b[:, sl], k_b[:, sl],
                    dimension_numbers=(((1,), (1,)), ((), ())),
                    preferred_element_type=jnp.float32)               # [S, S]
                s_bh = s_bh * scale + mask_add
                s_bh = s_bh - jnp.max(s_bh, axis=-1, keepdims=True)
                e = jnp.exp(s_bh)
                prob = e * pl.reciprocal(jnp.sum(e, axis=-1, keepdims=True),
                                         approx=True)
                heads.append(_mm(prob, v_b[:, sl]))                   # [S, DH]
            ctx_rows.append(jnp.concatenate(heads, axis=1))           # [S, H]
        ctx = jnp.concatenate(ctx_rows, axis=0)                       # [BS, H]

        attn = _mm(ctx.astype(bf16), wo) + bo
        h1 = _layernorm(attn + x, ln1_g, ln1_b)
        ff = _gelu(_mm(h1.astype(bf16), w1) + b1)
        ff = _mm(ff.astype(bf16), w2) + b2
        x = _layernorm(ff + h1, ln2_g, ln2_b)

    # ---- classifier on CLS tokens (lane-dense padded output) --------------
    cls = jnp.concatenate([x[b * S:b * S + 1, :] for b in range(B)], axis=0)  # [B, H]
    out_ref[...] = _mm(cls.astype(bf16), fcw_ref[...]) + fcb_ref[...]         # [B, 128]


# ---------------- deterministic parameter init ----------------
def init_params(key):
    ks = iter(jax.random.split(key, 128))

    def nrm(shape):
        return 0.02 * jax.random.normal(next(ks), shape, dtype=jnp.float32)

    p = {
        "word_emb": nrm((VOCAB, H)),
        "pos_emb": nrm((MAX_POS, H)),
        "type_emb": nrm((TYPE_VOCAB, H)),
        "pinyin_emb": nrm((PINYIN_VOCAB, PINYIN_E)),
        "glyph_emb": nrm((VOCAB, GLYPH_DIM)),
        "wc0": nrm((PINYIN_E, H)), "wc1": nrm((PINYIN_E, H)),
        "bc": jnp.zeros((1, H), jnp.float32),
        "wg": nrm((GLYPH_DIM, H)), "bg": jnp.zeros((1, H), jnp.float32),
        "wmap": nrm((3 * H, H)), "bmap": jnp.zeros((1, H), jnp.float32),
        "emb_ln_g": jnp.ones((1, H), jnp.float32),
        "emb_ln_b": jnp.zeros((1, H), jnp.float32),
        "fc_w": nrm((H, CLASSES)),
        "fc_b": jnp.zeros((1, CLASSES), jnp.float32),
        "layers": [],
    }
    for _ in range(LAYERS):
        p["layers"].append(dict(
            wqkv=nrm((H, 3 * H)), bqkv=jnp.zeros((1, 3 * H), jnp.float32),
            wo=nrm((H, H)), bo=jnp.zeros((1, H), jnp.float32),
            ln1_g=jnp.ones((1, H), jnp.float32), ln1_b=jnp.zeros((1, H), jnp.float32),
            w1=nrm((H, INTER)), b1=jnp.zeros((1, INTER), jnp.float32),
            w2=nrm((INTER, H)), b2=jnp.zeros((1, H), jnp.float32),
            ln2_g=jnp.ones((1, H), jnp.float32), ln2_b=jnp.zeros((1, H), jnp.float32),
        ))
    return p


# ---------------- host-side parameter packing into dense VMEM slabs --------
def pack_params(p):
    mats32 = [p["wc0"], p["wc1"], p["wg"], p["wmap"]]
    for lp in p["layers"]:
        mats32 += [lp["wo"], lp["w2"]]
    mat32 = jnp.concatenate(mats32, axis=0).astype(jnp.bfloat16)       # [368, H]
    assert mat32.shape == (MAT32_ROWS, H)

    mat96 = jnp.concatenate([lp["wqkv"] for lp in p["layers"]],
                            axis=0).astype(jnp.bfloat16)               # [L*H, 3H]
    mat64 = jnp.concatenate([lp["w1"] for lp in p["layers"]],
                            axis=0).astype(jnp.bfloat16)               # [L*H, INTER]

    fcw = jnp.zeros((H, OUT_PAD), jnp.float32).at[:, :CLASSES].set(
        p["fc_w"]).astype(jnp.bfloat16)                                # [H, 128]
    fcb = jnp.zeros((1, OUT_PAD), jnp.float32).at[:, :CLASSES].set(p["fc_b"])

    b32 = [p["bc"], p["bg"], p["bmap"], p["emb_ln_g"], p["emb_ln_b"]]
    for lp in p["layers"]:
        b32 += [lp["bo"], lp["ln1_g"], lp["ln1_b"], lp["b2"], lp["ln2_g"], lp["ln2_b"]]
    bias32 = jnp.stack(b32, axis=0)                                    # [17, 1, H]
    bias96 = jnp.stack([lp["bqkv"] for lp in p["layers"]], axis=0)     # [L, 1, 3H]
    bias64 = jnp.stack([lp["b1"] for lp in p["layers"]], axis=0)       # [L, 1, INTER]

    return dict(word_emb=p["word_emb"], pos_emb=p["pos_emb"], type_emb=p["type_emb"],
                pinyin_emb=p["pinyin_emb"], glyph_emb=p["glyph_emb"],
                mat32=mat32, mat96=mat96, mat64=mat64, fcw=fcw,
                bias32=bias32, bias96=bias96, bias64=bias64, fcb=fcb)


# ---------------- Bert_Model.forward ----------------
@jax.jit
def bert_model_forward(packed, input_ids, attention_mask, token_type_ids, pinyin_ids):
    # embedding-table gathers + window re-layout (plain-JAX glue)
    word = packed["word_emb"][input_ids].reshape(BS, H).astype(jnp.bfloat16)
    glyph = packed["glyph_emb"][input_ids].reshape(BS, GLYPH_DIM).astype(jnp.bfloat16)
    postyp = (packed["pos_emb"][:S][None, :, :]
              + packed["type_emb"][token_type_ids]).reshape(BS, H)          # f32
    pin = packed["pinyin_emb"][pinyin_ids]                                  # [B,S,P,E]
    pin = jnp.transpose(pin, (0, 2, 1, 3)).reshape(
        B * PINYIN_LOCS * S, PINYIN_E).astype(jnp.bfloat16)                 # [B*P*S, E]
    maskb = ((1.0 - attention_mask.astype(jnp.float32)) * -10000.0
             ).reshape(B, 1, S)                                             # additive bias

    inputs = (word, glyph, postyp, pin, maskb,
              packed["mat32"], packed["mat96"], packed["mat64"], packed["fcw"],
              packed["bias32"], packed["bias96"], packed["bias64"], packed["fcb"])

    vmem_spec = pl.BlockSpec(memory_space=pltpu.MemorySpace.VMEM)
    logits_pad = pl.pallas_call(
        bert_fused_kernel,
        out_shape=jax.ShapeDtypeStruct((B, OUT_PAD), jnp.float32),
        in_specs=[vmem_spec] * len(inputs),
        out_specs=vmem_spec,
    )(*inputs)
    return logits_pad[:, :CLASSES]


if __name__ == "__main__":
    key = jax.random.PRNGKey(0)
    pkey, ikey, ykey = jax.random.split(key, 3)
    params = init_params(pkey)
    packed = pack_params(params)

    input_ids = jax.random.randint(ikey, (B, S), 0, VOCAB, dtype=jnp.int32)
    attention_mask = jnp.ones((B, S), dtype=jnp.int32).at[1, 6:].set(0)
    token_type_ids = jnp.zeros((B, S), dtype=jnp.int32)
    pinyin_ids = jax.random.randint(ykey, (B, S, PINYIN_LOCS), 0, PINYIN_VOCAB,
                                    dtype=jnp.int32)

    logits = bert_model_forward(packed, input_ids, attention_mask,
                                token_type_ids, pinyin_ids)
    logits = jax.block_until_ready(logits)
    assert logits.shape == (B, CLASSES)
    assert bool(jnp.all(jnp.isfinite(logits)))
    print("KERNEL_OK")
</pallas_src>

<mosaic_0001>
module attributes {stable_mosaic.version = 11 : i64} {
  func.func @bert_fused_kernel(%arg0: memref<16x32xbf16, #tpu.memory_space<vmem>>, %arg1: memref<16x48xbf16, #tpu.memory_space<vmem>>, %arg2: memref<16x32xf32, #tpu.memory_space<vmem>>, %arg3: memref<128x16xbf16, #tpu.memory_space<vmem>>, %arg4: memref<2x1x8xf32, #tpu.memory_space<vmem>>, %arg5: memref<368x32xbf16, #tpu.memory_space<vmem>>, %arg6: memref<64x96xbf16, #tpu.memory_space<vmem>>, %arg7: memref<64x64xbf16, #tpu.memory_space<vmem>>, %arg8: memref<32x128xbf16, #tpu.memory_space<vmem>>, %arg9: memref<17x1x32xf32, #tpu.memory_space<vmem>>, %arg10: memref<2x1x96xf32, #tpu.memory_space<vmem>>, %arg11: memref<2x1x64xf32, #tpu.memory_space<vmem>>, %arg12: memref<1x128xf32, #tpu.memory_space<vmem>>, %arg13: memref<2x128xf32, #tpu.memory_space<vmem>>) attributes {dimension_semantics = [], scalar_prefetch = 0 : i64, scratch_operands = 0 : i64, tpu.core_type = #tpu.core_type<tc>} {
    %c0 = arith.constant 0 : index
    %c0_0 = arith.constant 0 : index
    %0 = vector.load %arg3[%c0, %c0_0] : memref<128x16xbf16, #tpu.memory_space<vmem>>, vector<128x16xbf16>
    %c0_1 = arith.constant 0 : index
    %c0_2 = arith.constant 0 : index
    %1 = vector.load %arg5[%c0_1, %c0_2] : memref<368x32xbf16, #tpu.memory_space<vmem>>, vector<16x32xbf16>
    %cst = arith.constant dense<0.000000e+00> : vector<128x32xf32>
    %2 = tpu.matmul %0, %1, %cst {dimension_numbers = #tpu.dot_dimension_numbers<[1], [0], [0], [1], [0, 0, 1, 1], [], []>} : vector<128x16xbf16>, vector<16x32xbf16>, vector<128x32xf32> -> vector<128x32xf32>
    %c16 = arith.constant 16 : index
    %c0_3 = arith.constant 0 : index
    %3 = vector.load %arg5[%c16, %c0_3] : memref<368x32xbf16, #tpu.memory_space<vmem>>, vector<16x32xbf16>
    %cst_4 = arith.constant dense<0.000000e+00> : vector<128x32xf32>
    %4 = tpu.matmul %0, %3, %cst_4 {dimension_numbers = #tpu.dot_dimension_numbers<[1], [0], [0], [1], [0, 0, 1, 1], [], []>} : vector<128x16xbf16>, vector<16x32xbf16>, vector<128x32xf32> -> vector<128x32xf32>
    %c0_5 = arith.constant 0 : index
    %c0_6 = arith.constant 0 : index
    %c0_7 = arith.constant 0 : index
    %5 = vector.load %arg9[%c0_5, %c0_6, %c0_7] : memref<17x1x32xf32, #tpu.memory_space<vmem>>, vector<1x1x32xf32>
    %6 = vector.shape_cast %5 : vector<1x1x32xf32> to vector<1x32xf32>
    %7 = vector.extract_strided_slice %2 {offsets = [0, 0], sizes = [56, 32], strides = [1, 1]} : vector<128x32xf32> to vector<56x32xf32>
    %8 = vector.extract_strided_slice %4 {offsets = [8, 0], sizes = [56, 32], strides = [1, 1]} : vector<128x32xf32> to vector<56x32xf32>
    %9 = arith.addf %7, %8 : vector<56x32xf32>
    %10 = vector.extract_strided_slice %9 {offsets = [0, 0], sizes = [8, 32], strides = [1, 1]} : vector<56x32xf32> to vector<8x32xf32>
    %11 = vector.extract_strided_slice %9 {offsets = [8, 0], sizes = [8, 32], strides = [1, 1]} : vector<56x32xf32> to vector<8x32xf32>
    %12 = arith.maximumf %10, %11 : vector<8x32xf32>
    %13 = vector.extract_strided_slice %9 {offsets = [16, 0], sizes = [8, 32], strides = [1, 1]} : vector<56x32xf32> to vector<8x32xf32>
    %14 = arith.maximumf %12, %13 : vector<8x32xf32>
    %15 = vector.extract_strided_slice %9 {offsets = [24, 0], sizes = [8, 32], strides = [1, 1]} : vector<56x32xf32> to vector<8x32xf32>
    %16 = arith.maximumf %14, %15 : vector<8x32xf32>
    %17 = vector.extract_strided_slice %9 {offsets = [32, 0], sizes = [8, 32], strides = [1, 1]} : vector<56x32xf32> to vector<8x32xf32>
    %18 = arith.maximumf %16, %17 : vector<8x32xf32>
    %19 = vector.extract_strided_slice %9 {offsets = [40, 0], sizes = [8, 32], strides = [1, 1]} : vector<56x32xf32> to vector<8x32xf32>
    %20 = arith.maximumf %18, %19 : vector<8x32xf32>
    %21 = vector.extract_strided_slice %9 {offsets = [48, 0], sizes = [8, 32], strides = [1, 1]} : vector<56x32xf32> to vector<8x32xf32>
    %22 = arith.maximumf %20, %21 : vector<8x32xf32>
    %23 = vector.extract_strided_slice %2 {offsets = [64, 0], sizes = [56, 32], strides = [1, 1]} : vector<128x32xf32> to vector<56x32xf32>
    %24 = vector.extract_strided_slice %4 {offsets = [72, 0], sizes = [56, 32], strides = [1, 1]} : vector<128x32xf32> to vector<56x32xf32>
    %25 = arith.addf %23, %24 : vector<56x32xf32>
    %26 = vector.extract_strided_slice %25 {offsets = [0, 0], sizes = [8, 32], strides = [1, 1]} : vector<56x32xf32> to vector<8x32xf32>
    %27 = vector.extract_strided_slice %25 {offsets = [8, 0], sizes = [8, 32], strides = [1, 1]} : vector<56x32xf32> to vector<8x32xf32>
    %28 = arith.maximumf %26, %27 : vector<8x32xf32>
    %29 = vector.extract_strided_slice %25 {offsets = [16, 0], sizes = [8, 32], strides = [1, 1]} : vector<56x32xf32> to vector<8x32xf32>
    %30 = arith.maximumf %28, %29 : vector<8x32xf32>
    %31 = vector.extract_strided_slice %25 {offsets = [24, 0], sizes = [8, 32], strides = [1, 1]} : vector<56x32xf32> to vector<8x32xf32>
    %32 = arith.maximumf %30, %31 : vector<8x32xf32>
    %33 = vector.extract_strided_slice %25 {offsets = [32, 0], sizes = [8, 32], strides = [1, 1]} : vector<56x32xf32> to vector<8x32xf32>
    %34 = arith.maximumf %32, %33 : vector<8x32xf32>
    %35 = vector.extract_strided_slice %25 {offsets = [40, 0], sizes = [8, 32], strides = [1, 1]} : vector<56x32xf32> to vector<8x32xf32>
    %36 = arith.maximumf %34, %35 : vector<8x32xf32>
    %37 = vector.extract_strided_slice %25 {offsets = [48, 0], sizes = [8, 32], strides = [1, 1]} : vector<56x32xf32> to vector<8x32xf32>
    %38 = arith.maximumf %36, %37 : vector<8x32xf32>
    %39 = tpu.concatenate %22, %38 in 0 : vector<8x32xf32>, vector<8x32xf32> -> vector<16x32xf32>
    %40 = vector.broadcast %6 : vector<1x32xf32> to vector<16x32xf32>
    %41 = arith.addf %39, %40 : vector<16x32xf32>
    %c0_8 = arith.constant 0 : index
    %c0_9 = arith.constant 0 : index
    %42 = vector.load %arg1[%c0_8, %c0_9] : memref<16x48xbf16, #tpu.memory_space<vmem>>, vector<16x48xbf16>
    %c32 = arith.constant 32 : index
    %c0_10 = arith.constant 0 : index
    %43 = vector.load %arg5[%c32, %c0_10] : memref<368x32xbf16, #tpu.memory_space<vmem>>, vector<48x32xbf16>
    %cst_11 = arith.constant dense<0.000000e+00> : vector<16x32xf32>
    %44 = tpu.matmul %42, %43, %cst_11 {dimension_numbers = #tpu.dot_dimension_numbers<[1], [0], [0], [1], [0, 0, 1, 1], [], []>} : vector<16x48xbf16>, vector<48x32xbf16>, vector<16x32xf32> -> vector<16x32xf32>
    %c1 = arith.constant 1 : index
    %c0_12 = arith.constant 0 : index
    %c0_13 = arith.constant 0 : index
    %45 = vector.load %arg9[%c1, %c0_12, %c0_13] : memref<17x1x32xf32, #tpu.memory_space<vmem>>, vector<1x1x32xf32>
    %46 = vector.shape_cast %45 : vector<1x1x32xf32> to vector<1x32xf32>
    %47 = vector.broadcast %46 : vector<1x32xf32> to vector<16x32xf32>
    %48 = arith.addf %44, %47 : vector<16x32xf32>
    %c0_14 = arith.constant 0 : index
    %c0_15 = arith.constant 0 : index
    %49 = vector.load %arg0[%c0_14, %c0_15] : memref<16x32xbf16, #tpu.memory_space<vmem>>, vector<16x32xbf16>
    %50 = arith.truncf %41 : vector<16x32xf32> to vector<16x32xbf16>
    %51 = arith.truncf %48 : vector<16x32xf32> to vector<16x32xbf16>
    %52 = tpu.concatenate %49, %50, %51 in 1 : vector<16x32xbf16>, vector<16x32xbf16>, vector<16x32xbf16> -> vector<16x96xbf16>
    %c80 = arith.constant 80 : index
    %c0_16 = arith.constant 0 : index
    %53 = vector.load %arg5[%c80, %c0_16] : memref<368x32xbf16, #tpu.memory_space<vmem>>, vector<96x32xbf16>
    %cst_17 = arith.constant dense<0.000000e+00> : vector<16x32xf32>
    %54 = tpu.matmul %52, %53, %cst_17 {dimension_numbers = #tpu.dot_dimension_numbers<[1], [0], [0], [1], [0, 0, 1, 1], [], []>} : vector<16x96xbf16>, vector<96x32xbf16>, vector<16x32xf32> -> vector<16x32xf32>
    %c2 = arith.constant 2 : index
    %c0_18 = arith.constant 0 : index
    %c0_19 = arith.constant 0 : index
    %55 = vector.load %arg9[%c2, %c0_18, %c0_19] : memref<17x1x32xf32, #tpu.memory_space<vmem>>, vector<1x1x32xf32>
    %56 = vector.shape_cast %55 : vector<1x1x32xf32> to vector<1x32xf32>
    %57 = vector.broadcast %56 : vector<1x32xf32> to vector<16x32xf32>
    %58 = arith.addf %54, %57 : vector<16x32xf32>
    %c0_20 = arith.constant 0 : index
    %c0_21 = arith.constant 0 : index
    %59 = vector.load %arg2[%c0_20, %c0_21] : memref<16x32xf32, #tpu.memory_space<vmem>>, vector<16x32xf32>
    %60 = arith.addf %58, %59 : vector<16x32xf32>
    %c3 = arith.constant 3 : index
    %c0_22 = arith.constant 0 : index
    %c0_23 = arith.constant 0 : index
    %61 = vector.load %arg9[%c3, %c0_22, %c0_23] : memref<17x1x32xf32, #tpu.memory_space<vmem>>, vector<1x1x32xf32>
    %62 = vector.shape_cast %61 : vector<1x1x32xf32> to vector<1x32xf32>
    %c4 = arith.constant 4 : index
    %c0_24 = arith.constant 0 : index
    %c0_25 = arith.constant 0 : index
    %63 = vector.load %arg9[%c4, %c0_24, %c0_25] : memref<17x1x32xf32, #tpu.memory_space<vmem>>, vector<1x1x32xf32>
    %64 = vector.shape_cast %63 : vector<1x1x32xf32> to vector<1x32xf32>
    %cst_26 = arith.constant dense<0.000000e+00> : vector<16xf32>
    %65 = vector.multi_reduction <add>, %60, %cst_26 [1] : vector<16x32xf32> to vector<16xf32>
    %66 = vector.shape_cast %65 : vector<16xf32> to vector<16x1xf32>
    %cst_27 = arith.constant 3.200000e+01 : f32
    %67 = vector.broadcast %cst_27 : f32 to vector<16x1xf32>
    %68 = arith.divf %66, %67 : vector<16x1xf32>
    %69 = vector.broadcast %68 : vector<16x1xf32> to vector<16x32xf32>
    %70 = arith.subf %60, %69 : vector<16x32xf32>
    %71 = arith.mulf %70, %70 : vector<16x32xf32>
    %cst_28 = arith.constant dense<0.000000e+00> : vector<16xf32>
    %72 = vector.multi_reduction <add>, %71, %cst_28 [1] : vector<16x32xf32> to vector<16xf32>
    %73 = vector.shape_cast %72 : vector<16xf32> to vector<16x1xf32>
    %cst_29 = arith.constant 3.200000e+01 : f32
    %74 = vector.broadcast %cst_29 : f32 to vector<16x1xf32>
    %75 = arith.divf %73, %74 : vector<16x1xf32>
    %76 = vector.broadcast %68 : vector<16x1xf32> to vector<16x32xf32>
    %77 = arith.subf %60, %76 : vector<16x32xf32>
    %cst_30 = arith.constant 9.99999996E-13 : f32
    %78 = vector.broadcast %cst_30 : f32 to vector<16x1xf32>
    %79 = arith.addf %75, %78 : vector<16x1xf32>
    %80 = math.rsqrt %79 : vector<16x1xf32>
    %81 = vector.broadcast %80 : vector<16x1xf32> to vector<16x32xf32>
    %82 = arith.mulf %77, %81 : vector<16x32xf32>
    %83 = vector.broadcast %62 : vector<1x32xf32> to vector<16x32xf32>
    %84 = arith.mulf %82, %83 : vector<16x32xf32>
    %85 = vector.broadcast %64 : vector<1x32xf32> to vector<16x32xf32>
    %86 = arith.addf %84, %85 : vector<16x32xf32>
    %c176 = arith.constant 176 : index
    %c0_31 = arith.constant 0 : index
    %87 = vector.load %arg5[%c176, %c0_31] : memref<368x32xbf16, #tpu.memory_space<vmem>>, vector<32x32xbf16>
    %c208 = arith.constant 208 : index
    %c0_32 = arith.constant 0 : index
    %88 = vector.load %arg5[%c208, %c0_32] : memref<368x32xbf16, #tpu.memory_space<vmem>>, vector<64x32xbf16>
    %c0_33 = arith.constant 0 : index
    %c0_34 = arith.constant 0 : index
    %89 = vector.load %arg6[%c0_33, %c0_34] : memref<64x96xbf16, #tpu.memory_space<vmem>>, vector<32x96xbf16>
    %c0_35 = arith.constant 0 : index
    %c0_36 = arith.constant 0 : index
    %90 = vector.load %arg7[%c0_35, %c0_36] : memref<64x64xbf16, #tpu.memory_space<vmem>>, vector<32x64xbf16>
    %c0_37 = arith.constant 0 : index
    %c0_38 = arith.constant 0 : index
    %c0_39 = arith.constant 0 : index
    %91 = vector.load %arg10[%c0_37, %c0_38, %c0_39] : memref<2x1x96xf32, #tpu.memory_space<vmem>>, vector<1x1x96xf32>
    %92 = vector.shape_cast %91 : vector<1x1x96xf32> to vector<1x96xf32>
    %c0_40 = arith.constant 0 : index
    %c0_41 = arith.constant 0 : index
    %c0_42 = arith.constant 0 : index
    %93 = vector.load %arg11[%c0_40, %c0_41, %c0_42] : memref<2x1x64xf32, #tpu.memory_space<vmem>>, vector<1x1x64xf32>
    %94 = vector.shape_cast %93 : vector<1x1x64xf32> to vector<1x64xf32>
    %c5 = arith.constant 5 : index
    %c0_43 = arith.constant 0 : index
    %c0_44 = arith.constant 0 : index
    %95 = vector.load %arg9[%c5, %c0_43, %c0_44] : memref<17x1x32xf32, #tpu.memory_space<vmem>>, vector<1x1x32xf32>
    %96 = vector.shape_cast %95 : vector<1x1x32xf32> to vector<1x32xf32>
    %c6 = arith.constant 6 : index
    %c0_45 = arith.constant 0 : index
    %c0_46 = arith.constant 0 : index
    %97 = vector.load %arg9[%c6, %c0_45, %c0_46] : memref<17x1x32xf32, #tpu.memory_space<vmem>>, vector<1x1x32xf32>
    %98 = vector.shape_cast %97 : vector<1x1x32xf32> to vector<1x32xf32>
    %c7 = arith.constant 7 : index
    %c0_47 = arith.constant 0 : index
    %c0_48 = arith.constant 0 : index
    %99 = vector.load %arg9[%c7, %c0_47, %c0_48] : memref<17x1x32xf32, #tpu.memory_space<vmem>>, vector<1x1x32xf32>
    %100 = vector.shape_cast %99 : vector<1x1x32xf32> to vector<1x32xf32>
    %c8 = arith.constant 8 : index
    %c0_49 = arith.constant 0 : index
    %c0_50 = arith.constant 0 : index
    %101 = vector.load %arg9[%c8, %c0_49, %c0_50] : memref<17x1x32xf32, #tpu.memory_space<vmem>>, vector<1x1x32xf32>
    %102 = vector.shape_cast %101 : vector<1x1x32xf32> to vector<1x32xf32>
    %c9 = arith.constant 9 : index
    %c0_51 = arith.constant 0 : index
    %c0_52 = arith.constant 0 : index
    %103 = vector.load %arg9[%c9, %c0_51, %c0_52] : memref<17x1x32xf32, #tpu.memory_space<vmem>>, vector<1x1x32xf32>
    %104 = vector.shape_cast %103 : vector<1x1x32xf32> to vector<1x32xf32>
    %c10 = arith.constant 10 : index
    %c0_53 = arith.constant 0 : index
    %c0_54 = arith.constant 0 : index
    %105 = vector.load %arg9[%c10, %c0_53, %c0_54] : memref<17x1x32xf32, #tpu.memory_space<vmem>>, vector<1x1x32xf32>
    %106 = vector.shape_cast %105 : vector<1x1x32xf32> to vector<1x32xf32>
    %107 = arith.truncf %86 : vector<16x32xf32> to vector<16x32xbf16>
    %cst_55 = arith.constant dense<0.000000e+00> : vector<16x96xf32>
    %108 = tpu.matmul %107, %89, %cst_55 {dimension_numbers = #tpu.dot_dimension_numbers<[1], [0], [0], [1], [0, 0, 1, 1], [], []>} : vector<16x32xbf16>, vector<32x96xbf16>, vector<16x96xf32> -> vector<16x96xf32>
    %109 = vector.broadcast %92 : vector<1x96xf32> to vector<16x96xf32>
    %110 = arith.addf %108, %109 : vector<16x96xf32>
    %111 = vector.extract_strided_slice %110 {offsets = [0, 0], sizes = [8, 32], strides = [1, 1]} : vector<16x96xf32> to vector<8x32xf32>
    %112 = vector.extract_strided_slice %110 {offsets = [0, 32], sizes = [8, 32], strides = [1, 1]} : vector<16x96xf32> to vector<8x32xf32>
    %113 = vector.extract_strided_slice %110 {offsets = [0, 64], sizes = [8, 32], strides = [1, 1]} : vector<16x96xf32> to vector<8x32xf32>
    %c0_56 = arith.constant 0 : index
    %c0_57 = arith.constant 0 : index
    %c0_58 = arith.constant 0 : index
    %114 = vector.load %arg4[%c0_56, %c0_57, %c0_58] : memref<2x1x8xf32, #tpu.memory_space<vmem>>, vector<1x1x8xf32>
    %115 = vector.shape_cast %114 : vector<1x1x8xf32> to vector<1x8xf32>
    %116 = vector.extract_strided_slice %111 {offsets = [0, 0], sizes = [8, 8], strides = [1, 1]} : vector<8x32xf32> to vector<8x8xf32>
    %117 = vector.extract_strided_slice %112 {offsets = [0, 0], sizes = [8, 8], strides = [1, 1]} : vector<8x32xf32> to vector<8x8xf32>
    %cst_59 = arith.constant dense<0.000000e+00> : vector<8x8xf32>
    %118 = tpu.matmul %116, %117, %cst_59 {dimension_numbers = #tpu.dot_dimension_numbers<[1], [1], [0], [0], [0, 0, 1, 0], [], []>} : vector<8x8xf32>, vector<8x8xf32>, vector<8x8xf32> -> vector<8x8xf32>
    %cst_60 = arith.constant 0.353553385 : f32
    %119 = vector.broadcast %cst_60 : f32 to vector<8x8xf32>
    %120 = arith.mulf %118, %119 : vector<8x8xf32>
    %121 = vector.broadcast %115 : vector<1x8xf32> to vector<8x8xf32>
    %122 = arith.addf %120, %121 : vector<8x8xf32>
    %cst_61 = arith.constant dense<0xFF800000> : vector<8xf32>
    %123 = vector.multi_reduction <maximumf>, %122, %cst_61 [1] : vector<8x8xf32> to vector<8xf32>
    %124 = vector.shape_cast %123 : vector<8xf32> to vector<8x1xf32>
    %125 = vector.broadcast %124 : vector<8x1xf32> to vector<8x8xf32>
    %126 = arith.subf %122, %125 : vector<8x8xf32>
    %127 = math.exp %126 : vector<8x8xf32>
    %cst_62 = arith.constant dense<0.000000e+00> : vector<8xf32>
    %128 = vector.multi_reduction <add>, %127, %cst_62 [1] : vector<8x8xf32> to vector<8xf32>
    %129 = vector.shape_cast %128 : vector<8xf32> to vector<8x1xf32>
    %130 = tpu.reciprocal %129 {approx = true} : vector<8x1xf32> -> vector<8x1xf32>
    %131 = vector.broadcast %130 : vector<8x1xf32> to vector<8x8xf32>
    %132 = arith.mulf %127, %131 : vector<8x8xf32>
    %133 = vector.extract_strided_slice %113 {offsets = [0, 0], sizes = [8, 8], strides = [1, 1]} : vector<8x32xf32> to vector<8x8xf32>
    %cst_63 = arith.constant dense<0.000000e+00> : vector<8x8xf32>
    %134 = tpu.matmul %132, %133, %cst_63 {dimension_numbers = #tpu.dot_dimension_numbers<[1], [0], [0], [1], [0, 0, 1, 1], [], []>} : vector<8x8xf32>, vector<8x8xf32>, vector<8x8xf32> -> vector<8x8xf32>
    %135 = vector.extract_strided_slice %111 {offsets = [0, 8], sizes = [8, 8], strides = [1, 1]} : vector<8x32xf32> to vector<8x8xf32>
    %136 = vector.extract_strided_slice %112 {offsets = [0, 8], sizes = [8, 8], strides = [1, 1]} : vector<8x32xf32> to vector<8x8xf32>
    %cst_64 = arith.constant dense<0.000000e+00> : vector<8x8xf32>
    %137 = tpu.matmul %135, %136, %cst_64 {dimension_numbers = #tpu.dot_dimension_numbers<[1], [1], [0], [0], [0, 0, 1, 0], [], []>} : vector<8x8xf32>, vector<8x8xf32>, vector<8x8xf32> -> vector<8x8xf32>
    %cst_65 = arith.constant 0.353553385 : f32
    %138 = vector.broadcast %cst_65 : f32 to vector<8x8xf32>
    %139 = arith.mulf %137, %138 : vector<8x8xf32>
    %140 = vector.broadcast %115 : vector<1x8xf32> to vector<8x8xf32>
    %141 = arith.addf %139, %140 : vector<8x8xf32>
    %cst_66 = arith.constant dense<0xFF800000> : vector<8xf32>
    %142 = vector.multi_reduction <maximumf>, %141, %cst_66 [1] : vector<8x8xf32> to vector<8xf32>
    %143 = vector.shape_cast %142 : vector<8xf32> to vector<8x1xf32>
    %144 = vector.broadcast %143 : vector<8x1xf32> to vector<8x8xf32>
    %145 = arith.subf %141, %144 : vector<8x8xf32>
    %146 = math.exp %145 : vector<8x8xf32>
    %cst_67 = arith.constant dense<0.000000e+00> : vector<8xf32>
    %147 = vector.multi_reduction <add>, %146, %cst_67 [1] : vector<8x8xf32> to vector<8xf32>
    %148 = vector.shape_cast %147 : vector<8xf32> to vector<8x1xf32>
    %149 = tpu.reciprocal %148 {approx = true} : vector<8x1xf32> -> vector<8x1xf32>
    %150 = vector.broadcast %149 : vector<8x1xf32> to vector<8x8xf32>
    %151 = arith.mulf %146, %150 : vector<8x8xf32>
    %152 = vector.extract_strided_slice %113 {offsets = [0, 8], sizes = [8, 8], strides = [1, 1]} : vector<8x32xf32> to vector<8x8xf32>
    %cst_68 = arith.constant dense<0.000000e+00> : vector<8x8xf32>
    %153 = tpu.matmul %151, %152, %cst_68 {dimension_numbers = #tpu.dot_dimension_numbers<[1], [0], [0], [1], [0, 0, 1, 1], [], []>} : vector<8x8xf32>, vector<8x8xf32>, vector<8x8xf32> -> vector<8x8xf32>
    %154 = vector.extract_strided_slice %111 {offsets = [0, 16], sizes = [8, 8], strides = [1, 1]} : vector<8x32xf32> to vector<8x8xf32>
    %155 = vector.extract_strided_slice %112 {offsets = [0, 16], sizes = [8, 8], strides = [1, 1]} : vector<8x32xf32> to vector<8x8xf32>
    %cst_69 = arith.constant dense<0.000000e+00> : vector<8x8xf32>
    %156 = tpu.matmul %154, %155, %cst_69 {dimension_numbers = #tpu.dot_dimension_numbers<[1], [1], [0], [0], [0, 0, 1, 0], [], []>} : vector<8x8xf32>, vector<8x8xf32>, vector<8x8xf32> -> vector<8x8xf32>
    %cst_70 = arith.constant 0.353553385 : f32
    %157 = vector.broadcast %cst_70 : f32 to vector<8x8xf32>
    %158 = arith.mulf %156, %157 : vector<8x8xf32>
    %159 = vector.broadcast %115 : vector<1x8xf32> to vector<8x8xf32>
    %160 = arith.addf %158, %159 : vector<8x8xf32>
    %cst_71 = arith.constant dense<0xFF800000> : vector<8xf32>
    %161 = vector.multi_reduction <maximumf>, %160, %cst_71 [1] : vector<8x8xf32> to vector<8xf32>
    %162 = vector.shape_cast %161 : vector<8xf32> to vector<8x1xf32>
    %163 = vector.broadcast %162 : vector<8x1xf32> to vector<8x8xf32>
    %164 = arith.subf %160, %163 : vector<8x8xf32>
    %165 = math.exp %164 : vector<8x8xf32>
    %cst_72 = arith.constant dense<0.000000e+00> : vector<8xf32>
    %166 = vector.multi_reduction <add>, %165, %cst_72 [1] : vector<8x8xf32> to vector<8xf32>
    %167 = vector.shape_cast %166 : vector<8xf32> to vector<8x1xf32>
    %168 = tpu.reciprocal %167 {approx = true} : vector<8x1xf32> -> vector<8x1xf32>
    %169 = vector.broadcast %168 : vector<8x1xf32> to vector<8x8xf32>
    %170 = arith.mulf %165, %169 : vector<8x8xf32>
    %171 = vector.extract_strided_slice %113 {offsets = [0, 16], sizes = [8, 8], strides = [1, 1]} : vector<8x32xf32> to vector<8x8xf32>
    %cst_73 = arith.constant dense<0.000000e+00> : vector<8x8xf32>
    %172 = tpu.matmul %170, %171, %cst_73 {dimension_numbers = #tpu.dot_dimension_numbers<[1], [0], [0], [1], [0, 0, 1, 1], [], []>} : vector<8x8xf32>, vector<8x8xf32>, vector<8x8xf32> -> vector<8x8xf32>
    %173 = vector.extract_strided_slice %111 {offsets = [0, 24], sizes = [8, 8], strides = [1, 1]} : vector<8x32xf32> to vector<8x8xf32>
    %174 = vector.extract_strided_slice %112 {offsets = [0, 24], sizes = [8, 8], strides = [1, 1]} : vector<8x32xf32> to vector<8x8xf32>
    %cst_74 = arith.constant dense<0.000000e+00> : vector<8x8xf32>
    %175 = tpu.matmul %173, %174, %cst_74 {dimension_numbers = #tpu.dot_dimension_numbers<[1], [1], [0], [0], [0, 0, 1, 0], [], []>} : vector<8x8xf32>, vector<8x8xf32>, vector<8x8xf32> -> vector<8x8xf32>
    %cst_75 = arith.constant 0.353553385 : f32
    %176 = vector.broadcast %cst_75 : f32 to vector<8x8xf32>
    %177 = arith.mulf %175, %176 : vector<8x8xf32>
    %178 = vector.broadcast %115 : vector<1x8xf32> to vector<8x8xf32>
    %179 = arith.addf %177, %178 : vector<8x8xf32>
    %cst_76 = arith.constant dense<0xFF800000> : vector<8xf32>
    %180 = vector.multi_reduction <maximumf>, %179, %cst_76 [1] : vector<8x8xf32> to vector<8xf32>
    %181 = vector.shape_cast %180 : vector<8xf32> to vector<8x1xf32>
    %182 = vector.broadcast %181 : vector<8x1xf32> to vector<8x8xf32>
    %183 = arith.subf %179, %182 : vector<8x8xf32>
    %184 = math.exp %183 : vector<8x8xf32>
    %cst_77 = arith.constant dense<0.000000e+00> : vector<8xf32>
    %185 = vector.multi_reduction <add>, %184, %cst_77 [1] : vector<8x8xf32> to vector<8xf32>
    %186 = vector.shape_cast %185 : vector<8xf32> to vector<8x1xf32>
    %187 = tpu.reciprocal %186 {approx = true} : vector<8x1xf32> -> vector<8x1xf32>
    %188 = vector.broadcast %187 : vector<8x1xf32> to vector<8x8xf32>
    %189 = arith.mulf %184, %188 : vector<8x8xf32>
    %190 = vector.extract_strided_slice %113 {offsets = [0, 24], sizes = [8, 8], strides = [1, 1]} : vector<8x32xf32> to vector<8x8xf32>
    %cst_78 = arith.constant dense<0.000000e+00> : vector<8x8xf32>
    %191 = tpu.matmul %189, %190, %cst_78 {dimension_numbers = #tpu.dot_dimension_numbers<[1], [0], [0], [1], [0, 0, 1, 1], [], []>} : vector<8x8xf32>, vector<8x8xf32>, vector<8x8xf32> -> vector<8x8xf32>
    %192 = tpu.concatenate %134, %153, %172, %191 in 1 : vector<8x8xf32>, vector<8x8xf32>, vector<8x8xf32>, vector<8x8xf32> -> vector<8x32xf32>
    %193 = vector.extract_strided_slice %110 {offsets = [8, 0], sizes = [8, 32], strides = [1, 1]} : vector<16x96xf32> to vector<8x32xf32>
    %194 = vector.extract_strided_slice %110 {offsets = [8, 32], sizes = [8, 32], strides = [1, 1]} : vector<16x96xf32> to vector<8x32xf32>
    %195 = vector.extract_strided_slice %110 {offsets = [8, 64], sizes = [8, 32], strides = [1, 1]} : vector<16x96xf32> to vector<8x32xf32>
    %c1_79 = arith.constant 1 : index
    %c0_80 = arith.constant 0 : index
    %c0_81 = arith.constant 0 : index
    %196 = vector.load %arg4[%c1_79, %c0_80, %c0_81] : memref<2x1x8xf32, #tpu.memory_space<vmem>>, vector<1x1x8xf32>
    %197 = vector.shape_cast %196 : vector<1x1x8xf32> to vector<1x8xf32>
    %198 = vector.extract_strided_slice %193 {offsets = [0, 0], sizes = [8, 8], strides = [1, 1]} : vector<8x32xf32> to vector<8x8xf32>
    %199 = vector.extract_strided_slice %194 {offsets = [0, 0], sizes = [8, 8], strides = [1, 1]} : vector<8x32xf32> to vector<8x8xf32>
    %cst_82 = arith.constant dense<0.000000e+00> : vector<8x8xf32>
    %200 = tpu.matmul %198, %199, %cst_82 {dimension_numbers = #tpu.dot_dimension_numbers<[1], [1], [0], [0], [0, 0, 1, 0], [], []>} : vector<8x8xf32>, vector<8x8xf32>, vector<8x8xf32> -> vector<8x8xf32>
    %cst_83 = arith.constant 0.353553385 : f32
    %201 = vector.broadcast %cst_83 : f32 to vector<8x8xf32>
    %202 = arith.mulf %200, %201 : vector<8x8xf32>
    %203 = vector.broadcast %197 : vector<1x8xf32> to vector<8x8xf32>
    %204 = arith.addf %202, %203 : vector<8x8xf32>
    %cst_84 = arith.constant dense<0xFF800000> : vector<8xf32>
    %205 = vector.multi_reduction <maximumf>, %204, %cst_84 [1] : vector<8x8xf32> to vector<8xf32>
    %206 = vector.shape_cast %205 : vector<8xf32> to vector<8x1xf32>
    %207 = vector.broadcast %206 : vector<8x1xf32> to vector<8x8xf32>
    %208 = arith.subf %204, %207 : vector<8x8xf32>
    %209 = math.exp %208 : vector<8x8xf32>
    %cst_85 = arith.constant dense<0.000000e+00> : vector<8xf32>
    %210 = vector.multi_reduction <add>, %209, %cst_85 [1] : vector<8x8xf32> to vector<8xf32>
    %211 = vector.shape_cast %210 : vector<8xf32> to vector<8x1xf32>
    %212 = tpu.reciprocal %211 {approx = true} : vector<8x1xf32> -> vector<8x1xf32>
    %213 = vector.broadcast %212 : vector<8x1xf32> to vector<8x8xf32>
    %214 = arith.mulf %209, %213 : vector<8x8xf32>
    %215 = vector.extract_strided_slice %195 {offsets = [0, 0], sizes = [8, 8], strides = [1, 1]} : vector<8x32xf32> to vector<8x8xf32>
    %cst_86 = arith.constant dense<0.000000e+00> : vector<8x8xf32>
    %216 = tpu.matmul %214, %215, %cst_86 {dimension_numbers = #tpu.dot_dimension_numbers<[1], [0], [0], [1], [0, 0, 1, 1], [], []>} : vector<8x8xf32>, vector<8x8xf32>, vector<8x8xf32> -> vector<8x8xf32>
    %217 = vector.extract_strided_slice %193 {offsets = [0, 8], sizes = [8, 8], strides = [1, 1]} : vector<8x32xf32> to vector<8x8xf32>
    %218 = vector.extract_strided_slice %194 {offsets = [0, 8], sizes = [8, 8], strides = [1, 1]} : vector<8x32xf32> to vector<8x8xf32>
    %cst_87 = arith.constant dense<0.000000e+00> : vector<8x8xf32>
    %219 = tpu.matmul %217, %218, %cst_87 {dimension_numbers = #tpu.dot_dimension_numbers<[1], [1], [0], [0], [0, 0, 1, 0], [], []>} : vector<8x8xf32>, vector<8x8xf32>, vector<8x8xf32> -> vector<8x8xf32>
    %cst_88 = arith.constant 0.353553385 : f32
    %220 = vector.broadcast %cst_88 : f32 to vector<8x8xf32>
    %221 = arith.mulf %219, %220 : vector<8x8xf32>
    %222 = vector.broadcast %197 : vector<1x8xf32> to vector<8x8xf32>
    %223 = arith.addf %221, %222 : vector<8x8xf32>
    %cst_89 = arith.constant dense<0xFF800000> : vector<8xf32>
    %224 = vector.multi_reduction <maximumf>, %223, %cst_89 [1] : vector<8x8xf32> to vector<8xf32>
    %225 = vector.shape_cast %224 : vector<8xf32> to vector<8x1xf32>
    %226 = vector.broadcast %225 : vector<8x1xf32> to vector<8x8xf32>
    %227 = arith.subf %223, %226 : vector<8x8xf32>
    %228 = math.exp %227 : vector<8x8xf32>
    %cst_90 = arith.constant dense<0.000000e+00> : vector<8xf32>
    %229 = vector.multi_reduction <add>, %228, %cst_90 [1] : vector<8x8xf32> to vector<8xf32>
    %230 = vector.shape_cast %229 : vector<8xf32> to vector<8x1xf32>
    %231 = tpu.reciprocal %230 {approx = true} : vector<8x1xf32> -> vector<8x1xf32>
    %232 = vector.broadcast %231 : vector<8x1xf32> to vector<8x8xf32>
    %233 = arith.mulf %228, %232 : vector<8x8xf32>
    %234 = vector.extract_strided_slice %195 {offsets = [0, 8], sizes = [8, 8], strides = [1, 1]} : vector<8x32xf32> to vector<8x8xf32>
    %cst_91 = arith.constant dense<0.000000e+00> : vector<8x8xf32>
    %235 = tpu.matmul %233, %234, %cst_91 {dimension_numbers = #tpu.dot_dimension_numbers<[1], [0], [0], [1], [0, 0, 1, 1], [], []>} : vector<8x8xf32>, vector<8x8xf32>, vector<8x8xf32> -> vector<8x8xf32>
    %236 = vector.extract_strided_slice %193 {offsets = [0, 16], sizes = [8, 8], strides = [1, 1]} : vector<8x32xf32> to vector<8x8xf32>
    %237 = vector.extract_strided_slice %194 {offsets = [0, 16], sizes = [8, 8], strides = [1, 1]} : vector<8x32xf32> to vector<8x8xf32>
    %cst_92 = arith.constant dense<0.000000e+00> : vector<8x8xf32>
    %238 = tpu.matmul %236, %237, %cst_92 {dimension_numbers = #tpu.dot_dimension_numbers<[1], [1], [0], [0], [0, 0, 1, 0], [], []>} : vector<8x8xf32>, vector<8x8xf32>, vector<8x8xf32> -> vector<8x8xf32>
    %cst_93 = arith.constant 0.353553385 : f32
    %239 = vector.broadcast %cst_93 : f32 to vector<8x8xf32>
    %240 = arith.mulf %238, %239 : vector<8x8xf32>
    %241 = vector.broadcast %197 : vector<1x8xf32> to vector<8x8xf32>
    %242 = arith.addf %240, %241 : vector<8x8xf32>
    %cst_94 = arith.constant dense<0xFF800000> : vector<8xf32>
    %243 = vector.multi_reduction <maximumf>, %242, %cst_94 [1] : vector<8x8xf32> to vector<8xf32>
    %244 = vector.shape_cast %243 : vector<8xf32> to vector<8x1xf32>
    %245 = vector.broadcast %244 : vector<8x1xf32> to vector<8x8xf32>
    %246 = arith.subf %242, %245 : vector<8x8xf32>
    %247 = math.exp %246 : vector<8x8xf32>
    %cst_95 = arith.constant dense<0.000000e+00> : vector<8xf32>
    %248 = vector.multi_reduction <add>, %247, %cst_95 [1] : vector<8x8xf32> to vector<8xf32>
    %249 = vector.shape_cast %248 : vector<8xf32> to vector<8x1xf32>
    %250 = tpu.reciprocal %249 {approx = true} : vector<8x1xf32> -> vector<8x1xf32>
    %251 = vector.broadcast %250 : vector<8x1xf32> to vector<8x8xf32>
    %252 = arith.mulf %247, %251 : vector<8x8xf32>
    %253 = vector.extract_strided_slice %195 {offsets = [0, 16], sizes = [8, 8], strides = [1, 1]} : vector<8x32xf32> to vector<8x8xf32>
    %cst_96 = arith.constant dense<0.000000e+00> : vector<8x8xf32>
    %254 = tpu.matmul %252, %253, %cst_96 {dimension_numbers = #tpu.dot_dimension_numbers<[1], [0], [0], [1], [0, 0, 1, 1], [], []>} : vector<8x8xf32>, vector<8x8xf32>, vector<8x8xf32> -> vector<8x8xf32>
    %255 = vector.extract_strided_slice %193 {offsets = [0, 24], sizes = [8, 8], strides = [1, 1]} : vector<8x32xf32> to vector<8x8xf32>
    %256 = vector.extract_strided_slice %194 {offsets = [0, 24], sizes = [8, 8], strides = [1, 1]} : vector<8x32xf32> to vector<8x8xf32>
    %cst_97 = arith.constant dense<0.000000e+00> : vector<8x8xf32>
    %257 = tpu.matmul %255, %256, %cst_97 {dimension_numbers = #tpu.dot_dimension_numbers<[1], [1], [0], [0], [0, 0, 1, 0], [], []>} : vector<8x8xf32>, vector<8x8xf32>, vector<8x8xf32> -> vector<8x8xf32>
    %cst_98 = arith.constant 0.353553385 : f32
    %258 = vector.broadcast %cst_98 : f32 to vector<8x8xf32>
    %259 = arith.mulf %257, %258 : vector<8x8xf32>
    %260 = vector.broadcast %197 : vector<1x8xf32> to vector<8x8xf32>
    %261 = arith.addf %259, %260 : vector<8x8xf32>
    %cst_99 = arith.constant dense<0xFF800000> : vector<8xf32>
    %262 = vector.multi_reduction <maximumf>, %261, %cst_99 [1] : vector<8x8xf32> to vector<8xf32>
    %263 = vector.shape_cast %262 : vector<8xf32> to vector<8x1xf32>
    %264 = vector.broadcast %263 : vector<8x1xf32> to vector<8x8xf32>
    %265 = arith.subf %261, %264 : vector<8x8xf32>
    %266 = math.exp %265 : vector<8x8xf32>
    %cst_100 = arith.constant dense<0.000000e+00> : vector<8xf32>
    %267 = vector.multi_reduction <add>, %266, %cst_100 [1] : vector<8x8xf32> to vector<8xf32>
    %268 = vector.shape_cast %267 : vector<8xf32> to vector<8x1xf32>
    %269 = tpu.reciprocal %268 {approx = true} : vector<8x1xf32> -> vector<8x1xf32>
    %270 = vector.broadcast %269 : vector<8x1xf32> to vector<8x8xf32>
    %271 = arith.mulf %266, %270 : vector<8x8xf32>
    %272 = vector.extract_strided_slice %195 {offsets = [0, 24], sizes = [8, 8], strides = [1, 1]} : vector<8x32xf32> to vector<8x8xf32>
    %cst_101 = arith.constant dense<0.000000e+00> : vector<8x8xf32>
    %273 = tpu.matmul %271, %272, %cst_101 {dimension_numbers = #tpu.dot_dimension_numbers<[1], [0], [0], [1], [0, 0, 1, 1], [], []>} : vector<8x8xf32>, vector<8x8xf32>, vector<8x8xf32> -> vector<8x8xf32>
    %274 = tpu.concatenate %216, %235, %254, %273 in 1 : vector<8x8xf32>, vector<8x8xf32>, vector<8x8xf32>, vector<8x8xf32> -> vector<8x32xf32>
    %275 = tpu.concatenate %192, %274 in 0 : vector<8x32xf32>, vector<8x32xf32> -> vector<16x32xf32>
    %276 = arith.truncf %275 : vector<16x32xf32> to vector<16x32xbf16>
    %cst_102 = arith.constant dense<0.000000e+00> : vector<16x32xf32>
    %277 = tpu.matmul %276, %87, %cst_102 {dimension_numbers = #tpu.dot_dimension_numbers<[1], [0], [0], [1], [0, 0, 1, 1], [], []>} : vector<16x32xbf16>, vector<32x32xbf16>, vector<16x32xf32> -> vector<16x32xf32>
    %278 = vector.broadcast %96 : vector<1x32xf32> to vector<16x32xf32>
    %279 = arith.addf %277, %278 : vector<16x32xf32>
    %280 = arith.addf %279, %86 : vector<16x32xf32>
    %cst_103 = arith.constant dense<0.000000e+00> : vector<16xf32>
    %281 = vector.multi_reduction <add>, %280, %cst_103 [1] : vector<16x32xf32> to vector<16xf32>
    %282 = vector.shape_cast %281 : vector<16xf32> to vector<16x1xf32>
    %cst_104 = arith.constant 3.200000e+01 : f32
    %283 = vector.broadcast %cst_104 : f32 to vector<16x1xf32>
    %284 = arith.divf %282, %283 : vector<16x1xf32>
    %285 = vector.broadcast %284 : vector<16x1xf32> to vector<16x32xf32>
    %286 = arith.subf %280, %285 : vector<16x32xf32>
    %287 = arith.mulf %286, %286 : vector<16x32xf32>
    %cst_105 = arith.constant dense<0.000000e+00> : vector<16xf32>
    %288 = vector.multi_reduction <add>, %287, %cst_105 [1] : vector<16x32xf32> to vector<16xf32>
    %289 = vector.shape_cast %288 : vector<16xf32> to vector<16x1xf32>
    %cst_106 = arith.constant 3.200000e+01 : f32
    %290 = vector.broadcast %cst_106 : f32 to vector<16x1xf32>
    %291 = arith.divf %289, %290 : vector<16x1xf32>
    %292 = vector.broadcast %284 : vector<16x1xf32> to vector<16x32xf32>
    %293 = arith.subf %280, %292 : vector<16x32xf32>
    %cst_107 = arith.constant 9.99999996E-13 : f32
    %294 = vector.broadcast %cst_107 : f32 to vector<16x1xf32>
    %295 = arith.addf %291, %294 : vector<16x1xf32>
    %296 = math.rsqrt %295 : vector<16x1xf32>
    %297 = vector.broadcast %296 : vector<16x1xf32> to vector<16x32xf32>
    %298 = arith.mulf %293, %297 : vector<16x32xf32>
    %299 = vector.broadcast %98 : vector<1x32xf32> to vector<16x32xf32>
    %300 = arith.mulf %298, %299 : vector<16x32xf32>
    %301 = vector.broadcast %100 : vector<1x32xf32> to vector<16x32xf32>
    %302 = arith.addf %300, %301 : vector<16x32xf32>
    %303 = arith.truncf %302 : vector<16x32xf32> to vector<16x32xbf16>
    %cst_108 = arith.constant dense<0.000000e+00> : vector<16x64xf32>
    %304 = tpu.matmul %303, %90, %cst_108 {dimension_numbers = #tpu.dot_dimension_numbers<[1], [0], [0], [1], [0, 0, 1, 1], [], []>} : vector<16x32xbf16>, vector<32x64xbf16>, vector<16x64xf32> -> vector<16x64xf32>
    %305 = vector.broadcast %94 : vector<1x64xf32> to vector<16x64xf32>
    %306 = arith.addf %304, %305 : vector<16x64xf32>
    %cst_109 = arith.constant 5.000000e-01 : f32
    %307 = vector.broadcast %cst_109 : f32 to vector<16x64xf32>
    %308 = arith.mulf %306, %307 : vector<16x64xf32>
    %cst_110 = arith.constant 0.707106769 : f32
    %309 = vector.broadcast %cst_110 : f32 to vector<16x64xf32>
    %310 = arith.mulf %306, %309 : vector<16x64xf32>
    %311 = math.erf %310 : vector<16x64xf32>
    %cst_111 = arith.constant 1.000000e+00 : f32
    %312 = vector.broadcast %cst_111 : f32 to vector<16x64xf32>
    %313 = arith.addf %312, %311 : vector<16x64xf32>
    %314 = arith.mulf %308, %313 : vector<16x64xf32>
    %315 = arith.truncf %314 : vector<16x64xf32> to vector<16x64xbf16>
    %cst_112 = arith.constant dense<0.000000e+00> : vector<16x32xf32>
    %316 = tpu.matmul %315, %88, %cst_112 {dimension_numbers = #tpu.dot_dimension_numbers<[1], [0], [0], [1], [0, 0, 1, 1], [], []>} : vector<16x64xbf16>, vector<64x32xbf16>, vector<16x32xf32> -> vector<16x32xf32>
    %317 = vector.broadcast %102 : vector<1x32xf32> to vector<16x32xf32>
    %318 = arith.addf %316, %317 : vector<16x32xf32>
    %319 = arith.addf %318, %302 : vector<16x32xf32>
    %cst_113 = arith.constant dense<0.000000e+00> : vector<16xf32>
    %320 = vector.multi_reduction <add>, %319, %cst_113 [1] : vector<16x32xf32> to vector<16xf32>
    %321 = vector.shape_cast %320 : vector<16xf32> to vector<16x1xf32>
    %cst_114 = arith.constant 3.200000e+01 : f32
    %322 = vector.broadcast %cst_114 : f32 to vector<16x1xf32>
    %323 = arith.divf %321, %322 : vector<16x1xf32>
    %324 = vector.broadcast %323 : vector<16x1xf32> to vector<16x32xf32>
    %325 = arith.subf %319, %324 : vector<16x32xf32>
    %326 = arith.mulf %325, %325 : vector<16x32xf32>
    %cst_115 = arith.constant dense<0.000000e+00> : vector<16xf32>
    %327 = vector.multi_reduction <add>, %326, %cst_115 [1] : vector<16x32xf32> to vector<16xf32>
    %328 = vector.shape_cast %327 : vector<16xf32> to vector<16x1xf32>
    %cst_116 = arith.constant 3.200000e+01 : f32
    %329 = vector.broadcast %cst_116 : f32 to vector<16x1xf32>
    %330 = arith.divf %328, %329 : vector<16x1xf32>
    %331 = vector.broadcast %323 : vector<16x1xf32> to vector<16x32xf32>
    %332 = arith.subf %319, %331 : vector<16x32xf32>
    %cst_117 = arith.constant 9.99999996E-13 : f32
    %333 = vector.broadcast %cst_117 : f32 to vector<16x1xf32>
    %334 = arith.addf %330, %333 : vector<16x1xf32>
    %335 = math.rsqrt %334 : vector<16x1xf32>
    %336 = vector.broadcast %335 : vector<16x1xf32> to vector<16x32xf32>
    %337 = arith.mulf %332, %336 : vector<16x32xf32>
    %338 = vector.broadcast %104 : vector<1x32xf32> to vector<16x32xf32>
    %339 = arith.mulf %337, %338 : vector<16x32xf32>
    %340 = vector.broadcast %106 : vector<1x32xf32> to vector<16x32xf32>
    %341 = arith.addf %339, %340 : vector<16x32xf32>
    %c272 = arith.constant 272 : index
    %c0_118 = arith.constant 0 : index
    %342 = vector.load %arg5[%c272, %c0_118] : memref<368x32xbf16, #tpu.memory_space<vmem>>, vector<32x32xbf16>
    %c304 = arith.constant 304 : index
    %c0_119 = arith.constant 0 : index
    %343 = vector.load %arg5[%c304, %c0_119] : memref<368x32xbf16, #tpu.memory_space<vmem>>, vector<64x32xbf16>
    %c32_120 = arith.constant 32 : index
    %c0_121 = arith.constant 0 : index
    %344 = vector.load %arg6[%c32_120, %c0_121] : memref<64x96xbf16, #tpu.memory_space<vmem>>, vector<32x96xbf16>
    %c32_122 = arith.constant 32 : index
    %c0_123 = arith.constant 0 : index
    %345 = vector.load %arg7[%c32_122, %c0_123] : memref<64x64xbf16, #tpu.memory_space<vmem>>, vector<32x64xbf16>
    %c1_124 = arith.constant 1 : index
    %c0_125 = arith.constant 0 : index
    %c0_126 = arith.constant 0 : index
    %346 = vector.load %arg10[%c1_124, %c0_125, %c0_126] : memref<2x1x96xf32, #tpu.memory_space<vmem>>, vector<1x1x96xf32>
    %347 = vector.shape_cast %346 : vector<1x1x96xf32> to vector<1x96xf32>
    %c1_127 = arith.constant 1 : index
    %c0_128 = arith.constant 0 : index
    %c0_129 = arith.constant 0 : index
    %348 = vector.load %arg11[%c1_127, %c0_128, %c0_129] : memref<2x1x64xf32, #tpu.memory_space<vmem>>, vector<1x1x64xf32>
    %349 = vector.shape_cast %348 : vector<1x1x64xf32> to vector<1x64xf32>
    %c11 = arith.constant 11 : index
    %c0_130 = arith.constant 0 : index
    %c0_131 = arith.constant 0 : index
    %350 = vector.load %arg9[%c11, %c0_130, %c0_131] : memref<17x1x32xf32, #tpu.memory_space<vmem>>, vector<1x1x32xf32>
    %351 = vector.shape_cast %350 : vector<1x1x32xf32> to vector<1x32xf32>
    %c12 = arith.constant 12 : index
    %c0_132 = arith.constant 0 : index
    %c0_133 = arith.constant 0 : index
    %352 = vector.load %arg9[%c12, %c0_132, %c0_133] : memref<17x1x32xf32, #tpu.memory_space<vmem>>, vector<1x1x32xf32>
    %353 = vector.shape_cast %352 : vector<1x1x32xf32> to vector<1x32xf32>
    %c13 = arith.constant 13 : index
    %c0_134 = arith.constant 0 : index
    %c0_135 = arith.constant 0 : index
    %354 = vector.load %arg9[%c13, %c0_134, %c0_135] : memref<17x1x32xf32, #tpu.memory_space<vmem>>, vector<1x1x32xf32>
    %355 = vector.shape_cast %354 : vector<1x1x32xf32> to vector<1x32xf32>
    %c14 = arith.constant 14 : index
    %c0_136 = arith.constant 0 : index
    %c0_137 = arith.constant 0 : index
    %356 = vector.load %arg9[%c14, %c0_136, %c0_137] : memref<17x1x32xf32, #tpu.memory_space<vmem>>, vector<1x1x32xf32>
    %357 = vector.shape_cast %356 : vector<1x1x32xf32> to vector<1x32xf32>
    %c15 = arith.constant 15 : index
    %c0_138 = arith.constant 0 : index
    %c0_139 = arith.constant 0 : index
    %358 = vector.load %arg9[%c15, %c0_138, %c0_139] : memref<17x1x32xf32, #tpu.memory_space<vmem>>, vector<1x1x32xf32>
    %359 = vector.shape_cast %358 : vector<1x1x32xf32> to vector<1x32xf32>
    %c16_140 = arith.constant 16 : index
    %c0_141 = arith.constant 0 : index
    %c0_142 = arith.constant 0 : index
    %360 = vector.load %arg9[%c16_140, %c0_141, %c0_142] : memref<17x1x32xf32, #tpu.memory_space<vmem>>, vector<1x1x32xf32>
    %361 = vector.shape_cast %360 : vector<1x1x32xf32> to vector<1x32xf32>
    %362 = arith.truncf %341 : vector<16x32xf32> to vector<16x32xbf16>
    %cst_143 = arith.constant dense<0.000000e+00> : vector<16x96xf32>
    %363 = tpu.matmul %362, %344, %cst_143 {dimension_numbers = #tpu.dot_dimension_numbers<[1], [0], [0], [1], [0, 0, 1, 1], [], []>} : vector<16x32xbf16>, vector<32x96xbf16>, vector<16x96xf32> -> vector<16x96xf32>
    %364 = vector.broadcast %347 : vector<1x96xf32> to vector<16x96xf32>
    %365 = arith.addf %363, %364 : vector<16x96xf32>
    %366 = vector.extract_strided_slice %365 {offsets = [0, 0], sizes = [8, 32], strides = [1, 1]} : vector<16x96xf32> to vector<8x32xf32>
    %367 = vector.extract_strided_slice %365 {offsets = [0, 32], sizes = [8, 32], strides = [1, 1]} : vector<16x96xf32> to vector<8x32xf32>
    %368 = vector.extract_strided_slice %365 {offsets = [0, 64], sizes = [8, 32], strides = [1, 1]} : vector<16x96xf32> to vector<8x32xf32>
    %c0_144 = arith.constant 0 : index
    %c0_145 = arith.constant 0 : index
    %c0_146 = arith.constant 0 : index
    %369 = vector.load %arg4[%c0_144, %c0_145, %c0_146] : memref<2x1x8xf32, #tpu.memory_space<vmem>>, vector<1x1x8xf32>
    %370 = vector.shape_cast %369 : vector<1x1x8xf32> to vector<1x8xf32>
    %371 = vector.extract_strided_slice %366 {offsets = [0, 0], sizes = [8, 8], strides = [1, 1]} : vector<8x32xf32> to vector<8x8xf32>
    %372 = vector.extract_strided_slice %367 {offsets = [0, 0], sizes = [8, 8], strides = [1, 1]} : vector<8x32xf32> to vector<8x8xf32>
    %cst_147 = arith.constant dense<0.000000e+00> : vector<8x8xf32>
    %373 = tpu.matmul %371, %372, %cst_147 {dimension_numbers = #tpu.dot_dimension_numbers<[1], [1], [0], [0], [0, 0, 1, 0], [], []>} : vector<8x8xf32>, vector<8x8xf32>, vector<8x8xf32> -> vector<8x8xf32>
    %cst_148 = arith.constant 0.353553385 : f32
    %374 = vector.broadcast %cst_148 : f32 to vector<8x8xf32>
    %375 = arith.mulf %373, %374 : vector<8x8xf32>
    %376 = vector.broadcast %370 : vector<1x8xf32> to vector<8x8xf32>
    %377 = arith.addf %375, %376 : vector<8x8xf32>
    %cst_149 = arith.constant dense<0xFF800000> : vector<8xf32>
    %378 = vector.multi_reduction <maximumf>, %377, %cst_149 [1] : vector<8x8xf32> to vector<8xf32>
    %379 = vector.shape_cast %378 : vector<8xf32> to vector<8x1xf32>
    %380 = vector.broadcast %379 : vector<8x1xf32> to vector<8x8xf32>
    %381 = arith.subf %377, %380 : vector<8x8xf32>
    %382 = math.exp %381 : vector<8x8xf32>
    %cst_150 = arith.constant dense<0.000000e+00> : vector<8xf32>
    %383 = vector.multi_reduction <add>, %382, %cst_150 [1] : vector<8x8xf32> to vector<8xf32>
    %384 = vector.shape_cast %383 : vector<8xf32> to vector<8x1xf32>
    %385 = tpu.reciprocal %384 {approx = true} : vector<8x1xf32> -> vector<8x1xf32>
    %386 = vector.broadcast %385 : vector<8x1xf32> to vector<8x8xf32>
    %387 = arith.mulf %382, %386 : vector<8x8xf32>
    %388 = vector.extract_strided_slice %368 {offsets = [0, 0], sizes = [8, 8], strides = [1, 1]} : vector<8x32xf32> to vector<8x8xf32>
    %cst_151 = arith.constant dense<0.000000e+00> : vector<8x8xf32>
    %389 = tpu.matmul %387, %388, %cst_151 {dimension_numbers = #tpu.dot_dimension_numbers<[1], [0], [0], [1], [0, 0, 1, 1], [], []>} : vector<8x8xf32>, vector<8x8xf32>, vector<8x8xf32> -> vector<8x8xf32>
    %390 = vector.extract_strided_slice %366 {offsets = [0, 8], sizes = [8, 8], strides = [1, 1]} : vector<8x32xf32> to vector<8x8xf32>
    %391 = vector.extract_strided_slice %367 {offsets = [0, 8], sizes = [8, 8], strides = [1, 1]} : vector<8x32xf32> to vector<8x8xf32>
    %cst_152 = arith.constant dense<0.000000e+00> : vector<8x8xf32>
    %392 = tpu.matmul %390, %391, %cst_152 {dimension_numbers = #tpu.dot_dimension_numbers<[1], [1], [0], [0], [0, 0, 1, 0], [], []>} : vector<8x8xf32>, vector<8x8xf32>, vector<8x8xf32> -> vector<8x8xf32>
    %cst_153 = arith.constant 0.353553385 : f32
    %393 = vector.broadcast %cst_153 : f32 to vector<8x8xf32>
    %394 = arith.mulf %392, %393 : vector<8x8xf32>
    %395 = vector.broadcast %370 : vector<1x8xf32> to vector<8x8xf32>
    %396 = arith.addf %394, %395 : vector<8x8xf32>
    %cst_154 = arith.constant dense<0xFF800000> : vector<8xf32>
    %397 = vector.multi_reduction <maximumf>, %396, %cst_154 [1] : vector<8x8xf32> to vector<8xf32>
    %398 = vector.shape_cast %397 : vector<8xf32> to vector<8x1xf32>
    %399 = vector.broadcast %398 : vector<8x1xf32> to vector<8x8xf32>
    %400 = arith.subf %396, %399 : vector<8x8xf32>
    %401 = math.exp %400 : vector<8x8xf32>
    %cst_155 = arith.constant dense<0.000000e+00> : vector<8xf32>
    %402 = vector.multi_reduction <add>, %401, %cst_155 [1] : vector<8x8xf32> to vector<8xf32>
    %403 = vector.shape_cast %402 : vector<8xf32> to vector<8x1xf32>
    %404 = tpu.reciprocal %403 {approx = true} : vector<8x1xf32> -> vector<8x1xf32>
    %405 = vector.broadcast %404 : vector<8x1xf32> to vector<8x8xf32>
    %406 = arith.mulf %401, %405 : vector<8x8xf32>
    %407 = vector.extract_strided_slice %368 {offsets = [0, 8], sizes = [8, 8], strides = [1, 1]} : vector<8x32xf32> to vector<8x8xf32>
    %cst_156 = arith.constant dense<0.000000e+00> : vector<8x8xf32>
    %408 = tpu.matmul %406, %407, %cst_156 {dimension_numbers = #tpu.dot_dimension_numbers<[1], [0], [0], [1], [0, 0, 1, 1], [], []>} : vector<8x8xf32>, vector<8x8xf32>, vector<8x8xf32> -> vector<8x8xf32>
    %409 = vector.extract_strided_slice %366 {offsets = [0, 16], sizes = [8, 8], strides = [1, 1]} : vector<8x32xf32> to vector<8x8xf32>
    %410 = vector.extract_strided_slice %367 {offsets = [0, 16], sizes = [8, 8], strides = [1, 1]} : vector<8x32xf32> to vector<8x8xf32>
    %cst_157 = arith.constant dense<0.000000e+00> : vector<8x8xf32>
    %411 = tpu.matmul %409, %410, %cst_157 {dimension_numbers = #tpu.dot_dimension_numbers<[1], [1], [0], [0], [0, 0, 1, 0], [], []>} : vector<8x8xf32>, vector<8x8xf32>, vector<8x8xf32> -> vector<8x8xf32>
    %cst_158 = arith.constant 0.353553385 : f32
    %412 = vector.broadcast %cst_158 : f32 to vector<8x8xf32>
    %413 = arith.mulf %411, %412 : vector<8x8xf32>
    %414 = vector.broadcast %370 : vector<1x8xf32> to vector<8x8xf32>
    %415 = arith.addf %413, %414 : vector<8x8xf32>
    %cst_159 = arith.constant dense<0xFF800000> : vector<8xf32>
    %416 = vector.multi_reduction <maximumf>, %415, %cst_159 [1] : vector<8x8xf32> to vector<8xf32>
    %417 = vector.shape_cast %416 : vector<8xf32> to vector<8x1xf32>
    %418 = vector.broadcast %417 : vector<8x1xf32> to vector<8x8xf32>
    %419 = arith.subf %415, %418 : vector<8x8xf32>
    %420 = math.exp %419 : vector<8x8xf32>
    %cst_160 = arith.constant dense<0.000000e+00> : vector<8xf32>
    %421 = vector.multi_reduction <add>, %420, %cst_160 [1] : vector<8x8xf32> to vector<8xf32>
    %422 = vector.shape_cast %421 : vector<8xf32> to vector<8x1xf32>
    %423 = tpu.reciprocal %422 {approx = true} : vector<8x1xf32> -> vector<8x1xf32>
    %424 = vector.broadcast %423 : vector<8x1xf32> to vector<8x8xf32>
    %425 = arith.mulf %420, %424 : vector<8x8xf32>
    %426 = vector.extract_strided_slice %368 {offsets = [0, 16], sizes = [8, 8], strides = [1, 1]} : vector<8x32xf32> to vector<8x8xf32>
    %cst_161 = arith.constant dense<0.000000e+00> : vector<8x8xf32>
    %427 = tpu.matmul %425, %426, %cst_161 {dimension_numbers = #tpu.dot_dimension_numbers<[1], [0], [0], [1], [0, 0, 1, 1], [], []>} : vector<8x8xf32>, vector<8x8xf32>, vector<8x8xf32> -> vector<8x8xf32>
    %428 = vector.extract_strided_slice %366 {offsets = [0, 24], sizes = [8, 8], strides = [1, 1]} : vector<8x32xf32> to vector<8x8xf32>
    %429 = vector.extract_strided_slice %367 {offsets = [0, 24], sizes = [8, 8], strides = [1, 1]} : vector<8x32xf32> to vector<8x8xf32>
    %cst_162 = arith.constant dense<0.000000e+00> : vector<8x8xf32>
    %430 = tpu.matmul %428, %429, %cst_162 {dimension_numbers = #tpu.dot_dimension_numbers<[1], [1], [0], [0], [0, 0, 1, 0], [], []>} : vector<8x8xf32>, vector<8x8xf32>, vector<8x8xf32> -> vector<8x8xf32>
    %cst_163 = arith.constant 0.353553385 : f32
    %431 = vector.broadcast %cst_163 : f32 to vector<8x8xf32>
    %432 = arith.mulf %430, %431 : vector<8x8xf32>
    %433 = vector.broadcast %370 : vector<1x8xf32> to vector<8x8xf32>
    %434 = arith.addf %432, %433 : vector<8x8xf32>
    %cst_164 = arith.constant dense<0xFF800000> : vector<8xf32>
    %435 = vector.multi_reduction <maximumf>, %434, %cst_164 [1] : vector<8x8xf32> to vector<8xf32>
    %436 = vector.shape_cast %435 : vector<8xf32> to vector<8x1xf32>
    %437 = vector.broadcast %436 : vector<8x1xf32> to vector<8x8xf32>
    %438 = arith.subf %434, %437 : vector<8x8xf32>
    %439 = math.exp %438 : vector<8x8xf32>
    %cst_165 = arith.constant dense<0.000000e+00> : vector<8xf32>
    %440 = vector.multi_reduction <add>, %439, %cst_165 [1] : vector<8x8xf32> to vector<8xf32>
    %441 = vector.shape_cast %440 : vector<8xf32> to vector<8x1xf32>
    %442 = tpu.reciprocal %441 {approx = true} : vector<8x1xf32> -> vector<8x1xf32>
    %443 = vector.broadcast %442 : vector<8x1xf32> to vector<8x8xf32>
    %444 = arith.mulf %439, %443 : vector<8x8xf32>
    %445 = vector.extract_strided_slice %368 {offsets = [0, 24], sizes = [8, 8], strides = [1, 1]} : vector<8x32xf32> to vector<8x8xf32>
    %cst_166 = arith.constant dense<0.000000e+00> : vector<8x8xf32>
    %446 = tpu.matmul %444, %445, %cst_166 {dimension_numbers = #tpu.dot_dimension_numbers<[1], [0], [0], [1], [0, 0, 1, 1], [], []>} : vector<8x8xf32>, vector<8x8xf32>, vector<8x8xf32> -> vector<8x8xf32>
    %447 = tpu.concatenate %389, %408, %427, %446 in 1 : vector<8x8xf32>, vector<8x8xf32>, vector<8x8xf32>, vector<8x8xf32> -> vector<8x32xf32>
    %448 = vector.extract_strided_slice %365 {offsets = [8, 0], sizes = [8, 32], strides = [1, 1]} : vector<16x96xf32> to vector<8x32xf32>
    %449 = vector.extract_strided_slice %365 {offsets = [8, 32], sizes = [8, 32], strides = [1, 1]} : vector<16x96xf32> to vector<8x32xf32>
    %450 = vector.extract_strided_slice %365 {offsets = [8, 64], sizes = [8, 32], strides = [1, 1]} : vector<16x96xf32> to vector<8x32xf32>
    %c1_167 = arith.constant 1 : index
    %c0_168 = arith.constant 0 : index
    %c0_169 = arith.constant 0 : index
    %451 = vector.load %arg4[%c1_167, %c0_168, %c0_169] : memref<2x1x8xf32, #tpu.memory_space<vmem>>, vector<1x1x8xf32>
    %452 = vector.shape_cast %451 : vector<1x1x8xf32> to vector<1x8xf32>
    %453 = vector.extract_strided_slice %448 {offsets = [0, 0], sizes = [8, 8], strides = [1, 1]} : vector<8x32xf32> to vector<8x8xf32>
    %454 = vector.extract_strided_slice %449 {offsets = [0, 0], sizes = [8, 8], strides = [1, 1]} : vector<8x32xf32> to vector<8x8xf32>
    %cst_170 = arith.constant dense<0.000000e+00> : vector<8x8xf32>
    %455 = tpu.matmul %453, %454, %cst_170 {dimension_numbers = #tpu.dot_dimension_numbers<[1], [1], [0], [0], [0, 0, 1, 0], [], []>} : vector<8x8xf32>, vector<8x8xf32>, vector<8x8xf32> -> vector<8x8xf32>
    %cst_171 = arith.constant 0.353553385 : f32
    %456 = vector.broadcast %cst_171 : f32 to vector<8x8xf32>
    %457 = arith.mulf %455, %456 : vector<8x8xf32>
    %458 = vector.broadcast %452 : vector<1x8xf32> to vector<8x8xf32>
    %459 = arith.addf %457, %458 : vector<8x8xf32>
    %cst_172 = arith.constant dense<0xFF800000> : vector<8xf32>
    %460 = vector.multi_reduction <maximumf>, %459, %cst_172 [1] : vector<8x8xf32> to vector<8xf32>
    %461 = vector.shape_cast %460 : vector<8xf32> to vector<8x1xf32>
    %462 = vector.broadcast %461 : vector<8x1xf32> to vector<8x8xf32>
    %463 = arith.subf %459, %462 : vector<8x8xf32>
    %464 = math.exp %463 : vector<8x8xf32>
    %cst_173 = arith.constant dense<0.000000e+00> : vector<8xf32>
    %465 = vector.multi_reduction <add>, %464, %cst_173 [1] : vector<8x8xf32> to vector<8xf32>
    %466 = vector.shape_cast %465 : vector<8xf32> to vector<8x1xf32>
    %467 = tpu.reciprocal %466 {approx = true} : vector<8x1xf32> -> vector<8x1xf32>
    %468 = vector.broadcast %467 : vector<8x1xf32> to vector<8x8xf32>
    %469 = arith.mulf %464, %468 : vector<8x8xf32>
    %470 = vector.extract_strided_slice %450 {offsets = [0, 0], sizes = [8, 8], strides = [1, 1]} : vector<8x32xf32> to vector<8x8xf32>
    %cst_174 = arith.constant dense<0.000000e+00> : vector<8x8xf32>
    %471 = tpu.matmul %469, %470, %cst_174 {dimension_numbers = #tpu.dot_dimension_numbers<[1], [0], [0], [1], [0, 0, 1, 1], [], []>} : vector<8x8xf32>, vector<8x8xf32>, vector<8x8xf32> -> vector<8x8xf32>
    %472 = vector.extract_strided_slice %448 {offsets = [0, 8], sizes = [8, 8], strides = [1, 1]} : vector<8x32xf32> to vector<8x8xf32>
    %473 = vector.extract_strided_slice %449 {offsets = [0, 8], sizes = [8, 8], strides = [1, 1]} : vector<8x32xf32> to vector<8x8xf32>
    %cst_175 = arith.constant dense<0.000000e+00> : vector<8x8xf32>
    %474 = tpu.matmul %472, %473, %cst_175 {dimension_numbers = #tpu.dot_dimension_numbers<[1], [1], [0], [0], [0, 0, 1, 0], [], []>} : vector<8x8xf32>, vector<8x8xf32>, vector<8x8xf32> -> vector<8x8xf32>
    %cst_176 = arith.constant 0.353553385 : f32
    %475 = vector.broadcast %cst_176 : f32 to vector<8x8xf32>
    %476 = arith.mulf %474, %475 : vector<8x8xf32>
    %477 = vector.broadcast %452 : vector<1x8xf32> to vector<8x8xf32>
    %478 = arith.addf %476, %477 : vector<8x8xf32>
    %cst_177 = arith.constant dense<0xFF800000> : vector<8xf32>
    %479 = vector.multi_reduction <maximumf>, %478, %cst_177 [1] : vector<8x8xf32> to vector<8xf32>
    %480 = vector.shape_cast %479 : vector<8xf32> to vector<8x1xf32>
    %481 = vector.broadcast %480 : vector<8x1xf32> to vector<8x8xf32>
    %482 = arith.subf %478, %481 : vector<8x8xf32>
    %483 = math.exp %482 : vector<8x8xf32>
    %cst_178 = arith.constant dense<0.000000e+00> : vector<8xf32>
    %484 = vector.multi_reduction <add>, %483, %cst_178 [1] : vector<8x8xf32> to vector<8xf32>
    %485 = vector.shape_cast %484 : vector<8xf32> to vector<8x1xf32>
    %486 = tpu.reciprocal %485 {approx = true} : vector<8x1xf32> -> vector<8x1xf32>
    %487 = vector.broadcast %486 : vector<8x1xf32> to vector<8x8xf32>
    %488 = arith.mulf %483, %487 : vector<8x8xf32>
    %489 = vector.extract_strided_slice %450 {offsets = [0, 8], sizes = [8, 8], strides = [1, 1]} : vector<8x32xf32> to vector<8x8xf32>
    %cst_179 = arith.constant dense<0.000000e+00> : vector<8x8xf32>
    %490 = tpu.matmul %488, %489, %cst_179 {dimension_numbers = #tpu.dot_dimension_numbers<[1], [0], [0], [1], [0, 0, 1, 1], [], []>} : vector<8x8xf32>, vector<8x8xf32>, vector<8x8xf32> -> vector<8x8xf32>
    %491 = vector.extract_strided_slice %448 {offsets = [0, 16], sizes = [8, 8], strides = [1, 1]} : vector<8x32xf32> to vector<8x8xf32>
    %492 = vector.extract_strided_slice %449 {offsets = [0, 16], sizes = [8, 8], strides = [1, 1]} : vector<8x32xf32> to vector<8x8xf32>
    %cst_180 = arith.constant dense<0.000000e+00> : vector<8x8xf32>
    %493 = tpu.matmul %491, %492, %cst_180 {dimension_numbers = #tpu.dot_dimension_numbers<[1], [1], [0], [0], [0, 0, 1, 0], [], []>} : vector<8x8xf32>, vector<8x8xf32>, vector<8x8xf32> -> vector<8x8xf32>
    %cst_181 = arith.constant 0.353553385 : f32
    %494 = vector.broadcast %cst_181 : f32 to vector<8x8xf32>
    %495 = arith.mulf %493, %494 : vector<8x8xf32>
    %496 = vector.broadcast %452 : vector<1x8xf32> to vector<8x8xf32>
    %497 = arith.addf %495, %496 : vector<8x8xf32>
    %cst_182 = arith.constant dense<0xFF800000> : vector<8xf32>
    %498 = vector.multi_reduction <maximumf>, %497, %cst_182 [1] : vector<8x8xf32> to vector<8xf32>
    %499 = vector.shape_cast %498 : vector<8xf32> to vector<8x1xf32>
    %500 = vector.broadcast %499 : vector<8x1xf32> to vector<8x8xf32>
    %501 = arith.subf %497, %500 : vector<8x8xf32>
    %502 = math.exp %501 : vector<8x8xf32>
    %cst_183 = arith.constant dense<0.000000e+00> : vector<8xf32>
    %503 = vector.multi_reduction <add>, %502, %cst_183 [1] : vector<8x8xf32> to vector<8xf32>
    %504 = vector.shape_cast %503 : vector<8xf32> to vector<8x1xf32>
    %505 = tpu.reciprocal %504 {approx = true} : vector<8x1xf32> -> vector<8x1xf32>
    %506 = vector.broadcast %505 : vector<8x1xf32> to vector<8x8xf32>
    %507 = arith.mulf %502, %506 : vector<8x8xf32>
    %508 = vector.extract_strided_slice %450 {offsets = [0, 16], sizes = [8, 8], strides = [1, 1]} : vector<8x32xf32> to vector<8x8xf32>
    %cst_184 = arith.constant dense<0.000000e+00> : vector<8x8xf32>
    %509 = tpu.matmul %507, %508, %cst_184 {dimension_numbers = #tpu.dot_dimension_numbers<[1], [0], [0], [1], [0, 0, 1, 1], [], []>} : vector<8x8xf32>, vector<8x8xf32>, vector<8x8xf32> -> vector<8x8xf32>
    %510 = vector.extract_strided_slice %448 {offsets = [0, 24], sizes = [8, 8], strides = [1, 1]} : vector<8x32xf32> to vector<8x8xf32>
    %511 = vector.extract_strided_slice %449 {offsets = [0, 24], sizes = [8, 8], strides = [1, 1]} : vector<8x32xf32> to vector<8x8xf32>
    %cst_185 = arith.constant dense<0.000000e+00> : vector<8x8xf32>
    %512 = tpu.matmul %510, %511, %cst_185 {dimension_numbers = #tpu.dot_dimension_numbers<[1], [1], [0], [0], [0, 0, 1, 0], [], []>} : vector<8x8xf32>, vector<8x8xf32>, vector<8x8xf32> -> vector<8x8xf32>
    %cst_186 = arith.constant 0.353553385 : f32
    %513 = vector.broadcast %cst_186 : f32 to vector<8x8xf32>
    %514 = arith.mulf %512, %513 : vector<8x8xf32>
    %515 = vector.broadcast %452 : vector<1x8xf32> to vector<8x8xf32>
    %516 = arith.addf %514, %515 : vector<8x8xf32>
    %cst_187 = arith.constant dense<0xFF800000> : vector<8xf32>
    %517 = vector.multi_reduction <maximumf>, %516, %cst_187 [1] : vector<8x8xf32> to vector<8xf32>
    %518 = vector.shape_cast %517 : vector<8xf32> to vector<8x1xf32>
    %519 = vector.broadcast %518 : vector<8x1xf32> to vector<8x8xf32>
    %520 = arith.subf %516, %519 : vector<8x8xf32>
    %521 = math.exp %520 : vector<8x8xf32>
    %cst_188 = arith.constant dense<0.000000e+00> : vector<8xf32>
    %522 = vector.multi_reduction <add>, %521, %cst_188 [1] : vector<8x8xf32> to vector<8xf32>
    %523 = vector.shape_cast %522 : vector<8xf32> to vector<8x1xf32>
    %524 = tpu.reciprocal %523 {approx = true} : vector<8x1xf32> -> vector<8x1xf32>
    %525 = vector.broadcast %524 : vector<8x1xf32> to vector<8x8xf32>
    %526 = arith.mulf %521, %525 : vector<8x8xf32>
    %527 = vector.extract_strided_slice %450 {offsets = [0, 24], sizes = [8, 8], strides = [1, 1]} : vector<8x32xf32> to vector<8x8xf32>
    %cst_189 = arith.constant dense<0.000000e+00> : vector<8x8xf32>
    %528 = tpu.matmul %526, %527, %cst_189 {dimension_numbers = #tpu.dot_dimension_numbers<[1], [0], [0], [1], [0, 0, 1, 1], [], []>} : vector<8x8xf32>, vector<8x8xf32>, vector<8x8xf32> -> vector<8x8xf32>
    %529 = tpu.concatenate %471, %490, %509, %528 in 1 : vector<8x8xf32>, vector<8x8xf32>, vector<8x8xf32>, vector<8x8xf32> -> vector<8x32xf32>
    %530 = tpu.concatenate %447, %529 in 0 : vector<8x32xf32>, vector<8x32xf32> -> vector<16x32xf32>
    %531 = arith.truncf %530 : vector<16x32xf32> to vector<16x32xbf16>
    %cst_190 = arith.constant dense<0.000000e+00> : vector<16x32xf32>
    %532 = tpu.matmul %531, %342, %cst_190 {dimension_numbers = #tpu.dot_dimension_numbers<[1], [0], [0], [1], [0, 0, 1, 1], [], []>} : vector<16x32xbf16>, vector<32x32xbf16>, vector<16x32xf32> -> vector<16x32xf32>
    %533 = vector.broadcast %351 : vector<1x32xf32> to vector<16x32xf32>
    %534 = arith.addf %532, %533 : vector<16x32xf32>
    %535 = arith.addf %534, %341 : vector<16x32xf32>
    %cst_191 = arith.constant dense<0.000000e+00> : vector<16xf32>
    %536 = vector.multi_reduction <add>, %535, %cst_191 [1] : vector<16x32xf32> to vector<16xf32>
    %537 = vector.shape_cast %536 : vector<16xf32> to vector<16x1xf32>
    %cst_192 = arith.constant 3.200000e+01 : f32
    %538 = vector.broadcast %cst_192 : f32 to vector<16x1xf32>
    %539 = arith.divf %537, %538 : vector<16x1xf32>
    %540 = vector.broadcast %539 : vector<16x1xf32> to vector<16x32xf32>
    %541 = arith.subf %535, %540 : vector<16x32xf32>
    %542 = arith.mulf %541, %541 : vector<16x32xf32>
    %cst_193 = arith.constant dense<0.000000e+00> : vector<16xf32>
    %543 = vector.multi_reduction <add>, %542, %cst_193 [1] : vector<16x32xf32> to vector<16xf32>
    %544 = vector.shape_cast %543 : vector<16xf32> to vector<16x1xf32>
    %cst_194 = arith.constant 3.200000e+01 : f32
    %545 = vector.broadcast %cst_194 : f32 to vector<16x1xf32>
    %546 = arith.divf %544, %545 : vector<16x1xf32>
    %547 = vector.broadcast %539 : vector<16x1xf32> to vector<16x32xf32>
    %548 = arith.subf %535, %547 : vector<16x32xf32>
    %cst_195 = arith.constant 9.99999996E-13 : f32
    %549 = vector.broadcast %cst_195 : f32 to vector<16x1xf32>
    %550 = arith.addf %546, %549 : vector<16x1xf32>
    %551 = math.rsqrt %550 : vector<16x1xf32>
    %552 = vector.broadcast %551 : vector<16x1xf32> to vector<16x32xf32>
    %553 = arith.mulf %548, %552 : vector<16x32xf32>
    %554 = vector.broadcast %353 : vector<1x32xf32> to vector<16x32xf32>
    %555 = arith.mulf %553, %554 : vector<16x32xf32>
    %556 = vector.broadcast %355 : vector<1x32xf32> to vector<16x32xf32>
    %557 = arith.addf %555, %556 : vector<16x32xf32>
    %558 = arith.truncf %557 : vector<16x32xf32> to vector<16x32xbf16>
    %cst_196 = arith.constant dense<0.000000e+00> : vector<16x64xf32>
    %559 = tpu.matmul %558, %345, %cst_196 {dimension_numbers = #tpu.dot_dimension_numbers<[1], [0], [0], [1], [0, 0, 1, 1], [], []>} : vector<16x32xbf16>, vector<32x64xbf16>, vector<16x64xf32> -> vector<16x64xf32>
    %560 = vector.broadcast %349 : vector<1x64xf32> to vector<16x64xf32>
    %561 = arith.addf %559, %560 : vector<16x64xf32>
    %cst_197 = arith.constant 5.000000e-01 : f32
    %562 = vector.broadcast %cst_197 : f32 to vector<16x64xf32>
    %563 = arith.mulf %561, %562 : vector<16x64xf32>
    %cst_198 = arith.constant 0.707106769 : f32
    %564 = vector.broadcast %cst_198 : f32 to vector<16x64xf32>
    %565 = arith.mulf %561, %564 : vector<16x64xf32>
    %566 = math.erf %565 : vector<16x64xf32>
    %cst_199 = arith.constant 1.000000e+00 : f32
    %567 = vector.broadcast %cst_199 : f32 to vector<16x64xf32>
    %568 = arith.addf %567, %566 : vector<16x64xf32>
    %569 = arith.mulf %563, %568 : vector<16x64xf32>
    %570 = arith.truncf %569 : vector<16x64xf32> to vector<16x64xbf16>
    %cst_200 = arith.constant dense<0.000000e+00> : vector<16x32xf32>
    %571 = tpu.matmul %570, %343, %cst_200 {dimension_numbers = #tpu.dot_dimension_numbers<[1], [0], [0], [1], [0, 0, 1, 1], [], []>} : vector<16x64xbf16>, vector<64x32xbf16>, vector<16x32xf32> -> vector<16x32xf32>
    %572 = vector.broadcast %357 : vector<1x32xf32> to vector<16x32xf32>
    %573 = arith.addf %571, %572 : vector<16x32xf32>
    %574 = arith.addf %573, %557 : vector<16x32xf32>
    %cst_201 = arith.constant dense<0.000000e+00> : vector<16xf32>
    %575 = vector.multi_reduction <add>, %574, %cst_201 [1] : vector<16x32xf32> to vector<16xf32>
    %576 = vector.shape_cast %575 : vector<16xf32> to vector<16x1xf32>
    %cst_202 = arith.constant 3.200000e+01 : f32
    %577 = vector.broadcast %cst_202 : f32 to vector<16x1xf32>
    %578 = arith.divf %576, %577 : vector<16x1xf32>
    %579 = vector.broadcast %578 : vector<16x1xf32> to vector<16x32xf32>
    %580 = arith.subf %574, %579 : vector<16x32xf32>
    %581 = arith.mulf %580, %580 : vector<16x32xf32>
    %cst_203 = arith.constant dense<0.000000e+00> : vector<16xf32>
    %582 = vector.multi_reduction <add>, %581, %cst_203 [1] : vector<16x32xf32> to vector<16xf32>
    %583 = vector.shape_cast %582 : vector<16xf32> to vector<16x1xf32>
    %cst_204 = arith.constant 3.200000e+01 : f32
    %584 = vector.broadcast %cst_204 : f32 to vector<16x1xf32>
    %585 = arith.divf %583, %584 : vector<16x1xf32>
    %586 = vector.broadcast %578 : vector<16x1xf32> to vector<16x32xf32>
    %587 = arith.subf %574, %586 : vector<16x32xf32>
    %cst_205 = arith.constant 9.99999996E-13 : f32
    %588 = vector.broadcast %cst_205 : f32 to vector<16x1xf32>
    %589 = arith.addf %585, %588 : vector<16x1xf32>
    %590 = math.rsqrt %589 : vector<16x1xf32>
    %591 = vector.broadcast %590 : vector<16x1xf32> to vector<16x32xf32>
    %592 = arith.mulf %587, %591 : vector<16x32xf32>
    %593 = vector.broadcast %359 : vector<1x32xf32> to vector<16x32xf32>
    %594 = arith.mulf %592, %593 : vector<16x32xf32>
    %595 = vector.broadcast %361 : vector<1x32xf32> to vector<16x32xf32>
    %596 = arith.addf %594, %595 : vector<16x32xf32>
    %597 = vector.extract_strided_slice %596 {offsets = [0, 0], sizes = [1, 32], strides = [1, 1]} : vector<16x32xf32> to vector<1x32xf32>
    %598 = vector.extract_strided_slice %596 {offsets = [8, 0], sizes = [1, 32], strides = [1, 1]} : vector<16x32xf32> to vector<1x32xf32>
    %599 = tpu.concatenate %597, %598 in 0 : vector<1x32xf32>, vector<1x32xf32> -> vector<2x32xf32>
    %600 = arith.truncf %599 : vector<2x32xf32> to vector<2x32xbf16>
    %c0_206 = arith.constant 0 : index
    %c0_207 = arith.constant 0 : index
    %601 = vector.load %arg8[%c0_206, %c0_207] : memref<32x128xbf16, #tpu.memory_space<vmem>>, vector<32x128xbf16>
    %cst_208 = arith.constant dense<0.000000e+00> : vector<2x128xf32>
    %602 = tpu.matmul %600, %601, %cst_208 {dimension_numbers = #tpu.dot_dimension_numbers<[1], [0], [0], [1], [0, 0, 1, 1], [], []>} : vector<2x32xbf16>, vector<32x128xbf16>, vector<2x128xf32> -> vector<2x128xf32>
    %c0_209 = arith.constant 0 : index
    %c0_210 = arith.constant 0 : index
    %603 = vector.load %arg12[%c0_209, %c0_210] : memref<1x128xf32, #tpu.memory_space<vmem>>, vector<1x128xf32>
    %604 = vector.broadcast %603 : vector<1x128xf32> to vector<2x128xf32>
    %605 = arith.addf %602, %604 : vector<2x128xf32>
    %c0_211 = arith.constant 0 : index
    %c0_212 = arith.constant 0 : index
    %606 = vector.load %arg13[%c0_211, %c0_212] : memref<2x128xf32, #tpu.memory_space<vmem>>, vector<2x128xf32>
    tpu.vector_store %arg13[%c0_211, %c0_212], %605 {strides = array<i32>} : memref<2x128xf32, #tpu.memory_space<vmem>>, vector<2x128xf32>,
    return
  }
}

</mosaic_0001>

<bundles_post_ra>
// kernel: bert_model_forward.1
= control target key start
LH: loop header
LB: loop body
LE: loop exit
PB: predicated region body
PF: predicated region fallthrough
CT: control target
= control target key end

     0   :  { %vm110_vm0 = vcmask 130048   ;;  %v5046_v5 = vmov 0.0   ;;  %vm5047_vm1 = vmmov 0   ;;  %s5824_s0 = inlined_call_operand.vmem [shape: bf16[16,32], index: 0, kind: input, shape index: {}]   ;;  %s5825_s1 = inlined_call_operand.vmem [shape: bf16[16,48], index: 1, kind: input, shape index: {}]   ;;  %s5826_s2 = inlined_call_operand.vmem [shape: f32[16,32], index: 2, kind: input, shape index: {}]   ;;  %s5827_s3 = inlined_call_operand.vmem [shape: bf16[128,16], index: 3, kind: input, shape index: {}]   ;;  %s5828_s4 = inlined_call_operand.vmem [shape: f32[2,1,8], index: 4, kind: input, shape index: {}]   ;;  %s5829_s5 = inlined_call_operand.vmem [shape: bf16[368,32], index: 5, kind: input, shape index: {}]   ;;  %s5830_s6 = inlined_call_operand.vmem [shape: bf16[64,96], index: 6, kind: input, shape index: {}]   ;;  %s5831_s7 = inlined_call_operand.vmem [shape: bf16[64,64], index: 7, kind: input, shape index: {}]   ;;  %s5832_s8 = inlined_call_operand.vmem [shape: bf16[32,128], index: 8, kind: input, shape index: {}]   ;;  %s5833_s9 = inlined_call_operand.vmem [shape: f32[17,1,32], index: 9, kind: input, shape index: {}]   ;;  %s5834_s10 = inlined_call_operand.vmem [shape: f32[2,1,96], index: 10, kind: input, shape index: {}]   ;;  %s5835_s11 = inlined_call_operand.vmem [shape: f32[2,1,64], index: 11, kind: input, shape index: {}]   ;;  %s5836_s12 = inlined_call_operand.vmem [shape: f32[1,128], index: 12, kind: input, shape index: {}]   ;;  %s5837_s13 = inlined_call_operand.hbm [shape: f32[2,128], index: 13, kind: output, shape index: {}]  }
   0x1   :  { %v4886_v0 = vld [vmem:[%s5829_s5] sm:$0xff]   ;;  %v4887_v1 = vld [vmem:[%s5829_s5 + $0x8] sm:$0xff]   ;;  %v4890_v4 = vld [vmem:[%s5827_s3 + $0x10] sm:$0xff]  }
   0x2   :  { %4536 = vmatprep.subr.bf16.mxu0 %v4886_v0  ;;  %v4888_v2 = vld [vmem:[%s5827_s3] sm:$0xff]   ;;  %4554 = vmatprep.subr.bf16.mxu1 %v4887_v1  ;;  %v4889_v3 = vld [vmem:[%s5827_s3 + $0x8] sm:$0xff]   ;;  %v4892_v6 = vld [vmem:[%s5829_s5 + $0x10] sm:$0xff]  }
   0x3   :  { %4537 = vmatpush3.bf16.msra.mxu0 %v4886_v0  ;;  %4555 = vmatpush3.bf16.msra.mxu1 %v4887_v1  ;;  %v4895_v7 = vld [vmem:[%s5829_s5 + $0x18] sm:$0xff]   ;;  %v4893_v9 = vld [vmem:[%s5827_s3 + $0x20] sm:$0xff]   ;;  %v4894_v11 = vld [vmem:[%s5827_s3 + $0x28] sm:$0xff]  }
   0x4   :  { %4538 = vmatprep.mubr.msk.bf16.mxu0 %vm110_vm0, %v4888_v2  ;;  %4556 = vmatprep.mubr.msk.bf16.mxu1 %vm110_vm0, %v4888_v2  ;;  %v4891_v8 = vld [vmem:[%s5827_s3 + $0x18] sm:$0xff]   ;;  %v4898_v10 = vld [vmem:[%s5829_s5 + $0x20] sm:$0xff]   ;;  %v4896_v12 = vld [vmem:[%s5827_s3 + $0x30] sm:$0xff]  }
   0x5   :  { %4572 = vmatprep.subr.bf16.mxu0 %v5046_v5  ;;  %4582 = vmatprep.subr.bf16.mxu1 %v5046_v5  ;;  %v4897_v13 = vld [vmem:[%s5827_s3 + $0x38] sm:$0xff]  }
   0x6   :  { %4539 = vmatmul.mubr.msk.bf16.vlgmr.msra.gmra.mrb[0].mxu0 %vm110_vm0, %v4889_v3  ;;  %4557 = vmatmul.mubr.msk.bf16.vlgmr.msra.gmra.mrb[0].mxu1 %vm110_vm0, %v4889_v3 }
   0x7   :  { %4542 = vmatprep.mubr.msk.bf16.mxu0 %vm110_vm0, %v4890_v4  ;;  %4560 = vmatprep.mubr.msk.bf16.mxu1 %vm110_vm0, %v4890_v4 }
   0x8   :  { %4573 = vmatpush3.bf16.msra.mxu0 %v4892_v6 }
   0x9   :  { %4574 = vmatprep.subr.bf16.mxu0 %v5046_v5 }
   0xc   :  { %4575 = vmatpush3.bf16.msra.mxu0 %v4895_v7 }
   0xd   :  { %4576 = vmatprep.subr.bf16.mxu0 %v5046_v5 }
   0xe   :  { %4543 = vmatmul.mubr.msk.bf16.gmra.mrb[4].mxu0 %vm110_vm0, %v4891_v8  ;;  %4561 = vmatmul.mubr.msk.bf16.gmra.mrb[4].mxu1 %vm110_vm0, %v4891_v8 }
   0xf   :  { %4546 = vmatprep.mubr.msk.bf16.mxu0 %vm110_vm0, %v4893_v9  ;;  %4564 = vmatprep.mubr.msk.bf16.mxu1 %vm110_vm0, %v4893_v9 }
  0x10   :  { %4577 = vmatpush3.bf16.msra.mxu0 %v4898_v10 }
  0x11   :  { %4598 = vmatprep.subr.bf16.mxu0 %v5046_v5 }
  0x16   :  { %4547 = vmatmul.mubr.msk.bf16.gmra.mrb[8].mxu0 %vm110_vm0, %v4894_v11  ;;  %4565 = vmatmul.mubr.msk.bf16.gmra.mrb[8].mxu1 %vm110_vm0, %v4894_v11 }
  0x17   :  { %4550 = vmatprep.mubr.msk.bf16.mxu0 %vm110_vm0, %v4896_v12  ;;  %4568 = vmatprep.mubr.msk.bf16.mxu1 %vm110_vm0, %v4896_v12 }
  0x1e   :  { %4551 = vmatmul.mubr.msk.bf16.gmra.mrb[12].mxu0 %vm110_vm0, %v4897_v13  ;;  %4569 = vmatmul.mubr.msk.bf16.gmra.mrb[12].mxu1 %vm110_vm0, %v4897_v13 }
  0x1f   :  { %4578 = vmatprep.mubr.msk.bf16.mxu0 %vm5047_vm1, %v5046_v5  ;;  %4594 = vmatprep.mubr.msk.bf16.mxu1 %vm5047_vm1, %v5046_v5 }
  0x20   :  { %18 = vsyncpa [#allocation3], 0  ;;  %v4899_v14 = vld [vmem:[%s5825_s1] sm:$0xff]   ;;  %vm407_vm2 = vcmask 392192   ;;  %v4900_v15 = vld [vmem:[%s5829_s5 + $0x28] sm:$0xff]   ;;  %s5048_s16 = smov 32  }
  0x21   :  { %4583 = vmatpush3.bf16.msra.mxu1 %v4900_v15  ;;  %v4901_v16 = vld [vmem:[%s5829_s5 + $0x30] sm:$0xff]   ;;  %v4902_v17 = vld [vmem:[%s5829_s5 + $0x38] sm:$0xff]   ;;  %v4903_v18 = vld [vmem:[%s5829_s5 + $0x40] sm:$0xff]   ;;  %s5049_s17 = smov 64   ;;  %vm467_vm3 = vcmask 261120   ;;  %vm471_vm4 = vcmask 523264  }
  0x22   :  { %4584 = vmatprep.subr.bf16.mxu1 %v5046_v5  ;;  %v4904_v19 = vld [vmem:[%s5829_s5 + $0x48] sm:$0xff]   ;;  %v4906_v10 = vld [vmem:[%s5829_s5 + $0x50] sm:$0xff]   ;;  %v4279_v13 = vld [vmem:[%s5833_s9 + $0x1] ss:$0 sm:$0xff]  ;;  %vm530_vm5 = vcmask 785408   ;;  %s5050_s15 = smov 96  }
  0x23   :  { %s5052_s18 = smov 80   ;;  %vm726_vm6 = vcmask 64512   ;;  %s5053_s20 = smov 120   ;;  %vm1411_vm7 = vcmask 195584   ;;  %vm4167_vm8 = vcmask 1040384  }
  0x24   :  { %s5054_s21 = smov 112   ;;  %s5056_s22 = smov 72  }
  0x25   :  { %4585 = vmatpush3.bf16.msra.mxu1 %v4901_v16  ;;  %s5057_s1 = smov 56   ;;  %s5058_s24 = smov 40  }
  0x26   :  { %4579 = vmatmul.mubr.msk.bf16.vlgmr.msra.gmra.mrb[16].mxu0 %vm407_vm2, %v4899_v14  ;;  %4586 = vmatprep.subr.bf16.mxu1 %v5046_v5  ;;  %s5059_s25 = smov 48   ;;  %s5060_s30 = smov 8  }
  0x27   :  { %4602 = vmatprep.mubr.msk.bf16.mxu0 %vm5047_vm1, %v5046_v5  ;;  %s5061_s14 = smov 16   ;;  %s5062_s3 = smov 24  }
  0x29   :  { %4587 = vmatpush3.bf16.msra.mxu1 %v4902_v17 }
  0x2a   :  { %4588 = vmatprep.subr.bf16.mxu1 %v5046_v5 }
  0x2d   :  { %4589 = vmatpush3.bf16.msra.mxu1 %v4903_v18 }
  0x2e   :  { %4590 = vmatprep.subr.bf16.mxu1 %v5046_v5 }
  0x31   :  { %4591 = vmatpush3.bf16.msra.mxu1 %v4904_v19 }
  0x32   :  { %4592 = vmatprep.subr.bf16.mxu1 %v5046_v5 }
  0x35   :  { %4593 = vmatpush3.bf16.msra.mxu1 %v4906_v10 }
  0x36   :  { %4606 = vmatprep.subr.mxu1 %v5046_v5 }
  0xd9   :  { %v4540_v20 = vpop.f32.mrb[0].mxu0  ;;  %v4558_v21 = vpop.f32.mrb[0].mxu1 }
  0xda   :  { %v169_v22 = vpop.f32.mrb[1].mxu0  ;;  %v272_v23 = vpop.f32.mrb[1].mxu1 }
  0xdb   :  { %v4541_v24 = vpop.f32.mrb[2].mxu0  ;;  %v4559_v25 = vpop.f32.mrb[2].mxu1 }
  0xdc   :  { %v172_v26 = vpop.f32.mrb[3].mxu0  ;;  %v336_v27 = vadd.f32 %v4559_v25, %v4540_v20  ;;  %v274_v29 = vpop.f32.mrb[3].mxu1  ;;  %v4277_v20 = vld [vmem:[%s5833_s9] ss:$0 sm:$0xff] }
  0xdd   :  { %v335_v28 = vadd.f32 %v4558_v21, %v172_v26  ;;  %v334_v30 = vadd.f32 %v274_v29, %v169_v22 }
  0xdf   :  { %v341_v31 = vmax.f32 %v334_v30, %v335_v28  ;;  %v4905_v28 = vld [vmem:[%s5824_s0] sm:$0xff]   ;;  %s5055_s0 = smov 104  }
  0xe1   :  { %v4544_v32 = vpop.f32.mrb[4].mxu0  ;;  %v4562_v33 = vpop.f32.mrb[4].mxu1  ;;  %v342_v35 = vmax.f32 %v341_v31, %v336_v27 }
  0xe2   :  { %v185_v34 = vpop.f32.mrb[5].mxu0  ;;  %v287_v36 = vpop.f32.mrb[5].mxu1 }
  0xe3   :  { %v4545_v37 = vpop.f32.mrb[6].mxu0  ;;  %v337_v38 = vadd.f32 %v4541_v24, %v287_v36  ;;  %v4563_v39 = vpop.f32.mrb[6].mxu1 }
  0xe4   :  { %v188_v40 = vpop.f32.mrb[7].mxu0  ;;  %v340_v41 = vadd.f32 %v4563_v39, %v4544_v32  ;;  %v290_v43 = vpop.f32.mrb[7].mxu1  ;;  %v575_v39 = vld [vmem:[%s5826_s2 + $0x8] sm:$0xff] }
  0xe5   :  { %v339_v42 = vadd.f32 %v4562_v33, %v188_v40  ;;  %v343_v44 = vmax.f32 %v342_v35, %v337_v38  ;;  %v338_v45 = vadd.f32 %v290_v43, %v185_v34  ;;  %v4287_v33 = vld [vmem:[%s5833_s9 + $0x2] ss:$0 sm:$0xff] }
  0xe6   :  { %v574_v35 = vld [vmem:[%s5826_s2] sm:$0xff] }
  0xe7   :  { %v344_v46 = vmax.f32 %v343_v44, %v338_v45 }
  0xe9   :  { %v4548_v47 = vpop.f32.mrb[8].mxu0  ;;  %v345_v48 = vmax.f32 %v344_v46, %v339_v42  ;;  %v4566_v49 = vpop.f32.mrb[8].mxu1 }
  0xea   :  { %v200_v50 = vpop.f32.mrb[9].mxu0  ;;  %v303_v51 = vpop.f32.mrb[9].mxu1 }
  0xeb   :  { %v4549_v52 = vpop.f32.mrb[10].mxu0  ;;  %v4567_v53 = vpop.f32.mrb[10].mxu1  ;;  %v346_v55 = vmax.f32 %v345_v48, %v340_v41 }
  0xec   :  { %v203_v54 = vpop.f32.mrb[11].mxu0  ;;  %v349_v56 = vadd.f32 %v4567_v53, %v4548_v47  ;;  %v305_v58 = vpop.f32.mrb[11].mxu1 }
  0xed   :  { %v348_v57 = vadd.f32 %v4566_v49, %v203_v54  ;;  %v347_v59 = vadd.f32 %v305_v58, %v200_v50  ;;  %v366_v25 = vadd.f32 %v4277_v20, %v346_v55 }
  0xef   :  { %v354_v60 = vmax.f32 %v347_v59, %v348_v57  ;;  %v4908_v57 = vld [vmem:[%s5830_s6 + $0x8] sm:$0xff]  }
  0xf1   :  { %v4552_v61 = vpop.f32.mrb[12].mxu0  ;;  %v4570_v62 = vpop.f32.mrb[12].mxu1  ;;  %v355_v0 = vmax.f32 %v354_v60, %v349_v56  ;;  %v4907_v56 = vld [vmem:[%s5830_s6] sm:$0xff]  }
  0xf2   :  { %v216_v63 = vpop.f32.mrb[13].mxu0  ;;  %v318_v1 = vpop.f32.mrb[13].mxu1  ;;  %4599 = vmatpush3.bf16.msra.mxu0 %v4907_v56 }
  0xf3   :  { %v4553_v2 = vpop.f32.mrb[14].mxu0  ;;  %v350_v3 = vadd.f32 %v4549_v52, %v318_v1  ;;  %v4571_v4 = vpop.f32.mrb[14].mxu1  ;;  %4600 = vmatprep.subr.bf16.mxu0 %v5046_v5 }
  0xf4   :  { %v219_v6 = vpop.f32.mrb[15].mxu0  ;;  %v353_v7 = vadd.f32 %v4571_v4, %v4552_v61  ;;  %v321_v9 = vpop.f32.mrb[15].mxu1  ;;  %v4297_v2 = vld [vmem:[%s5833_s9 + $0x3] ss:$0 sm:$0xff] }
  0xf5   :  { %v352_v8 = vadd.f32 %v4570_v62, %v219_v6  ;;  %v356_v11 = vmax.f32 %v355_v0, %v350_v3  ;;  %v351_v12 = vadd.f32 %v321_v9, %v216_v63 }
  0xf6   :  { %4601 = vmatpush3.bf16.msra.mxu0 %v4908_v57 }
  0xf7   :  { %v357_v14 = vmax.f32 %v356_v11, %v351_v12  ;;  %4626 = vmatprep.subr.mxu0 %v5046_v5  ;;  %v4305_v12 = vld [vmem:[%s5834_s10] ss:$0 sm:$0xff] }
  0xf9   :  { %v445_v15 = vpop.f32.mrb[16].mxu0  ;;  %v358_v16 = vmax.f32 %v357_v14, %v352_v8 }
  0xfa   :  { %v446_v17 = vadd.f32 %v4279_v13, %v445_v15  ;;  %v4580_v18 = vpop.f32.mrb[17].mxu0 }
  0xfb   :  { %v448_v19 = vpop.f32.mrb[18].mxu0  ;;  %v359_v23 = vmax.f32 %v358_v16, %v353_v7  ;;  %v4298_v7 = vld [vmem:[%s5833_s9 + $0x4] ss:$0 sm:$0xff] }
  0xfc   :  { %v449_v21 = vadd.f32 %v4279_v13, %v448_v19  ;;  %v4581_v22 = vpop.f32.mrb[19].mxu0 }
  0xfd   :  { %v367_v26 = vadd.f32 %v4277_v20, %v359_v23 }
  0xfe   :  { %v455_v24 = vpack.c.bf16 %v449_v21, %v446_v17 }
  0xff   :  { %v454_v27 = vpack.c.bf16 %v367_v26, %v366_v25 }
 0x101   :  { %462 = vrot.lane.b32.xlu0 %v454_v27, %s5048_s16  ;;  %s5051_s16 = smov 88  }
 0x105   :  { %465 = vrot.lane.b32.xlu0 %v455_v24, %s5049_s17  ;;  %v5304_v24 = vld [vmem:[%s5828_s4] ss:$0 sm:$0xff] }
 0x173   :  { %v463_v29 = vpop.permute.xlu0 %462 }
 0x174   :  { %v470_v30 = vsel %vm467_vm3, %v4905_v28, %v463_v29 }
 0x177   :  { %v466_v31 = vpop.permute.xlu0 %465 }
 0x178   :  { %v473_v32 = vsel %vm471_vm4, %v470_v30, %v466_v31 }
 0x179   :  { %4595 = vmatmul.mubr.msk.bf16.vlgmr.msra.gmra.mrb[16].mxu1 %vm530_vm5, %v473_v32 }
 0x17a   :  { %4608 = vmatprep.mubr.msk.f32.mxu1 %vm5047_vm1, %v5046_v5 }
 0x24c   :  { %v567_v34 = vpop.f32.mrb[16].mxu1 }
 0x24d   :  { %v568_v36 = vadd.f32 %v4287_v33, %v567_v34  ;;  %v4596_v37 = vpop.f32.mrb[17].mxu1 }
 0x24e   :  { %v570_v38 = vpop.f32.mrb[18].mxu1 }
 0x24f   :  { %v571_v40 = vadd.f32 %v4287_v33, %v570_v38  ;;  %v4597_v41 = vpop.f32.mrb[19].mxu1  ;;  %v576_v42 = vadd.f32 %v574_v35, %v568_v36 }
 0x251   :  { %v582_v43 = vsel %vm467_vm3, %v576_v42, 0.0  ;;  %v577_v44 = vadd.f32 %v575_v39, %v571_v40 }
 0x252   :  { %583 = vadd.xlane.f32.xlu1 %v582_v43 }
 0x253   :  { %v585_v45 = vsel %vm467_vm3, %v577_v44, 0.0 }
 0x256   :  { %586 = vadd.xlane.f32.xlu1 %v585_v45 }
 0x2df   :  { %v584_v46 = vpop.xlane.xlu1 %583 }
 0x2e0   :  { %v589_v47 = vmul.f32 0.03125, %v584_v46 }
 0x2e2   :  { %v591_v48 = vsub.f32 %v576_v42, %v589_v47 }
 0x2e3   :  { %v587_v49 = vpop.xlane.xlu1 %586 }
 0x2e4   :  { %v590_v50 = vmul.f32 0.03125, %v587_v49  ;;  %v593_v51 = vmul.f32 %v591_v48, %v591_v48 }
 0x2e6   :  { %v592_v52 = vsub.f32 %v577_v44, %v590_v50  ;;  %v595_v53 = vsel %vm467_vm3, %v593_v51, 0.0 }
 0x2e7   :  { %596 = vadd.xlane.f32.xlu0 %v595_v53 }
 0x2e8   :  { %v594_v54 = vmul.f32 %v592_v52, %v592_v52 }
 0x2ea   :  { %v598_v55 = vsel %vm467_vm3, %v594_v54, 0.0 }
 0x2eb   :  { %599 = vadd.xlane.f32.xlu1 %v598_v55 }
 0x374   :  { %v597_v58 = vpop.xlane.xlu0 %596 }
 0x375   :  { %v601_v59 = vmul.f32 0.03125, %v597_v58 }
 0x377   :  { %v603_v60 = vadd.f32 1e-12, %v601_v59 }
 0x378   :  { %v600_v61 = vpop.xlane.xlu1 %599 }
 0x379   :  { %4929 = vrsqrt.f32 %v603_v60  ;;  %v602_v62 = vmul.f32 0.03125, %v600_v61 }
 0x37b   :  { %v604_v63 = vadd.f32 1e-12, %v602_v62 }
 0x37d   :  { %4931 = vrsqrt.f32 %v604_v63 }
 0x383   :  { %v4930_v0 = vpop.eup %4929 }
 0x384   :  { %v607_v1 = vmul.f32 %v4930_v0, %v591_v48 }
 0x386   :  { %v615_v6 = vmul.f32 %v4297_v2, %v607_v1 }
 0x387   :  { %v4932_v3 = vpop.eup %4931 }
 0x388   :  { %v608_v4 = vmul.f32 %v4932_v3, %v592_v52  ;;  %v5268_v9 = vadd.f32 %v4298_v7, %v615_v6  ;;  %v5377_v6 = vld [vmem:[%s5828_s4 + $0x1] ss:$0 sm:$0xff] }
 0x38a   :  { %v616_v8 = vmul.f32 %v4297_v2, %v608_v4 }
 0x38c   :  { %v5270_v10 = vadd.f32 %v4298_v7, %v616_v8 }
 0x38e   :  { %v659_v11 = vpack.c.bf16 %v5270_v10, %v5268_v9 }
 0x390   :  { %4603 = vmatmul.mubr.msk.bf16.vlgmr.msra.gmra.mrb[20].mxu0 %vm467_vm3, %v659_v11 }
 0x391   :  { %4628 = vmatprep.mubr.msk.f32.mxu0 %vm5047_vm1, %v5046_v5 }
 0x463   :  { %v715_v13 = vpop.f32.mrb[20].mxu0 }
 0x464   :  { %v5280_v14 = vadd.f32 %v4305_v12, %v715_v13  ;;  %v4604_v15 = vpop.f32.mrb[21].mxu0 }
 0x465   :  { %v718_v16 = vpop.f32.mrb[22].mxu0 }
 0x466   :  { %v5282_v17 = vadd.f32 %v4305_v12, %v718_v16  ;;  %820 = vrot.lane.b32.xlu0 %v5280_v14, %s5049_s17  ;;  %724 = vrot.lane.b32.xlu1 %v5280_v14, %s5050_s15  ;;  %v4605_v18 = vpop.f32.mrb[23].mxu0 }
 0x46a   :  { %898 = vrot.lane.b32.xlu0 %v5280_v14, %s5051_s16 }
 0x46e   :  { %1065 = vrot.lane.b32.xlu0 %v5280_v14, %s5052_s18 }
 0x4d8   :  { %v821_v19 = vpop.permute.xlu0 %820  ;;  %v725_v20 = vpop.permute.xlu1 %724 }
 0x4d9   :  { %4607 = vmatpush3.xpose.msk.msra.mxu1 %vm726_vm6, %v725_v20 }
 0x4da   :  { %4611 = vmatprep.subr.mxu1 %v5046_v5 }
 0x4dc   :  { %v899_v21 = vpop.permute.xlu0 %898  ;;  %4609 = vmatmul.mubr.msk.f32.vlgmr.msra.gmra.mrb[20].mxu1 %vm726_vm6, %v5280_v14 }
 0x4dd   :  { %4612 = vmatpush3.msra.mxu1 %v821_v19  ;;  %4613 = vmatprep.mubr.msk.f32.mxu1 %vm5047_vm1, %v5046_v5 }
 0x4de   :  { %4616 = vmatprep.subr.mxu1 %v5046_v5 }
 0x4e0   :  { %v1066_v22 = vpop.permute.xlu0 %1065 }
 0x4e1   :  { %4627 = vmatpush3.xpose.msk.msra.mxu0 %vm726_vm6, %v1066_v22 }
 0x4e2   :  { %4636 = vmatprep.subr.mxu0 %v5046_v5 }
 0x5af   :  { %v797_v23 = vpop.f32.mrb[20].mxu1 }
 0x5b0   :  { %v801_v25 = vmul.f32 0.35355338, %v797_v23  ;;  %v4610_v26 = vpop.f32.mrb[21].mxu1 }
 0x5b2   :  { %v808_v27 = vadd.f32 %v5304_v24, %v801_v25 }
 0x5b4   :  { %v809_v28 = vsel %vm726_vm6, %v808_v27, -inf }
 0x5b5   :  { %810 = vmax.xlane.f32.xlu1 %v809_v28 }
 0x5c6   :  { %896 = vrot.lane.b32.xlu1 %v5280_v14, %s5053_s20 }
 0x5ca   :  { %1416 = vrot.lane.b32.xlu1 %v5282_v17, %s5050_s15 }
 0x5ce   :  { %1587 = vrot.lane.b32.xlu1 %v5282_v17, %s5053_s20 }
 0x5d2   :  { %1754 = vrot.lane.b32.xlu1 %v5282_v17, %s5054_s21 }
 0x5d6   :  { %1921 = vrot.lane.b32.xlu1 %v5282_v17, %s5055_s0 }
 0x642   :  { %v811_v29 = vpop.xlane.xlu1 %810 }
 0x643   :  { %v812_v30 = vsub.f32 %v808_v27, %v811_v29 }
 0x645   :  { %v813_v31 = vmul.f32 1.442695, %v812_v30 }
 0x646   :  { %v897_v35 = vpop.permute.xlu1 %896 }
 0x647   :  { %4933 = vpow2.f32 %v813_v31 }
 0x64a   :  { %v1417_v38 = vpop.permute.xlu1 %1416 }
 0x64e   :  { %v1588_v42 = vpop.permute.xlu1 %1587 }
 0x651   :  { %v4934_v32 = vpop.eup %4933 }
 0x652   :  { %v815_v33 = vsel %vm726_vm6, %v4934_v32, 0.0  ;;  %v1755_v45 = vpop.permute.xlu1 %1754 }
 0x653   :  { %816 = vadd.xlane.f32.xlu0 %v815_v33 }
 0x656   :  { %v1922_v47 = vpop.permute.xlu1 %1921 }
 0x669   :  { %1063 = vrot.lane.b32.xlu0 %v5280_v14, %s5054_s21 }
 0x66d   :  { %1232 = vrot.lane.b32.xlu0 %v5280_v14, %s5056_s22 }
 0x671   :  { %1230 = vrot.lane.b32.xlu0 %v5280_v14, %s5055_s0 }
 0x675   :  { %1589 = vrot.lane.b32.xlu0 %v5282_v17, %s5051_s16 }
 0x679   :  { %1756 = vrot.lane.b32.xlu0 %v5282_v17, %s5052_s18 }
 0x67d   :  { %1923 = vrot.lane.b32.xlu0 %v5282_v17, %s5056_s22 }
 0x6e0   :  { %v817_v34 = vpop.xlane.xlu0 %816 }
 0x6e1   :  { %4935 = vrcp.f32 %v817_v34 }
 0x6e4   :  { %v1064_v36 = vpop.permute.xlu0 %1063 }
 0x6e5   :  { %4629 = vmatmul.mubr.msk.f32.vlgmr.msra.gmra.mrb[24].mxu0 %vm726_vm6, %v1064_v36 }
 0x6e6   :  { %4638 = vmatprep.mubr.msk.f32.mxu0 %vm5047_vm1, %v5046_v5 }
 0x6e8   :  { %v1233_v37 = vpop.permute.xlu0 %1232 }
 0x6e9   :  { %4637 = vmatpush3.xpose.msk.msra.mxu0 %vm726_vm6, %v1233_v37 }
 0x6ea   :  { %4646 = vmatprep.subr.mxu0 %v5046_v5 }
 0x6eb   :  { %v4936_v39 = vpop.eup %4935 }
 0x6ec   :  { %v819_v40 = vmul.f32 %v4936_v39, %v4934_v32  ;;  %v1231_v41 = vpop.permute.xlu0 %1230 }
 0x6ed   :  { %4639 = vmatmul.mubr.msk.f32.vlgmr.msra.gmra.mrb[26].mxu0 %vm726_vm6, %v1231_v41 }
 0x6ee   :  { %4647 = vmatpush3.xpose.msk.msra.mxu0 %vm726_vm6, %v1417_v38  ;;  %4614 = vmatmul.mubr.msk.f32.vlgmr.msra.gmra.mrb[22].mxu1 %vm726_vm6, %v819_v40 }
 0x6ef   :  { %4617 = vmatpush3.xpose.msk.msra.mxu1 %vm726_vm6, %v899_v21  ;;  %4648 = vmatprep.mubr.msk.f32.mxu0 %vm5047_vm1, %v5046_v5 }
 0x6f0   :  { %v1590_v43 = vpop.permute.xlu0 %1589  ;;  %4656 = vmatprep.subr.mxu0 %v5046_v5  ;;  %4618 = vmatprep.mubr.msk.f32.mxu1 %vm5047_vm1, %v5046_v5 }
 0x6f1   :  { %4649 = vmatmul.mubr.msk.f32.vlgmr.msra.gmra.mrb[28].mxu0 %vm726_vm6, %v5282_v17  ;;  %4621 = vmatprep.subr.mxu1 %v5046_v5 }
 0x6f2   :  { %4657 = vmatpush3.xpose.msk.msra.mxu0 %vm726_vm6, %v1590_v43  ;;  %4619 = vmatmul.mubr.msk.f32.vlgmr.msra.gmra.mrb[24].mxu1 %vm726_vm6, %v897_v35 }
 0x6f3   :  { %4658 = vmatprep.mubr.msk.f32.mxu0 %vm5047_vm1, %v5046_v5  ;;  %4666 = vmatprep.subr.mxu0 %v5046_v5 }
 0x6f4   :  { %v1757_v44 = vpop.permute.xlu0 %1756  ;;  %4623 = vmatprep.mubr.msk.f32.mxu1 %vm5047_vm1, %v5046_v5 }
 0x6f5   :  { %4659 = vmatmul.mubr.msk.f32.vlgmr.msra.gmra.mrb[30].mxu0 %vm726_vm6, %v1588_v42 }
 0x6f6   :  { %4667 = vmatpush3.xpose.msk.msra.mxu0 %vm726_vm6, %v1757_v44  ;;  %4668 = vmatprep.mubr.msk.f32.mxu0 %vm5047_vm1, %v5046_v5 }
 0x6f7   :  { %4676 = vmatprep.subr.mxu0 %v5046_v5 }
 0x6f8   :  { %v1924_v46 = vpop.permute.xlu0 %1923 }
 0x6f9   :  { %4669 = vmatmul.mubr.msk.f32.vlgmr.msra.gmra.mrb[32].mxu0 %vm726_vm6, %v1755_v45 }
 0x6fa   :  { %4677 = vmatpush3.xpose.msk.msra.mxu0 %vm726_vm6, %v1924_v46  ;;  %4678 = vmatprep.mubr.msk.f32.mxu0 %vm5047_vm1, %v5046_v5 }
 0x6fb   :  { %4686 = vmatprep.subr.bf16.mxu0 %v5046_v5 }
 0x6fd   :  { %4679 = vmatmul.mubr.msk.f32.vlgmr.msra.gmra.mrb[34].mxu0 %vm726_vm6, %v1922_v47 }
 0x6fe   :  { %4690 = vmatprep.mubr.msk.bf16.mxu0 %vm5047_vm1, %v5046_v5 }
 0x7b8   :  { %v1137_v48 = vpop.f32.mrb[24].mxu0 }
 0x7b9   :  { %v1141_v49 = vmul.f32 0.35355338, %v1137_v48  ;;  %v4630_v50 = vpop.f32.mrb[25].mxu0 }
 0x7bb   :  { %v1142_v51 = vadd.f32 %v5304_v24, %v1141_v49 }
 0x7bd   :  { %v1143_v52 = vsel %vm726_vm6, %v1142_v51, -inf }
 0x7be   :  { %1144 = vmax.xlane.f32.xlu1 %v1143_v52 }
 0x7c0   :  { %v1304_v53 = vpop.f32.mrb[26].mxu0 }
 0x7c1   :  { %v5370_v54 = vpop.f32.mrb[22].mxu1  ;;  %v4640_v55 = vpop.f32.mrb[27].mxu0  ;;  %v1308_v60 = vmul.f32 0.35355338, %v1304_v53 }
 0x7c2   :  { %v4615_v56 = vpop.f32.mrb[23].mxu1 }
 0x7c3   :  { %v1309_v7 = vadd.f32 %v5304_v24, %v1308_v60 }
 0x7c4   :  { %v1488_v57 = vpop.f32.mrb[28].mxu0 }
 0x7c5   :  { %v970_v58 = vpop.f32.mrb[24].mxu1  ;;  %v4650_v59 = vpop.f32.mrb[29].mxu0  ;;  %v1492_v3 = vmul.f32 0.35355338, %v1488_v57  ;;  %v1310_v16 = vsel %vm726_vm6, %v1309_v7, -inf }
 0x7c6   :  { %v974_v61 = vmul.f32 0.35355338, %v970_v58  ;;  %v4620_v62 = vpop.f32.mrb[25].mxu1 }
 0x7c7   :  { %v1499_v18 = vadd.f32 %v5377_v6, %v1492_v3 }
 0x7c8   :  { %v1661_v63 = vpop.f32.mrb[30].mxu0  ;;  %v975_v0 = vadd.f32 %v5304_v24, %v974_v61 }
 0x7c9   :  { %v1665_v1 = vmul.f32 0.35355338, %v1661_v63  ;;  %v4660_v2 = vpop.f32.mrb[31].mxu0  ;;  %v1500_v22 = vsel %vm726_vm6, %v1499_v18, -inf }
 0x7ca   :  { %v976_v4 = vsel %vm726_vm6, %v975_v0, -inf }
 0x7cb   :  { %977 = vmax.xlane.f32.xlu0 %v976_v4  ;;  %v1666_v8 = vadd.f32 %v5377_v6, %v1665_v1 }
 0x7cc   :  { %v1828_v11 = vpop.f32.mrb[32].mxu0 }
 0x7cd   :  { %v4670_v12 = vpop.f32.mrb[33].mxu0  ;;  %v1667_v13 = vsel %vm726_vm6, %v1666_v8, -inf  ;;  %v1832_v15 = vmul.f32 0.35355338, %v1828_v11 }
 0x7ce   :  { %1668 = vmax.xlane.f32.xlu1 %v1667_v13 }
 0x7cf   :  { %1311 = vmax.xlane.f32.xlu0 %v1310_v16  ;;  %v1833_v23 = vadd.f32 %v5377_v6, %v1832_v15 }
 0x7d0   :  { %v1995_v19 = vpop.f32.mrb[34].mxu0 }
 0x7d1   :  { %v1999_v20 = vmul.f32 0.35355338, %v1995_v19  ;;  %v4680_v21 = vpop.f32.mrb[35].mxu0  ;;  %v1834_v27 = vsel %vm726_vm6, %v1833_v23, -inf }
 0x7d3   :  { %1501 = vmax.xlane.f32.xlu0 %v1500_v22  ;;  %v2000_v25 = vadd.f32 %v5377_v6, %v1999_v20 }
 0x7d5   :  { %v2001_v26 = vsel %vm726_vm6, %v2000_v25, -inf }
 0x7d6   :  { %2002 = vmax.xlane.f32.xlu1 %v2001_v26 }
 0x7d7   :  { %1835 = vmax.xlane.f32.xlu0 %v1834_v27 }
 0x84b   :  { %v1145_v28 = vpop.xlane.xlu1 %1144 }
 0x84c   :  { %v1146_v29 = vsub.f32 %v1142_v51, %v1145_v28 }
 0x84e   :  { %v1147_v30 = vmul.f32 1.442695, %v1146_v29 }
 0x850   :  { %4937 = vpow2.f32 %v1147_v30 }
 0x858   :  { %v978_v31 = vpop.xlane.xlu0 %977 }
 0x859   :  { %v979_v42 = vsub.f32 %v975_v0, %v978_v31 }
 0x85a   :  { %v5389_v32 = vpop.eup %4937 }
 0x85b   :  { %v1669_v33 = vpop.xlane.xlu1 %1668  ;;  %v1149_v34 = vsel %vm726_vm6, %v5389_v32, 0.0  ;;  %v980_v49 = vmul.f32 1.442695, %v979_v42  ;;  %v4910_v42 = vld [vmem:[%s5829_s5 + $0x60] sm:$0xff]  }
 0x85c   :  { %v1670_v35 = vsub.f32 %v1666_v8, %v1669_v33  ;;  %1150 = vadd.xlane.f32.xlu1 %v1149_v34  ;;  %v1312_v36 = vpop.xlane.xlu0 %1311 }
 0x85d   :  { %v1313_v37 = vsub.f32 %v1309_v7, %v1312_v36 }
 0x85e   :  { %v1671_v38 = vmul.f32 1.442695, %v1670_v35 }
 0x85f   :  { %v1314_v39 = vmul.f32 1.442695, %v1313_v37 }
 0x860   :  { %v1502_v40 = vpop.xlane.xlu0 %1501 }
 0x861   :  { %4939 = vpow2.f32 %v1314_v39  ;;  %v1503_v41 = vsub.f32 %v1499_v18, %v1502_v40  ;;  %v4909_v39 = vld [vmem:[%s5829_s5 + $0x58] sm:$0xff]  }
 0x862   :  { %4941 = vpow2.f32 %v1671_v38  ;;  %4687 = vmatpush3.bf16.msra.mxu0 %v4909_v39 }
 0x863   :  { %v1504_v43 = vmul.f32 1.442695, %v1503_v41  ;;  %v2003_v44 = vpop.xlane.xlu1 %2002  ;;  %4688 = vmatprep.subr.bf16.mxu0 %v5046_v5 }
 0x864   :  { %v2004_v45 = vsub.f32 %v2000_v25, %v2003_v44  ;;  %v1836_v46 = vpop.xlane.xlu0 %1835 }
 0x865   :  { %4943 = vpow2.f32 %v1504_v43  ;;  %v1837_v47 = vsub.f32 %v1833_v23, %v1836_v46 }
 0x866   :  { %v2005_v48 = vmul.f32 1.442695, %v2004_v45  ;;  %4689 = vmatpush3.bf16.msra.mxu0 %v4910_v42  ;;  %v4341_v42 = vld [vmem:[%s5833_s9 + $0x7] ss:$0 sm:$0xff] }
 0x867   :  { %v1838_v50 = vmul.f32 1.442695, %v1837_v47  ;;  %4702 = vmatprep.subr.bf16.mxu0 %v5046_v5 }
 0x868   :  { %4945 = vpow2.f32 %v2005_v48 }
 0x869   :  { %4947 = vpow2.f32 %v1838_v50 }
 0x86a   :  { %4949 = vpow2.f32 %v980_v49 }
 0x86b   :  { %v4940_v51 = vpop.eup %4939 }
 0x86c   :  { %v1316_v52 = vsel %vm726_vm6, %v4940_v51, 0.0  ;;  %v5394_v53 = vpop.eup %4941 }
 0x86d   :  { %1317 = vadd.xlane.f32.xlu0 %v1316_v52  ;;  %v1673_v56 = vsel %vm726_vm6, %v5394_v53, 0.0 }
 0x86f   :  { %v4944_v55 = vpop.eup %4943 }
 0x870   :  { %v1506_v57 = vsel %vm726_vm6, %v4944_v55, 0.0 }
 0x871   :  { %1674 = vadd.xlane.f32.xlu0 %v1673_v56  ;;  %1507 = vadd.xlane.f32.xlu1 %v1506_v57 }
 0x872   :  { %v5399_v58 = vpop.eup %4945 }
 0x873   :  { %v5401_v59 = vpop.eup %4947  ;;  %v2007_v60 = vsel %vm726_vm6, %v5399_v58, 0.0 }
 0x874   :  { %v1840_v61 = vsel %vm726_vm6, %v5401_v59, 0.0  ;;  %v4950_v62 = vpop.eup %4949 }
 0x875   :  { %2008 = vadd.xlane.f32.xlu0 %v2007_v60  ;;  %1841 = vadd.xlane.f32.xlu1 %v1840_v61  ;;  %v982_v63 = vsel %vm726_vm6, %v4950_v62, 0.0 }
 0x879   :  { %983 = vadd.xlane.f32.xlu0 %v982_v63 }
 0x886   :  { %987 = vrot.lane.b32.xlu1 %v5280_v14, %s5057_s1 }
 0x88a   :  { %1321 = vrot.lane.b32.xlu1 %v5280_v14, %s5058_s24 }
 0x88e   :  { %1511 = vrot.lane.b32.xlu1 %v5282_v17, %s5049_s17 }
 0x88f   :  { %1154 = vrot.lane.b32.xlu0 %v5280_v14, %s5059_s25 }
 0x892   :  { %1845 = vrot.lane.b32.xlu1 %v5282_v17, %s5059_s25 }
 0x893   :  { %1678 = vrot.lane.b32.xlu0 %v5282_v17, %s5057_s1 }
 0x897   :  { %2012 = vrot.lane.b32.xlu0 %v5282_v17, %s5058_s24 }
 0x8e9   :  { %v1151_v0 = vpop.xlane.xlu1 %1150 }
 0x8fa   :  { %v1318_v1 = vpop.xlane.xlu0 %1317 }
 0x8fe   :  { %v1508_v2 = vpop.xlane.xlu1 %1507  ;;  %v1675_v3 = vpop.xlane.xlu0 %1674 }
 0x902   :  { %v1842_v4 = vpop.xlane.xlu1 %1841  ;;  %v2009_v7 = vpop.xlane.xlu0 %2008 }
 0x906   :  { %v988_v8 = vpop.permute.xlu1 %987  ;;  %v984_v11 = vpop.xlane.xlu0 %983 }
 0x907   :  { %4951 = vrcp.f32 %v984_v11  ;;  %4622 = vmatpush3.msra.mxu1 %v988_v8 }
 0x908   :  { %4631 = vmatprep.subr.mxu1 %v5046_v5  ;;  %4953 = vrcp.f32 %v1151_v0 }
 0x909   :  { %4955 = vrcp.f32 %v1318_v1 }
 0x90a   :  { %4957 = vrcp.f32 %v1508_v2  ;;  %v1155_v15 = vpop.permute.xlu0 %1154  ;;  %v1322_v16 = vpop.permute.xlu1 %1321 }
 0x90b   :  { %4959 = vrcp.f32 %v1675_v3 }
 0x90c   :  { %4961 = vrcp.f32 %v1842_v4 }
 0x90d   :  { %4963 = vrcp.f32 %v2009_v7 }
 0x90e   :  { %v1512_v21 = vpop.permute.xlu1 %1511  ;;  %v1679_v25 = vpop.permute.xlu0 %1678 }
 0x911   :  { %v4952_v14 = vpop.eup %4951 }
 0x912   :  { %v986_v12 = vmul.f32 %v4952_v14, %v4950_v62  ;;  %v4954_v13 = vpop.eup %4953  ;;  %v1846_v28 = vpop.permute.xlu1 %1845 }
 0x913   :  { %v1153_v17 = vmul.f32 %v4954_v13, %v5389_v32  ;;  %v4956_v18 = vpop.eup %4955  ;;  %v2013_v31 = vpop.permute.xlu0 %2012 }
 0x914   :  { %4624 = vmatmul.mubr.msk.f32.vlgmr.msra.gmra.mrb[26].mxu1 %vm726_vm6, %v986_v12  ;;  %v1320_v19 = vmul.f32 %v4956_v18, %v4940_v51  ;;  %v4958_v20 = vpop.eup %4957 }
 0x915   :  { %4632 = vmatpush3.msra.mxu1 %v1155_v15  ;;  %4633 = vmatprep.mubr.msk.f32.mxu1 %vm5047_vm1, %v5046_v5  ;;  %v1510_v22 = vmul.f32 %v4958_v20, %v4944_v55  ;;  %v4960_v23 = vpop.eup %4959 }
 0x916   :  { %4641 = vmatprep.subr.mxu1 %v5046_v5  ;;  %v1677_v26 = vmul.f32 %v4960_v23, %v5394_v53  ;;  %v4962_v27 = vpop.eup %4961 }
 0x917   :  { %v1844_v29 = vmul.f32 %v4962_v27, %v5401_v59  ;;  %v4964_v30 = vpop.eup %4963 }
 0x918   :  { %4634 = vmatmul.mubr.msk.f32.vlgmr.msra.gmra.mrb[28].mxu1 %vm726_vm6, %v1153_v17  ;;  %v2011_v32 = vmul.f32 %v4964_v30, %v5399_v58 }
 0x919   :  { %4642 = vmatpush3.msra.mxu1 %v1322_v16  ;;  %4643 = vmatprep.mubr.msk.f32.mxu1 %vm5047_vm1, %v5046_v5 }
 0x91a   :  { %4651 = vmatprep.subr.mxu1 %v5046_v5 }
 0x91c   :  { %4644 = vmatmul.mubr.msk.f32.vlgmr.msra.gmra.mrb[30].mxu1 %vm726_vm6, %v1320_v19 }
 0x91d   :  { %4652 = vmatpush3.msra.mxu1 %v1512_v21  ;;  %4653 = vmatprep.mubr.msk.f32.mxu1 %vm5047_vm1, %v5046_v5 }
 0x91e   :  { %4661 = vmatprep.subr.mxu1 %v5046_v5 }
 0x920   :  { %4654 = vmatmul.mubr.msk.f32.vlgmr.msra.gmra.mrb[32].mxu1 %vm726_vm6, %v1510_v22 }
 0x921   :  { %4662 = vmatpush3.msra.mxu1 %v1679_v25  ;;  %4663 = vmatprep.mubr.msk.f32.mxu1 %vm5047_vm1, %v5046_v5 }
 0x922   :  { %4671 = vmatprep.subr.mxu1 %v5046_v5 }
 0x924   :  { %4664 = vmatmul.mubr.msk.f32.vlgmr.msra.gmra.mrb[34].mxu1 %vm726_vm6, %v1677_v26 }
 0x925   :  { %4672 = vmatpush3.msra.mxu1 %v1846_v28  ;;  %4673 = vmatprep.mubr.msk.f32.mxu1 %vm5047_vm1, %v5046_v5 }
 0x926   :  { %4681 = vmatprep.subr.mxu1 %v5046_v5 }
 0x928   :  { %4674 = vmatmul.mubr.msk.f32.vlgmr.msra.gmra.mrb[36].mxu1 %vm726_vm6, %v1844_v29  ;;  %v4912_v29 = vld [vmem:[%s5831_s7 + $0x8] sm:$0xff]  }
 0x929   :  { %4682 = vmatpush3.msra.mxu1 %v2013_v31  ;;  %4683 = vmatprep.mubr.msk.f32.mxu1 %vm5047_vm1, %v5046_v5 }
 0x92a   :  { %4694 = vmatprep.subr.bf16.mxu1 %v5046_v5 }
 0x92c   :  { %4684 = vmatmul.mubr.msk.f32.vlgmr.msra.gmra.mrb[38].mxu1 %vm726_vm6, %v2011_v32 }
 0x92d   :  { %4698 = vmatprep.mubr.msk.bf16.mxu1 %vm5047_vm1, %v5046_v5 }
 0x9e7   :  { %v1059_v33 = vpop.f32.mrb[26].mxu1 }
 0x9e8   :  { %v4625_v34 = vpop.f32.mrb[27].mxu1 }
 0x9eb   :  { %v1226_v35 = vpop.f32.mrb[28].mxu1 }
 0x9ec   :  { %v4635_v36 = vpop.f32.mrb[29].mxu1 }
 0x9ef   :  { %v1393_v37 = vpop.f32.mrb[30].mxu1 }
 0x9f0   :  { %v4645_v38 = vpop.f32.mrb[31].mxu1 }
 0x9f1   :  { %v4340_v38 = vld [vmem:[%s5833_s9 + $0x6] ss:$0 sm:$0xff] }
 0x9f3   :  { %v1583_v40 = vpop.f32.mrb[32].mxu1 }
 0x9f4   :  { %v4655_v41 = vpop.f32.mrb[33].mxu1 }
 0x9f7   :  { %v1750_v43 = vpop.f32.mrb[34].mxu1 }
 0x9f8   :  { %v4856_v44 = vpack.i.bf16 %v1750_v43, %v1059_v33  ;;  %v4665_v45 = vpop.f32.mrb[35].mxu1 }
 0x9fa   :  { %4857 = vrot.lane.b32.xlu1 %v4856_v44, %s5060_s30 }
 0x9fb   :  { %v1917_v46 = vpop.f32.mrb[36].mxu1 }
 0x9fc   :  { %v4861_v47 = vpack.i.bf16 %v1917_v46, %v1226_v35  ;;  %v4675_v48 = vpop.f32.mrb[37].mxu1 }
 0x9fd   :  { %v4914_v48 = vld [vmem:[%s5829_s5 + $0x70] sm:$0xff]  }
 0x9fe   :  { %4862 = vrot.lane.b32.xlu0 %v4861_v47, %s5061_s14  ;;  %v4913_v47 = vld [vmem:[%s5829_s5 + $0x68] sm:$0xff]  }
 0x9ff   :  { %v2084_v49 = vpop.f32.mrb[38].mxu1 }
 0xa00   :  { %v4866_v50 = vpack.i.bf16 %v2084_v49, %v1393_v37  ;;  %v4685_v51 = vpop.f32.mrb[39].mxu1  ;;  %v4915_v49 = vld [vmem:[%s5829_s5 + $0x78] sm:$0xff]  }
 0xa01   :  { %v4342_v51 = vld [vmem:[%s5835_s11] ss:$0 sm:$0xff] }
 0xa02   :  { %4867 = vrot.lane.b32.xlu1 %v4866_v50, %s5062_s3  ;;  %v4916_v50 = vld [vmem:[%s5829_s5 + $0x80] sm:$0xff]  }
 0xa6c   :  { %v4858_v52 = vpop.permute.xlu1 %4857 }
 0xa6d   :  { %v4860_v55 = vunpack.i.h.bf16 %v4858_v52  ;;  %v4859_v56 = vunpack.i.l.bf16 %v4858_v52 }
 0xa6f   :  { %v2100_v60 = vsel %vm726_vm6, %v1583_v40, %v4860_v55  ;;  %v1409_v61 = vsel %vm726_vm6, %v5370_v54, %v4859_v56  ;;  %v4336_v54 = vld [vmem:[%s5833_s9 + $0x5] ss:$0 sm:$0xff] }
 0xa70   :  { %v4863_v53 = vpop.permute.xlu0 %4862 }
 0xa71   :  { %v4865_v57 = vunpack.i.h.bf16 %v4863_v53  ;;  %v4864_v58 = vunpack.i.l.bf16 %v4863_v53 }
 0xa73   :  { %v2101_v0 = vsel %vm110_vm0, %v2100_v60, %v4865_v57  ;;  %v1410_v1 = vsel %vm110_vm0, %v1409_v61, %v4864_v58 }
 0xa74   :  { %v4868_v59 = vpop.permute.xlu1 %4867 }
 0xa75   :  { %v4870_v62 = vunpack.i.h.bf16 %v4868_v59  ;;  %v4869_v63 = vunpack.i.l.bf16 %v4868_v59 }
 0xa77   :  { %v2102_v2 = vsel %vm1411_vm7, %v2101_v0, %v4870_v62  ;;  %v1412_v3 = vsel %vm1411_vm7, %v1410_v1, %v4869_v63 }
 0xa78   :  { %v2103_v4 = vpack.c.bf16 %v2102_v2, %v1412_v3 }
 0xa7a   :  { %4691 = vmatmul.mubr.msk.bf16.vlgmr.msra.gmra.mrb[36].mxu0 %vm467_vm3, %v2103_v4 }
 0xa7b   :  { %4710 = vmatprep.mubr.msk.bf16.mxu0 %vm5047_vm1, %v5046_v5  ;;  %4703 = vmatpush3.bf16.msra.mxu0 %v4913_v47 }
 0xa7c   :  { %4704 = vmatprep.subr.bf16.mxu0 %v5046_v5 }
 0xa7f   :  { %4705 = vmatpush3.bf16.msra.mxu0 %v4914_v48  ;;  %v4362_v48 = vld [vmem:[%s5834_s10 + $0x1] ss:$0 sm:$0xff] }
 0xa80   :  { %4706 = vmatprep.subr.bf16.mxu0 %v5046_v5 }
 0xa83   :  { %4707 = vmatpush3.bf16.msra.mxu0 %v4915_v49 }
 0xa84   :  { %4708 = vmatprep.subr.bf16.mxu0 %v5046_v5 }
 0xa87   :  { %4709 = vmatpush3.bf16.msra.mxu0 %v4916_v50 }
 0xa88   :  { %4732 = vmatprep.subr.mxu0 %v5046_v5 }
 0xb4d   :  { %v2159_v7 = vpop.f32.mrb[36].mxu0 }
 0xb4e   :  { %v2160_v8 = vadd.f32 %v4336_v54, %v2159_v7  ;;  %v4692_v11 = vpop.f32.mrb[37].mxu0  ;;  %v4346_v7 = vld [vmem:[%s5833_s9 + $0x8] ss:$0 sm:$0xff] }
 0xb4f   :  { %v2162_v14 = vpop.f32.mrb[38].mxu0 }
 0xb50   :  { %v2163_v12 = vadd.f32 %v4336_v54, %v2162_v14  ;;  %v4693_v13 = vpop.f32.mrb[39].mxu0  ;;  %v2166_v15 = vadd.f32 %v2160_v8, %v5268_v9 }
 0xb52   :  { %v2168_v17 = vsel %vm467_vm3, %v2166_v15, 0.0  ;;  %v2167_v16 = vadd.f32 %v2163_v12, %v5270_v10  ;;  %v4911_v10 = vld [vmem:[%s5831_s7] sm:$0xff]  }
 0xb53   :  { %2169 = vadd.xlane.f32.xlu0 %v2168_v17  ;;  %4695 = vmatpush3.bf16.msra.mxu1 %v4911_v10 }
 0xb54   :  { %v2171_v18 = vsel %vm467_vm3, %v2167_v16, 0.0  ;;  %4696 = vmatprep.subr.bf16.mxu1 %v5046_v5 }
 0xb55   :  { %2172 = vadd.xlane.f32.xlu1 %v2171_v18 }
 0xb57   :  { %4697 = vmatpush3.bf16.msra.mxu1 %v4912_v29  ;;  %v4917_v29 = vld [vmem:[%s5830_s6 + $0x10] sm:$0xff]  }
 0xb58   :  { %4714 = vmatprep.subr.bf16.mxu1 %v5046_v5 }
 0xbe0   :  { %v2170_v19 = vpop.xlane.xlu0 %2169 }
 0xbe1   :  { %v2174_v20 = vmul.f32 0.03125, %v2170_v19 }
 0xbe2   :  { %v2173_v21 = vpop.xlane.xlu1 %2172 }
 0xbe3   :  { %v2176_v22 = vsub.f32 %v2166_v15, %v2174_v20  ;;  %v2175_v23 = vmul.f32 0.03125, %v2173_v21 }
 0xbe5   :  { %v2177_v25 = vsub.f32 %v2167_v16, %v2175_v23  ;;  %v2178_v26 = vmul.f32 %v2176_v22, %v2176_v22 }
 0xbe7   :  { %v2180_v27 = vsel %vm467_vm3, %v2178_v26, 0.0  ;;  %v2179_v28 = vmul.f32 %v2177_v25, %v2177_v25 }
 0xbe8   :  { %2181 = vadd.xlane.f32.xlu0 %v2180_v27 }
 0xbe9   :  { %v2183_v9 = vsel %vm467_vm3, %v2179_v28, 0.0 }
 0xbec   :  { %2184 = vadd.xlane.f32.xlu0 %v2183_v9 }
 0xc75   :  { %v2182_v30 = vpop.xlane.xlu0 %2181 }
 0xc76   :  { %v2186_v31 = vmul.f32 0.03125, %v2182_v30  ;;  %v4918_v30 = vld [vmem:[%s5830_s6 + $0x18] sm:$0xff]  }
 0xc78   :  { %v2188_v32 = vadd.f32 1e-12, %v2186_v31 }
 0xc79   :  { %v2185_v33 = vpop.xlane.xlu0 %2184 }
 0xc7a   :  { %4965 = vrsqrt.f32 %v2188_v32  ;;  %v2187_v34 = vmul.f32 0.03125, %v2185_v33 }
 0xc7c   :  { %v2189_v35 = vadd.f32 1e-12, %v2187_v34 }
 0xc7e   :  { %4967 = vrsqrt.f32 %v2189_v35 }
 0xc84   :  { %v4966_v36 = vpop.eup %4965 }
 0xc85   :  { %v2192_v37 = vmul.f32 %v4966_v36, %v2176_v22 }
 0xc87   :  { %v2200_v40 = vmul.f32 %v4340_v38, %v2192_v37 }
 0xc88   :  { %v4968_v39 = vpop.eup %4967 }
 0xc89   :  { %v2193_v41 = vmul.f32 %v4968_v39, %v2177_v25  ;;  %v2208_v44 = vadd.f32 %v4341_v42, %v2200_v40 }
 0xc8b   :  { %v2201_v43 = vmul.f32 %v4340_v38, %v2193_v41  ;;  %v4352_v38 = vld [vmem:[%s5833_s9 + $0x9] ss:$0 sm:$0xff] }
 0xc8d   :  { %v2209_v45 = vadd.f32 %v4341_v42, %v2201_v43  ;;  %v4353_v43 = vld [vmem:[%s5833_s9 + $0xa] ss:$0 sm:$0xff] }
 0xc8f   :  { %v2210_v46 = vpack.c.bf16 %v2209_v45, %v2208_v44 }
 0xc91   :  { %4699 = vmatmul.mubr.msk.bf16.vlgmr.msra.gmra.mrb[40].mxu1 %vm467_vm3, %v2210_v46 }
 0xc92   :  { %4718 = vmatprep.mubr.msk.bf16.mxu1 %vm5047_vm1, %v5046_v5  ;;  %4715 = vmatpush3.bf16.msra.mxu1 %v4917_v29 }
 0xc93   :  { %4716 = vmatprep.subr.bf16.mxu1 %v5046_v5 }
 0xc96   :  { %4717 = vmatpush3.bf16.msra.mxu1 %v4918_v30 }
 0xc97   :  { %4722 = vmatprep.subr.mxu1 %v5046_v5 }
 0xd64   :  { %v2266_v52 = vpop.f32.mrb[40].mxu1 }
 0xd65   :  { %v2267_v53 = vadd.f32 %v4342_v51, %v2266_v52  ;;  %v4700_v55 = vpop.f32.mrb[41].mxu1 }
 0xd66   :  { %v2269_v56 = vpop.f32.mrb[42].mxu1 }
 0xd67   :  { %v2275_v57 = vmul.f32 0.70710677, %v2267_v53  ;;  %v2270_v58 = vadd.f32 %v4342_v51, %v2269_v56  ;;  %v4701_v59 = vpop.f32.mrb[43].mxu1  ;;  %v2273_v0 = vmul.f32 0.5, %v2267_v53 }
 0xd69   :  { %4969 = verf.f32 %v2275_v57  ;;  %v2276_v60 = vmul.f32 0.70710677, %v2270_v58  ;;  %v2274_v1 = vmul.f32 0.5, %v2270_v58 }
 0xd6b   :  { %4971 = verf.f32 %v2276_v60 }
 0xd73   :  { %v4970_v61 = vpop.eup %4969 }
 0xd74   :  { %v2279_v62 = vadd.f32 1.0, %v4970_v61 }
 0xd75   :  { %v4972_v63 = vpop.eup %4971 }
 0xd76   :  { %v2280_v2 = vadd.f32 1.0, %v4972_v63  ;;  %v2281_v3 = vmul.f32 %v2279_v62, %v2273_v0 }
 0xd78   :  { %v2282_v4 = vmul.f32 %v2280_v2, %v2274_v1 }
 0xd7a   :  { %v2283_v54 = vpack.c.bf16 %v2282_v4, %v2281_v3 }
 0xd7c   :  { %4711 = vmatmul.mubr.msk.bf16.vlgmr.msra.gmra.mrb[40].mxu0 %vm471_vm4, %v2283_v54 }
 0xd7d   :  { %4734 = vmatprep.mubr.msk.f32.mxu0 %vm5047_vm1, %v5046_v5 }
 0xe4f   :  { %v2351_v8 = vpop.f32.mrb[40].mxu0 }
 0xe50   :  { %v2352_v11 = vadd.f32 %v4346_v7, %v2351_v8  ;;  %v4712_v14 = vpop.f32.mrb[41].mxu0 }
 0xe51   :  { %v2354_v12 = vpop.f32.mrb[42].mxu0 }
 0xe52   :  { %v2355_v13 = vadd.f32 %v4346_v7, %v2354_v12  ;;  %v4713_v15 = vpop.f32.mrb[43].mxu0  ;;  %v2358_v17 = vadd.f32 %v2352_v11, %v2208_v44 }
 0xe54   :  { %v2360_v16 = vsel %vm467_vm3, %v2358_v17, 0.0  ;;  %v2359_v18 = vadd.f32 %v2355_v13, %v2209_v45 }
 0xe55   :  { %2361 = vadd.xlane.f32.xlu1 %v2360_v16 }
 0xe56   :  { %v2363_v19 = vsel %vm467_vm3, %v2359_v18, 0.0 }
 0xe57   :  { %2364 = vadd.xlane.f32.xlu0 %v2363_v19 }
 0xee2   :  { %v2362_v20 = vpop.xlane.xlu1 %2361 }
 0xee3   :  { %v2366_v21 = vmul.f32 0.03125, %v2362_v20 }
 0xee4   :  { %v2365_v22 = vpop.xlane.xlu0 %2364 }
 0xee5   :  { %v2368_v23 = vsub.f32 %v2358_v17, %v2366_v21  ;;  %v2367_v25 = vmul.f32 0.03125, %v2365_v22 }
 0xee7   :  { %v2369_v26 = vsub.f32 %v2359_v18, %v2367_v25  ;;  %v2370_v27 = vmul.f32 %v2368_v23, %v2368_v23 }
 0xee9   :  { %v2372_v28 = vsel %vm467_vm3, %v2370_v27, 0.0  ;;  %v2371_v9 = vmul.f32 %v2369_v26, %v2369_v26 }
 0xeea   :  { %2373 = vadd.xlane.f32.xlu1 %v2372_v28 }
 0xeeb   :  { %v2375_v10 = vsel %vm467_vm3, %v2371_v9, 0.0  ;;  %v5021_v9 = vld [vmem:[%s5828_s4] ss:$0 sm:$0xff] }
 0xeec   :  { %2376 = vadd.xlane.f32.xlu0 %v2375_v10 }
 0xf77   :  { %v2374_v31 = vpop.xlane.xlu1 %2373 }
 0xf78   :  { %v2378_v32 = vmul.f32 0.03125, %v2374_v31 }
 0xf79   :  { %v2377_v33 = vpop.xlane.xlu0 %2376 }
 0xf7a   :  { %v2380_v34 = vadd.f32 1e-12, %v2378_v32  ;;  %v2379_v35 = vmul.f32 0.03125, %v2377_v33 }
 0xf7c   :  { %4973 = vrsqrt.f32 %v2380_v34  ;;  %v2381_v36 = vadd.f32 1e-12, %v2379_v35 }
 0xf7e   :  { %4975 = vrsqrt.f32 %v2381_v36 }
 0xf86   :  { %v4974_v37 = vpop.eup %4973 }
 0xf87   :  { %v2384_v39 = vmul.f32 %v4974_v37, %v2368_v23 }
 0xf88   :  { %v4976_v40 = vpop.eup %4975 }
 0xf89   :  { %v2392_v41 = vmul.f32 %v4352_v38, %v2384_v39  ;;  %v2385_v42 = vmul.f32 %v4976_v40, %v2369_v26 }
 0xf8b   :  { %v2393_v44 = vmul.f32 %v4352_v38, %v2385_v42  ;;  %v5544_v45 = vadd.f32 %v4353_v43, %v2392_v41 }
 0xf8d   :  { %v5546_v46 = vadd.f32 %v4353_v43, %v2393_v44 }
 0xf8f   :  { %v2438_v47 = vpack.c.bf16 %v5546_v46, %v5544_v45 }
 0xf91   :  { %4719 = vmatmul.mubr.msk.bf16.vlgmr.msra.gmra.mrb[44].mxu1 %vm467_vm3, %v2438_v47 }
 0xf92   :  { %4724 = vmatprep.mubr.msk.f32.mxu1 %vm5047_vm1, %v5046_v5 }
0x1064   :  { %v2494_v49 = vpop.f32.mrb[44].mxu1 }
0x1065   :  { %v5556_v50 = vadd.f32 %v4362_v48, %v2494_v49  ;;  %v4720_v51 = vpop.f32.mrb[45].mxu1 }
0x1066   :  { %v2497_v52 = vpop.f32.mrb[46].mxu1 }
0x1067   :  { %2669 = vrot.lane.b32.xlu0 %v5556_v50, %s5051_s16  ;;  %2502 = vrot.lane.b32.xlu1 %v5556_v50, %s5050_s15  ;;  %v4721_v53 = vpop.f32.mrb[47].mxu1  ;;  %v5570_v55 = vadd.f32 %v4362_v48, %v2497_v52 }
0x106b   :  { %2834 = vrot.lane.b32.xlu0 %v5556_v50, %s5054_s21  ;;  %2667 = vrot.lane.b32.xlu1 %v5556_v50, %s5053_s20 }
0x106f   :  { %3001 = vrot.lane.b32.xlu0 %v5556_v50, %s5055_s0  ;;  %2836 = vrot.lane.b32.xlu1 %v5556_v50, %s5052_s18 }
0x1073   :  { %3003 = vrot.lane.b32.xlu1 %v5556_v50, %s5056_s22  ;;  %3351 = vrot.lane.b32.xlu0 %v5570_v55, %s5051_s16 }
0x1077   :  { %3518 = vrot.lane.b32.xlu0 %v5570_v55, %s5052_s18  ;;  %3184 = vrot.lane.b32.xlu1 %v5570_v55, %s5050_s15 }
0x107b   :  { %3685 = vrot.lane.b32.xlu0 %v5570_v55, %s5056_s22  ;;  %3349 = vrot.lane.b32.xlu1 %v5570_v55, %s5053_s20 }
0x107f   :  { %2591 = vrot.lane.b32.xlu0 %v5556_v50, %s5049_s17  ;;  %3516 = vrot.lane.b32.xlu1 %v5570_v55, %s5054_s21 }
0x1083   :  { %3683 = vrot.lane.b32.xlu1 %v5570_v55, %s5055_s0 }
0x1087   :  { %2758 = vrot.lane.b32.xlu1 %v5556_v50, %s5057_s1 }
0x10d9   :  { %v2670_v56 = vpop.permute.xlu0 %2669  ;;  %v2503_v57 = vpop.permute.xlu1 %2502 }
0x10da   :  { %4723 = vmatpush3.xpose.msk.msra.mxu1 %vm726_vm6, %v2503_v57  ;;  %4733 = vmatpush3.xpose.msk.msra.mxu0 %vm726_vm6, %v2670_v56 }
0x10db   :  { %4742 = vmatprep.subr.mxu0 %v5046_v5  ;;  %4727 = vmatprep.subr.mxu1 %v5046_v5 }
0x10dd   :  { %v2835_v58 = vpop.permute.xlu0 %2834  ;;  %4725 = vmatmul.mubr.msk.f32.vlgmr.msra.gmra.mrb[48].mxu1 %vm726_vm6, %v5556_v50  ;;  %v2668_v59 = vpop.permute.xlu1 %2667 }
0x10de   :  { %4735 = vmatmul.mubr.msk.f32.vlgmr.msra.gmra.mrb[44].mxu0 %vm726_vm6, %v2668_v59  ;;  %4729 = vmatprep.mubr.msk.f32.mxu1 %vm5047_vm1, %v5046_v5 }
0x10df   :  { %4744 = vmatprep.mubr.msk.f32.mxu0 %vm5047_vm1, %v5046_v5 }
0x10e1   :  { %v3002_v60 = vpop.permute.xlu0 %3001  ;;  %v2837_v61 = vpop.permute.xlu1 %2836 }
0x10e2   :  { %4743 = vmatpush3.xpose.msk.msra.mxu0 %vm726_vm6, %v2837_v61 }
0x10e3   :  { %4752 = vmatprep.subr.mxu0 %v5046_v5 }
0x10e5   :  { %4745 = vmatmul.mubr.msk.f32.vlgmr.msra.gmra.mrb[46].mxu0 %vm726_vm6, %v2835_v58  ;;  %v3004_v62 = vpop.permute.xlu1 %3003  ;;  %v3352_v63 = vpop.permute.xlu0 %3351 }
0x10e6   :  { %4753 = vmatpush3.xpose.msk.msra.mxu0 %vm726_vm6, %v3004_v62  ;;  %4754 = vmatprep.mubr.msk.f32.mxu0 %vm5047_vm1, %v5046_v5 }
0x10e7   :  { %4762 = vmatprep.subr.mxu0 %v5046_v5 }
0x10e9   :  { %4755 = vmatmul.mubr.msk.f32.vlgmr.msra.gmra.mrb[48].mxu0 %vm726_vm6, %v3002_v60  ;;  %v3519_v0 = vpop.permute.xlu0 %3518  ;;  %v3185_v1 = vpop.permute.xlu1 %3184 }
0x10ea   :  { %4763 = vmatpush3.xpose.msk.msra.mxu0 %vm726_vm6, %v3185_v1  ;;  %4764 = vmatprep.mubr.msk.f32.mxu0 %vm5047_vm1, %v5046_v5 }
0x10eb   :  { %4772 = vmatprep.subr.mxu0 %v5046_v5 }
0x10ed   :  { %v3686_v2 = vpop.permute.xlu0 %3685  ;;  %4765 = vmatmul.mubr.msk.f32.vlgmr.msra.gmra.mrb[50].mxu0 %vm726_vm6, %v5570_v55  ;;  %v3350_v3 = vpop.permute.xlu1 %3349 }
0x10ee   :  { %4773 = vmatpush3.xpose.msk.msra.mxu0 %vm726_vm6, %v3352_v63  ;;  %4774 = vmatprep.mubr.msk.f32.mxu0 %vm5047_vm1, %v5046_v5 }
0x10ef   :  { %4782 = vmatprep.subr.mxu0 %v5046_v5 }
0x10f1   :  { %v2592_v4 = vpop.permute.xlu0 %2591  ;;  %4775 = vmatmul.mubr.msk.f32.vlgmr.msra.gmra.mrb[52].mxu0 %vm726_vm6, %v3350_v3  ;;  %v3517_v54 = vpop.permute.xlu1 %3516 }
0x10f2   :  { %4728 = vmatpush3.msra.mxu1 %v2592_v4  ;;  %4783 = vmatpush3.xpose.msk.msra.mxu0 %vm726_vm6, %v3519_v0 }
0x10f3   :  { %4784 = vmatprep.mubr.msk.f32.mxu0 %vm5047_vm1, %v5046_v5  ;;  %4792 = vmatprep.subr.mxu0 %v5046_v5 }
0x10f4   :  { %4737 = vmatprep.subr.mxu1 %v5046_v5 }
0x10f5   :  { %4785 = vmatmul.mubr.msk.f32.vlgmr.msra.gmra.mrb[54].mxu0 %vm726_vm6, %v3517_v54  ;;  %v3684_v7 = vpop.permute.xlu1 %3683 }
0x10f6   :  { %4793 = vmatpush3.xpose.msk.msra.mxu0 %vm726_vm6, %v3686_v2  ;;  %4794 = vmatprep.mubr.msk.f32.mxu0 %vm5047_vm1, %v5046_v5 }
0x10f7   :  { %4802 = vmatprep.subr.bf16.mxu0 %v5046_v5 }
0x10f9   :  { %4795 = vmatmul.mubr.msk.f32.vlgmr.msra.gmra.mrb[56].mxu0 %vm726_vm6, %v3684_v7  ;;  %v5657_v52 = vpop.permute.xlu1 %2758 }
0x10fa   :  { %4806 = vmatprep.mubr.msk.bf16.mxu0 %vm5047_vm1, %v5046_v5 }
0x11b0   :  { %v2574_v8 = vpop.f32.mrb[48].mxu1 }
0x11b1   :  { %v2578_v11 = vmul.f32 0.35355338, %v2574_v8  ;;  %v4726_v14 = vpop.f32.mrb[49].mxu1  ;;  %v2741_v12 = vpop.f32.mrb[44].mxu0 }
0x11b2   :  { %v2745_v13 = vmul.f32 0.35355338, %v2741_v12  ;;  %v4736_v15 = vpop.f32.mrb[45].mxu0 }
0x11b3   :  { %v2579_v17 = vadd.f32 %v5304_v24, %v2578_v11 }
0x11b4   :  { %v2746_v16 = vadd.f32 %v5304_v24, %v2745_v13 }
0x11b5   :  { %v2580_v18 = vsel %vm726_vm6, %v2579_v17, -inf }
0x11b6   :  { %2581 = vmax.xlane.f32.xlu0 %v2580_v18  ;;  %v2747_v19 = vsel %vm726_vm6, %v2746_v16, -inf }
0x11b7   :  { %2748 = vmax.xlane.f32.xlu1 %v2747_v19 }
0x11b8   :  { %v2908_v20 = vpop.f32.mrb[46].mxu0 }
0x11b9   :  { %v2912_v21 = vmul.f32 0.35355338, %v2908_v20  ;;  %v4746_v22 = vpop.f32.mrb[47].mxu0 }
0x11bb   :  { %v2913_v23 = vadd.f32 %v5304_v24, %v2912_v21 }
0x11bc   :  { %v3075_v25 = vpop.f32.mrb[48].mxu0 }
0x11bd   :  { %v3079_v26 = vmul.f32 0.35355338, %v3075_v25  ;;  %v4756_v27 = vpop.f32.mrb[49].mxu0  ;;  %v2914_v28 = vsel %vm726_vm6, %v2913_v23, -inf }
0x11be   :  { %2915 = vmax.xlane.f32.xlu0 %v2914_v28 }
0x11bf   :  { %v3080_v10 = vadd.f32 %v5021_v9, %v3079_v26 }
0x11c0   :  { %v3256_v29 = vpop.f32.mrb[50].mxu0 }
0x11c1   :  { %v3260_v30 = vmul.f32 0.35355338, %v3256_v29  ;;  %v4766_v31 = vpop.f32.mrb[51].mxu0  ;;  %v3081_v32 = vsel %vm726_vm6, %v3080_v10, -inf }
0x11c2   :  { %3082 = vmax.xlane.f32.xlu0 %v3081_v32 }
0x11c3   :  { %v3261_v33 = vadd.f32 %v5377_v6, %v3260_v30 }
0x11c4   :  { %v3423_v24 = vpop.f32.mrb[52].mxu0 }
0x11c5   :  { %v3427_v34 = vmul.f32 0.35355338, %v3423_v24  ;;  %v4776_v35 = vpop.f32.mrb[53].mxu0  ;;  %v3262_v36 = vsel %vm726_vm6, %v3261_v33, -inf }
0x11c6   :  { %3263 = vmax.xlane.f32.xlu1 %v3262_v36 }
0x11c7   :  { %v3428_v37 = vadd.f32 %v5377_v6, %v3427_v34 }
0x11c8   :  { %v3590_v38 = vpop.f32.mrb[54].mxu0 }
0x11c9   :  { %v3594_v39 = vmul.f32 0.35355338, %v3590_v38  ;;  %v4786_v40 = vpop.f32.mrb[55].mxu0  ;;  %v3429_v41 = vsel %vm726_vm6, %v3428_v37, -inf }
0x11ca   :  { %3430 = vmax.xlane.f32.xlu0 %v3429_v41 }
0x11cb   :  { %v3595_v42 = vadd.f32 %v5377_v6, %v3594_v39 }
0x11cc   :  { %v3757_v43 = vpop.f32.mrb[56].mxu0 }
0x11cd   :  { %v3761_v44 = vmul.f32 0.35355338, %v3757_v43  ;;  %v4796_v47 = vpop.f32.mrb[57].mxu0  ;;  %v3596_v48 = vsel %vm726_vm6, %v3595_v42, -inf }
0x11ce   :  { %3597 = vmax.xlane.f32.xlu1 %v3596_v48 }
0x11cf   :  { %v3762_v49 = vadd.f32 %v5377_v6, %v3761_v44 }
0x11d1   :  { %v3763_v51 = vsel %vm726_vm6, %v3762_v49, -inf }
0x11d2   :  { %3764 = vmax.xlane.f32.xlu0 %v3763_v51 }
0x11df   :  { %3092 = vrot.lane.b32.xlu1 %v5556_v50, %s5058_s24 }
0x11e8   :  { %2925 = vrot.lane.b32.xlu0 %v5556_v50, %s5059_s25 }
0x1243   :  { %v2582_v53 = vpop.xlane.xlu0 %2581 }
0x1244   :  { %v2583_v56 = vsub.f32 %v2579_v17, %v2582_v53  ;;  %v2749_v57 = vpop.xlane.xlu1 %2748 }
0x1245   :  { %v2750_v58 = vsub.f32 %v2746_v16, %v2749_v57 }
0x1246   :  { %v2584_v59 = vmul.f32 1.442695, %v2583_v56 }
0x1247   :  { %v2751_v60 = vmul.f32 1.442695, %v2750_v58 }
0x1248   :  { %4977 = vpow2.f32 %v2584_v59 }
0x1249   :  { %4979 = vpow2.f32 %v2751_v60 }
0x124b   :  { %v2916_v6 = vpop.xlane.xlu0 %2915 }
0x124c   :  { %v2917_v61 = vsub.f32 %v2913_v23, %v2916_v6 }
0x124e   :  { %v2918_v62 = vmul.f32 1.442695, %v2917_v61 }
0x124f   :  { %v3083_v63 = vpop.xlane.xlu0 %3082 }
0x1250   :  { %4981 = vpow2.f32 %v2918_v62  ;;  %v3084_v0 = vsub.f32 %v3080_v10, %v3083_v63 }
0x1252   :  { %v4978_v1 = vpop.eup %4977  ;;  %v3085_v2 = vmul.f32 1.442695, %v3084_v0 }
0x1253   :  { %v4980_v3 = vpop.eup %4979  ;;  %v2586_v50 = vsel %vm726_vm6, %v4978_v1, 0.0  ;;  %v3264_v14 = vpop.xlane.xlu1 %3263 }
0x1254   :  { %4983 = vpow2.f32 %v3085_v2  ;;  %2587 = vadd.xlane.f32.xlu1 %v2586_v50  ;;  %v2753_v4 = vsel %vm726_vm6, %v4980_v3, 0.0  ;;  %v3265_v12 = vsub.f32 %v3261_v33, %v3264_v14  ;;  %v4920_v14 = vld [vmem:[%s5829_s5 + $0x90] sm:$0xff]  }
0x1255   :  { %2754 = vadd.xlane.f32.xlu0 %v2753_v4 }
0x1256   :  { %v3266_v16 = vmul.f32 1.442695, %v3265_v12 }
0x1257   :  { %v3431_v13 = vpop.xlane.xlu0 %3430 }
0x1258   :  { %v3432_v17 = vsub.f32 %v3428_v37, %v3431_v13  ;;  %4985 = vpow2.f32 %v3266_v16 }
0x125a   :  { %v4982_v54 = vpop.eup %4981  ;;  %v3433_v20 = vmul.f32 1.442695, %v3432_v17 }
0x125b   :  { %v2920_v7 = vsel %vm726_vm6, %v4982_v54, 0.0  ;;  %v3598_v15 = vpop.xlane.xlu1 %3597 }
0x125c   :  { %2921 = vadd.xlane.f32.xlu1 %v2920_v7  ;;  %v3599_v18 = vsub.f32 %v3595_v42, %v3598_v15  ;;  %4987 = vpow2.f32 %v3433_v20 }
0x125e   :  { %v5662_v8 = vpop.eup %4983  ;;  %v3600_v21 = vmul.f32 1.442695, %v3599_v18 }
0x125f   :  { %v3087_v11 = vsel %vm726_vm6, %v5662_v8, 0.0  ;;  %v3765_v19 = vpop.xlane.xlu0 %3764  ;;  %v3093_v31 = vpop.permute.xlu1 %3092 }
0x1260   :  { %3088 = vadd.xlane.f32.xlu0 %v3087_v11  ;;  %v3766_v22 = vsub.f32 %v3762_v49, %v3765_v19  ;;  %4989 = vpow2.f32 %v3600_v21 }
0x1262   :  { %v3767_v23 = vmul.f32 1.442695, %v3766_v22  ;;  %v4986_v25 = vpop.eup %4985 }
0x1263   :  { %v3268_v27 = vsel %vm726_vm6, %v4986_v25, 0.0  ;;  %v2926_v32 = vpop.permute.xlu0 %2925 }
0x1264   :  { %4991 = vpow2.f32 %v3767_v23 }
0x1266   :  { %v5670_v26 = vpop.eup %4987 }
0x1267   :  { %v3435_v10 = vsel %vm726_vm6, %v5670_v26, 0.0 }
0x126a   :  { %v5673_v28 = vpop.eup %4989 }
0x126b   :  { %v3602_v9 = vsel %vm726_vm6, %v5673_v28, 0.0 }
0x126d   :  { %3440 = vrot.lane.b32.xlu1 %v5570_v55, %s5057_s1  ;;  %s5063_s1 = smov [#allocation2]  }
0x126e   :  { %v5679_v29 = vpop.eup %4991 }
0x126f   :  { %v3769_v30 = vsel %vm726_vm6, %v5679_v29, 0.0 }
0x1276   :  { %3273 = vrot.lane.b32.xlu0 %v5570_v55, %s5049_s17 }
0x1291   :  { %3269 = vadd.xlane.f32.xlu1 %v3268_v27 }
0x1295   :  { %3603 = vadd.xlane.f32.xlu1 %v3602_v9  ;;  %3436 = vadd.xlane.f32.xlu0 %v3435_v10 }
0x1299   :  { %3770 = vadd.xlane.f32.xlu1 %v3769_v30 }
0x12aa   :  { %3774 = vrot.lane.b32.xlu1 %v5570_v55, %s5058_s24  ;;  %s4243_s24 = sshll.u32 %s5063_s1, 4  ;;  %s4244_s24 = int_to_ptr.vmem [resolvable:$true] %s4243_s24 }
0x12ab   :  { %3607 = vrot.lane.b32.xlu0 %v5570_v55, %s5059_s25  ;;  %p5027_p1 = scmp.lt.s32.totalorder %s4244_s24, %s4244_s24 }
0x12e1   :  { %v2588_v33 = vpop.xlane.xlu1 %2587 }
0x12e2   :  { %4993 = vrcp.f32 %v2588_v33  ;;  %v2755_v24 = vpop.xlane.xlu0 %2754 }
0x12e3   :  { %4995 = vrcp.f32 %v2755_v24 }
0x12e9   :  { %v2922_v34 = vpop.xlane.xlu1 %2921 }
0x12ea   :  { %4997 = vrcp.f32 %v2922_v34 }
0x12ec   :  { %v4994_v35 = vpop.eup %4993 }
0x12ed   :  { %v2590_v36 = vmul.f32 %v4994_v35, %v4978_v1  ;;  %v3089_v37 = vpop.xlane.xlu0 %3088  ;;  %v4996_v38 = vpop.eup %4995 }
0x12ee   :  { %4999 = vrcp.f32 %v3089_v37  ;;  %v2757_v55 = vmul.f32 %v4996_v38, %v4980_v3  ;;  %v3441_v44 = vpop.permute.xlu1 %3440 }
0x12ef   :  { %4730 = vmatmul.mubr.msk.f32.vlgmr.msra.gmra.mrb[50].mxu1 %vm726_vm6, %v2590_v36  ;;  %v4390_v36 = vld [vmem:[%s5833_s9 + $0xb] ss:$0 sm:$0xff] }
0x12f0   :  { %4738 = vmatpush3.msra.mxu1 %v5657_v52  ;;  %4739 = vmatprep.mubr.msk.f32.mxu1 %vm5047_vm1, %v5046_v5 }
0x12f1   :  { %4747 = vmatprep.subr.mxu1 %v5046_v5  ;;  %v3274_v43 = vpop.permute.xlu0 %3273 }
0x12f3   :  { %4740 = vmatmul.mubr.msk.f32.vlgmr.msra.gmra.mrb[52].mxu1 %vm726_vm6, %v2757_v55 }
0x12f4   :  { %v4998_v39 = vpop.eup %4997  ;;  %4748 = vmatpush3.msra.mxu1 %v2926_v32  ;;  %4749 = vmatprep.mubr.msk.f32.mxu1 %vm5047_vm1, %v5046_v5 }
0x12f5   :  { %v2924_v40 = vmul.f32 %v4998_v39, %v4982_v54  ;;  %4757 = vmatprep.subr.mxu1 %v5046_v5 }
0x12f7   :  { %4750 = vmatmul.mubr.msk.f32.vlgmr.msra.gmra.mrb[54].mxu1 %vm726_vm6, %v2924_v40 }
0x12f8   :  { %v5000_v41 = vpop.eup %4999  ;;  %4758 = vmatpush3.msra.mxu1 %v3093_v31  ;;  %4759 = vmatprep.mubr.msk.f32.mxu1 %vm5047_vm1, %v5046_v5 }
0x12f9   :  { %v3091_v42 = vmul.f32 %v5000_v41, %v5662_v8  ;;  %4767 = vmatprep.subr.mxu1 %v5046_v5  ;;  %v4919_v8 = vld [vmem:[%s5829_s5 + $0x88] sm:$0xff]  }
0x12fa   :  { %4803 = vmatpush3.bf16.msra.mxu0 %v4919_v8  ;;  %v4395_v8 = vld [vmem:[%s5833_s9 + $0xd] ss:$0 sm:$0xff] }
0x12fb   :  { %4760 = vmatmul.mubr.msk.f32.vlgmr.msra.gmra.mrb[56].mxu1 %vm726_vm6, %v3091_v42  ;;  %4804 = vmatprep.subr.bf16.mxu0 %v5046_v5 }
0x12fc   :  { %4768 = vmatpush3.msra.mxu1 %v3274_v43  ;;  %4769 = vmatprep.mubr.msk.f32.mxu1 %vm5047_vm1, %v5046_v5 }
0x12fd   :  { %4777 = vmatprep.subr.mxu1 %v5046_v5 }
0x12fe   :  { %4805 = vmatpush3.bf16.msra.mxu0 %v4920_v14 }
0x12ff   :  { %4818 = vmatprep.subr.bf16.mxu0 %v5046_v5 }
0x131e   :  { %v3270_v47 = vpop.xlane.xlu1 %3269 }
0x131f   :  { %5001 = vrcp.f32 %v3270_v47 }
0x1322   :  { %v3604_v48 = vpop.xlane.xlu1 %3603  ;;  %v3437_v49 = vpop.xlane.xlu0 %3436 }
0x1323   :  { %5003 = vrcp.f32 %v3437_v49 }
0x1324   :  { %5005 = vrcp.f32 %v3604_v48 }
0x1326   :  { %v3771_v51 = vpop.xlane.xlu1 %3770  ;;  %v3608_v59 = vpop.permute.xlu0 %3607 }
0x1327   :  { %5007 = vrcp.f32 %v3771_v51 }
0x1329   :  { %v5002_v52 = vpop.eup %5001 }
0x132a   :  { %v3272_v53 = vmul.f32 %v5002_v52, %v4986_v25  ;;  %v3775_v61 = vpop.permute.xlu1 %3774 }
0x132c   :  { %4770 = vmatmul.mubr.msk.f32.vlgmr.msra.gmra.mrb[58].mxu1 %vm726_vm6, %v3272_v53 }
0x132d   :  { %4778 = vmatpush3.msra.mxu1 %v3441_v44  ;;  %4779 = vmatprep.mubr.msk.f32.mxu1 %vm5047_vm1, %v5046_v5  ;;  %v5004_v56 = vpop.eup %5003 }
0x132e   :  { %4787 = vmatprep.subr.mxu1 %v5046_v5  ;;  %v3439_v57 = vmul.f32 %v5004_v56, %v5670_v26  ;;  %v5006_v58 = vpop.eup %5005 }
0x132f   :  { %v3606_v60 = vmul.f32 %v5006_v58, %v5673_v28 }
0x1330   :  { %4780 = vmatmul.mubr.msk.f32.vlgmr.msra.gmra.mrb[60].mxu1 %vm726_vm6, %v3439_v57 }
0x1331   :  { %4788 = vmatpush3.msra.mxu1 %v3608_v59  ;;  %4789 = vmatprep.mubr.msk.f32.mxu1 %vm5047_vm1, %v5046_v5  ;;  %v5008_v6 = vpop.eup %5007 }
0x1332   :  { %4797 = vmatprep.subr.mxu1 %v5046_v5  ;;  %v3773_v62 = vmul.f32 %v5008_v6, %v5679_v29 }
0x1334   :  { %4790 = vmatmul.mubr.msk.f32.vlgmr.msra.gmra.mrb[62].mxu1 %vm726_vm6, %v3606_v60  ;;  %v4922_v60 = vld [vmem:[%s5831_s7 + $0x18] sm:$0xff]  }
0x1335   :  { %4798 = vmatpush3.msra.mxu1 %v3775_v61  ;;  %4799 = vmatprep.mubr.msk.f32.mxu1 %vm5047_vm1, %v5046_v5 }
0x1336   :  { %4810 = vmatprep.subr.bf16.mxu1 %v5046_v5 }
0x1338   :  { %4800 = vmatmul.mubr.msk.f32.vlgmr.msra.gmra.mrb[64].mxu1 %vm726_vm6, %v3773_v62 }
0x1339   :  { %4814 = vmatprep.mubr.msk.bf16.mxu1 %vm5047_vm1, %v5046_v5 }
0x13c2   :  { %v2663_v63 = vpop.f32.mrb[50].mxu1 }
0x13c3   :  { %v4731_v0 = vpop.f32.mrb[51].mxu1 }
0x13c6   :  { %v2830_v1 = vpop.f32.mrb[52].mxu1 }
0x13c7   :  { %v4741_v2 = vpop.f32.mrb[53].mxu1 }
0x13ca   :  { %v2997_v3 = vpop.f32.mrb[54].mxu1 }
0x13cb   :  { %v4751_v50 = vpop.f32.mrb[55].mxu1 }
0x13ce   :  { %v3164_v4 = vpop.f32.mrb[56].mxu1 }
0x13cf   :  { %v4761_v54 = vpop.f32.mrb[57].mxu1 }
0x13ff   :  { %v3345_v7 = vpop.f32.mrb[58].mxu1 }
0x1400   :  { %v4771_v11 = vpop.f32.mrb[59].mxu1 }
0x1403   :  { %v3512_v12 = vpop.f32.mrb[60].mxu1 }
0x1404   :  { %v4871_v13 = vpack.i.bf16 %v3512_v12, %v2830_v1  ;;  %v4781_v15 = vpop.f32.mrb[61].mxu1 }
0x1405   :  { %v4923_v15 = vld [vmem:[%s5829_s5 + $0x98] sm:$0xff]  }
0x1406   :  { %4872 = vrot.lane.b32.xlu0 %v4871_v13, %s5060_s30 }
0x1407   :  { %v3679_v17 = vpop.f32.mrb[62].mxu1 }
0x1408   :  { %v4876_v16 = vpack.i.bf16 %v3679_v17, %v2997_v3  ;;  %v4791_v18 = vpop.f32.mrb[63].mxu1  ;;  %v4394_v3 = vld [vmem:[%s5833_s9 + $0xc] ss:$0 sm:$0xff]  ;;  %v4924_v17 = vld [vmem:[%s5829_s5 + $0xa0] sm:$0xff]  }
0x1409   :  { %v4926_v18 = vld [vmem:[%s5829_s5 + $0xb0] sm:$0xff]  }
0x140a   :  { %4877 = vrot.lane.b32.xlu1 %v4876_v16, %s5061_s14  ;;  %v4925_v16 = vld [vmem:[%s5829_s5 + $0xa8] sm:$0xff]  }
0x140b   :  { %v3846_v19 = vpop.f32.mrb[64].mxu1 }
0x140c   :  { %v4881_v20 = vpack.i.bf16 %v3846_v19, %v3164_v4  ;;  %v4801_v21 = vpop.f32.mrb[65].mxu1  ;;  %v4396_v19 = vld [vmem:[%s5835_s11 + $0x1] ss:$0 sm:$0xff] }
0x140e   :  { %4882 = vrot.lane.b32.xlu0 %v4881_v20, %s5062_s3 }
0x1478   :  { %v4873_v22 = vpop.permute.xlu0 %4872 }
0x1479   :  { %v4875_v25 = vunpack.i.h.bf16 %v4873_v22  ;;  %v4874_v26 = vunpack.i.l.bf16 %v4873_v22 }
0x147b   :  { %v3862_v10 = vsel %vm726_vm6, %v3345_v7, %v4875_v25  ;;  %v3180_v29 = vsel %vm726_vm6, %v2663_v63, %v4874_v26 }
0x147c   :  { %v4878_v23 = vpop.permute.xlu1 %4877 }
0x147d   :  { %v4880_v27 = vunpack.i.h.bf16 %v4878_v23  ;;  %v4879_v28 = vunpack.i.l.bf16 %v4878_v23 }
0x147f   :  { %v3863_v32 = vsel %vm110_vm0, %v3862_v10, %v4880_v27  ;;  %v3181_v33 = vsel %vm110_vm0, %v3180_v29, %v4879_v28 }
0x1480   :  { %v4883_v9 = vpop.permute.xlu0 %4882 }
0x1481   :  { %v4885_v30 = vunpack.i.h.bf16 %v4883_v9  ;;  %v4884_v31 = vunpack.i.l.bf16 %v4883_v9 }
0x1483   :  { %v3864_v24 = vsel %vm1411_vm7, %v3863_v32, %v4885_v30  ;;  %v3182_v34 = vsel %vm1411_vm7, %v3181_v33, %v4884_v31 }
0x1484   :  { %v3865_v35 = vpack.c.bf16 %v3864_v24, %v3182_v34 }
0x1486   :  { %4807 = vmatmul.mubr.msk.bf16.vlgmr.msra.gmra.mrb[60].mxu0 %vm467_vm3, %v3865_v35  ;;  %v4400_v35 = vld [vmem:[%s5833_s9 + $0xe] ss:$0 sm:$0xff] }
0x1487   :  { %4826 = vmatprep.mubr.msk.bf16.mxu0 %vm5047_vm1, %v5046_v5  ;;  %4819 = vmatpush3.bf16.msra.mxu0 %v4923_v15  ;;  %v4408_v15 = vld [vmem:[%s5836_s12] ss:$0 sm:$0xff] }
0x1488   :  { %4820 = vmatprep.subr.bf16.mxu0 %v5046_v5 }
0x148b   :  { %4821 = vmatpush3.bf16.msra.mxu0 %v4924_v17 }
0x148c   :  { %4822 = vmatprep.subr.bf16.mxu0 %v5046_v5 }
0x148f   :  { %4823 = vmatpush3.bf16.msra.mxu0 %v4925_v16 }
0x1490   :  { %4824 = vmatprep.subr.bf16.mxu0 %v5046_v5 }
0x1493   :  { %4825 = vmatpush3.bf16.msra.mxu0 %v4926_v18 }
0x1559   :  { %v3921_v37 = vpop.f32.mrb[60].mxu0 }
0x155a   :  { %v3922_v38 = vadd.f32 %v4390_v36, %v3921_v37  ;;  %v4808_v55 = vpop.f32.mrb[61].mxu0 }
0x155b   :  { %v3924_v39 = vpop.f32.mrb[62].mxu0 }
0x155c   :  { %v3925_v40 = vadd.f32 %v4390_v36, %v3924_v39  ;;  %v4809_v41 = vpop.f32.mrb[63].mxu0  ;;  %v3928_v42 = vadd.f32 %v3922_v38, %v5544_v45 }
0x155e   :  { %v3929_v43 = vadd.f32 %v3925_v40, %v5546_v46  ;;  %v3930_v44 = vsel %vm467_vm3, %v3928_v42, 0.0  ;;  %v4921_v46 = vld [vmem:[%s5831_s7 + $0x10] sm:$0xff]  }
0x155f   :  { %3931 = vadd.xlane.f32.xlu1 %v3930_v44  ;;  %4811 = vmatpush3.bf16.msra.mxu1 %v4921_v46  ;;  %v4928_v46 = vld [vmem:[%s5832_s8 + $0x8] sm:$0xff]  }
0x1560   :  { %v3933_v47 = vsel %vm467_vm3, %v3929_v43, 0.0  ;;  %4812 = vmatprep.subr.bf16.mxu1 %v5046_v5 }
0x1561   :  { %3934 = vadd.xlane.f32.xlu0 %v3933_v47 }
0x1563   :  { %4813 = vmatpush3.bf16.msra.mxu1 %v4922_v60 }
0x1564   :  { %4830 = vmatprep.subr.bf16.mxu1 %v5046_v5 }
0x15ec   :  { %v3932_v48 = vpop.xlane.xlu1 %3931 }
0x15ed   :  { %v3936_v49 = vmul.f32 0.03125, %v3932_v48 }
0x15ee   :  { %v3935_v51 = vpop.xlane.xlu0 %3934 }
0x15ef   :  { %v3938_v52 = vsub.f32 %v3928_v42, %v3936_v49  ;;  %v3937_v53 = vmul.f32 0.03125, %v3935_v51 }
0x15f1   :  { %v3939_v56 = vsub.f32 %v3929_v43, %v3937_v53  ;;  %v3940_v57 = vmul.f32 %v3938_v52, %v3938_v52 }
0x15f3   :  { %v3942_v58 = vsel %vm467_vm3, %v3940_v57, 0.0  ;;  %v3941_v59 = vmul.f32 %v3939_v56, %v3939_v56 }
0x15f4   :  { %3943 = vadd.xlane.f32.xlu0 %v3942_v58 }
0x15f5   :  { %v3945_v45 = vsel %vm467_vm3, %v3941_v59, 0.0 }
0x15f6   :  { %3946 = vadd.xlane.f32.xlu1 %v3945_v45  ;;  %v4927_v45 = vld [vmem:[%s5832_s8] sm:$0xff]  }
0x1681   :  { %v3944_v6 = vpop.xlane.xlu0 %3943 }
0x1682   :  { %v3948_v61 = vmul.f32 0.03125, %v3944_v6 }
0x1683   :  { %v3947_v62 = vpop.xlane.xlu1 %3946 }
0x1684   :  { %v3950_v63 = vadd.f32 1e-12, %v3948_v61  ;;  %v3949_v0 = vmul.f32 0.03125, %v3947_v62 }
0x1686   :  { %5009 = vrsqrt.f32 %v3950_v63  ;;  %v3951_v1 = vadd.f32 1e-12, %v3949_v0 }
0x1688   :  { %5011 = vrsqrt.f32 %v3951_v1 }
0x1690   :  { %v5010_v2 = vpop.eup %5009 }
0x1691   :  { %v3954_v50 = vmul.f32 %v5010_v2, %v3938_v52 }
0x1692   :  { %v5012_v4 = vpop.eup %5011 }
0x1693   :  { %v3962_v54 = vmul.f32 %v4394_v3, %v3954_v50  ;;  %v3955_v7 = vmul.f32 %v5012_v4, %v3939_v56 }
0x1695   :  { %v3963_v11 = vmul.f32 %v4394_v3, %v3955_v7  ;;  %v3970_v14 = vadd.f32 %v4395_v8, %v3962_v54  ;;  %v4407_v7 = vld [vmem:[%s5833_s9 + $0x10] ss:$0 sm:$0xff] }
0x1697   :  { %v3971_v12 = vadd.f32 %v4395_v8, %v3963_v11 }
0x1699   :  { %v3972_v13 = vpack.c.bf16 %v3971_v12, %v3970_v14 }
0x169b   :  { %4815 = vmatmul.mubr.msk.bf16.vlgmr.msra.gmra.mrb[68].mxu1 %vm467_vm3, %v3972_v13 }
0x169c   :  { %4834 = vmatprep.mubr.msk.bf16.mxu1 %vm5047_vm1, %v5046_v5  ;;  %4831 = vmatpush3.bf16.msra.mxu1 %v4927_v45 }
0x169d   :  { %4832 = vmatprep.subr.bf16.mxu1 %v5046_v5  ;;  %v4406_v5 = vld [vmem:[%s5833_s9 + $0xf] ss:$0 sm:$0xff]  ;;  %s5022_s9 = scalar_lea.vmem %s4244_s24, 32 }
0x169e   :  { %p5023_p0 = scmp.ne.s32.totalorder %s4244_s24, %s5022_s9  ;;  %p5028_p2 = scmp.lt.s32.totalorder %s5022_s9, %s5022_s9 }
0x16a0   :  { %4833 = vmatpush3.bf16.msra.mxu1 %v4928_v46  ;;  %p5029_p3 = por %p5028_p2, %p5027_p1 }
0x16a2   :  { %p5030_p4 = pnand %p5029_p3, %p5023_p0 }
0x176e   :  { %v4028_v20 = vpop.f32.mrb[68].mxu1 }
0x176f   :  { %v4029_v21 = vadd.f32 %v4396_v19, %v4028_v20  ;;  %v4816_v22 = vpop.f32.mrb[69].mxu1 }
0x1770   :  { %v4031_v23 = vpop.f32.mrb[70].mxu1 }
0x1771   :  { %v4037_v25 = vmul.f32 0.70710677, %v4029_v21  ;;  %v4032_v26 = vadd.f32 %v4396_v19, %v4031_v23  ;;  %v4817_v27 = vpop.f32.mrb[71].mxu1  ;;  %v4035_v30 = vmul.f32 0.5, %v4029_v21 }
0x1773   :  { %5013 = verf.f32 %v4037_v25  ;;  %v4038_v28 = vmul.f32 0.70710677, %v4032_v26  ;;  %v4036_v31 = vmul.f32 0.5, %v4032_v26 }
0x1775   :  { %5015 = verf.f32 %v4038_v28 }
0x177d   :  { %v5014_v9 = vpop.eup %5013 }
0x177e   :  { %v4041_v10 = vadd.f32 1.0, %v5014_v9 }
0x177f   :  { %v5016_v29 = vpop.eup %5015 }
0x1780   :  { %v4042_v32 = vadd.f32 1.0, %v5016_v29  ;;  %v4043_v33 = vmul.f32 %v4041_v10, %v4035_v30 }
0x1782   :  { %v4044_v24 = vmul.f32 %v4042_v32, %v4036_v31 }
0x1784   :  { %v4045_v34 = vpack.c.bf16 %v4044_v24, %v4043_v33 }
0x1786   :  { %4827 = vmatmul.mubr.msk.bf16.vlgmr.msra.gmra.mrb[64].mxu0 %vm471_vm4, %v4045_v34 }
0x1859   :  { %v4113_v36 = vpop.f32.mrb[64].mxu0 }
0x185a   :  { %v4114_v37 = vadd.f32 %v4400_v35, %v4113_v36  ;;  %v4828_v38 = vpop.f32.mrb[65].mxu0 }
0x185b   :  { %v4116_v55 = vpop.f32.mrb[66].mxu0 }
0x185c   :  { %v4117_v39 = vadd.f32 %v4400_v35, %v4116_v55  ;;  %v4829_v40 = vpop.f32.mrb[67].mxu0  ;;  %v4120_v41 = vadd.f32 %v4114_v37, %v3970_v14 }
0x185e   :  { %v4121_v42 = vadd.f32 %v4117_v39, %v3971_v12  ;;  %v4122_v43 = vsel %vm467_vm3, %v4120_v41, 0.0 }
0x185f   :  { %4123 = vadd.xlane.f32.xlu1 %v4122_v43 }
0x1860   :  { %v4125_v44 = vsel %vm467_vm3, %v4121_v42, 0.0 }
0x1861   :  { %4126 = vadd.xlane.f32.xlu0 %v4125_v44 }
0x18ec   :  { %v4124_v47 = vpop.xlane.xlu1 %4123 }
0x18ed   :  { %v4128_v48 = vmul.f32 0.03125, %v4124_v47 }
0x18ee   :  { %v4127_v49 = vpop.xlane.xlu0 %4126 }
0x18ef   :  { %v4130_v51 = vsub.f32 %v4120_v41, %v4128_v48  ;;  %v4129_v52 = vmul.f32 0.03125, %v4127_v49 }
0x18f1   :  { %v4131_v53 = vsub.f32 %v4121_v42, %v4129_v52  ;;  %v4132_v56 = vmul.f32 %v4130_v51, %v4130_v51 }
0x18f3   :  { %v4134_v57 = vsel %vm467_vm3, %v4132_v56, 0.0  ;;  %v4133_v58 = vmul.f32 %v4131_v53, %v4131_v53 }
0x18f4   :  { %4135 = vadd.xlane.f32.xlu1 %v4134_v57 }
0x18f5   :  { %v4137_v59 = vsel %vm467_vm3, %v4133_v58, 0.0 }
0x18f6   :  { %4138 = vadd.xlane.f32.xlu0 %v4137_v59 }
0x1981   :  { %v4136_v60 = vpop.xlane.xlu1 %4135 }
0x1982   :  { %v4140_v6 = vmul.f32 0.03125, %v4136_v60 }
0x1983   :  { %v4139_v61 = vpop.xlane.xlu0 %4138 }
0x1984   :  { %v4142_v62 = vadd.f32 1e-12, %v4140_v6  ;;  %v4141_v63 = vmul.f32 0.03125, %v4139_v61 }
0x1986   :  { %5017 = vrsqrt.f32 %v4142_v62  ;;  %v4143_v0 = vadd.f32 1e-12, %v4141_v63 }
0x1988   :  { %5019 = vrsqrt.f32 %v4143_v0 }
0x1990   :  { %v5018_v1 = vpop.eup %5017 }
0x1991   :  { %v4146_v2 = vmul.f32 %v5018_v1, %v4130_v51 }
0x1992   :  { %v5020_v3 = vpop.eup %5019 }
0x1993   :  { %v4147_v50 = vmul.f32 %v5020_v3, %v4131_v53  ;;  %v4154_v4 = vmul.f32 %v4406_v5, %v4146_v2 }
0x1995   :  { %v4155_v54 = vmul.f32 %v4406_v5, %v4147_v50  ;;  %v4162_v11 = vadd.f32 %v4407_v7, %v4154_v4 }
0x1997   :  { %v4163_v8 = vadd.f32 %v4407_v7, %v4155_v54 }
0x1999   :  { %v4165_v14 = vrot.slane %v4163_v8, 7 }
0x199b   :  { %v4168_v12 = vsel %vm4167_vm8, %v4162_v11, %v4165_v14 }
0x199c   :  { %v4169_v13 = vpack.c.bf16 %v4168_v12, %v4168_v12 }
0x199e   :  { %4835 = vmatmul.mubr.msk.bf16.vlgmr.msra.gmra.mrb[72].mxu1 %vm467_vm3, %v4169_v13 }
0x1a71   :  { %v4230_v17 = vpop.f32.mrb[72].mxu1 }
0x1a72   :  { %v4231_v16 = vadd.f32 %v4408_v15, %v4230_v17  ;;  %v4836_v18 = vpop.f32.mrb[73].mxu1 }
0x1a73   :  { %v4233_v19 = vpop.f32.mrb[74].mxu1 }
0x1a74   :  { %4236 = vst [vmem:[#allocation2] sm:$0x3] %v4231_v16  ;;  %v4837_v20 = vpop.f32.mrb[75].mxu1 }
0x1a75   :  { %5033 = shalt.err (!%p5030_p4)
}
0x1a76   :  { %s5034_s12 = scalar_lea.hbm %s5837_s13, 32 }
0x1a77   :  { %p5035_p5 = scmp.ne.s32.totalorder %s5837_s13, %s5034_s12  ;;  %p5038_p6 = scmp.lt.u32.totalorder %s5034_s12, %s5837_s13 }
0x1a79   :  { %p5040_p7 = pnand %p5038_p6, %p5035_p5 }
0x1a7b   :  { %5043 = shalt.err (!%p5040_p7)
}
0x1a7c   :  { %4246 = dma.vmem_to_hbm [thread:$0]  %s4244_s24, 32, %s5837_s13, [#allocation3]  }
0x1a7d   :  { %5044 = dma.done.wait [#allocation3], 32  }
0x1a7e   :  { %5045 = vsyncadd [#allocation3], 4294967264 }
0x1a7f   :  { %4250 = vsyncpa [#allocation3], 1 }

</bundles_post_ra>
